<compile_context>
chip_gen: v7x
topology: tpu7x:2x2x1
jax: 0.10.0
libtpu: 0.0.40
codegen_flags: <defaults>
</compile_context>

<pallas_src>
import functools

import numpy as np
import jax
import jax.numpy as jnp
from jax.experimental import pallas as pl
from jax.experimental.pallas import tpu as pltpu

BASIS_DIM = 20


def _gnn3_layer_kernel(x_ref, a_ref, wc_ref, wv_ref, o_ref, *, apply_sigmoid):
    # x_ref : (1, D, N, N) VMEM      a_ref : (1, N, N) VMEM
    # wc_ref: (E*(10*D+1),) SMEM     flat per-(output-channel, source) scalar weights,
    #                                bias in the last slot of each row; 1/norm folded in
    # wv_ref: (2E, 4D) VMEM          weights of the 8 rank-1 (row/col-sum) bases
    # o_ref : (1, E, N, N) VMEM
    D, N = x_ref.shape[1], x_ref.shape[2]
    E = o_ref.shape[1]
    f32 = jnp.float32
    stride = 10 * D + 1
    n_acc, n_accT = 7 * D, 3 * D

    A = a_ref[0].astype(f32)                        # (N, N)
    At = A.T
    X = x_ref[0].astype(f32)                        # (D, N, N)
    XA = X * A[None, :, :]                          # X_d ⊙ A

    # ---- 8 rank-1 bases: contract over d at vector size (one tiny MXU matmul) ----
    V = jnp.concatenate([
        jnp.sum(XA, axis=2),                        # rowsum(X⊙A)[i]   (r=5 / r=6)
        jnp.sum(XA, axis=1),                        # colsum(X⊙A)[j]   (r=7 / r=8)
        jnp.sum(X, axis=2),                         # rowsum(X)[i]     (r=15 / r=16)
        jnp.sum(X, axis=1),                         # colsum(X)[j]     (r=18 / r=17)
    ], axis=0)                                      # (4D, N)
    U = jnp.dot(wv_ref[...].astype(f32), V, preferred_element_type=f32)   # (2E, N)

    # ---- adjacency-derived fields ----
    AAt = jnp.dot(A, At, preferred_element_type=f32)     # A A^T        (op3)
    rsA_i = jnp.sum(A, axis=1, keepdims=True)            # (N, 1) rowsum(A)[i]  (ops8)
    rsA_j = jnp.sum(At, axis=0, keepdims=True)           # (1, N) rowsum(A)[j]  (ops9)

    # ---- matmul bases: fuse the per-channel products sharing RHS = A ----
    Xd = [X[d] for d in range(D)]
    Xt = [Xd[d].T for d in range(D)]                     # only D 2-D transposes
    XAd = [XA[d] for d in range(D)]
    XAt = [Xt[d] * At for d in range(D)]                 # (X_d⊙A)^T without extra transposes
    L = jnp.concatenate(XAt + XAd + Xt, axis=0)          # (3D*N, N)
    P = jnp.dot(L, A, preferred_element_type=f32)        # rows: op1_d | op2_d | op6_d
    Pm = [P[m * N:(m + 1) * N, :] for m in range(3 * D)]

    # Sources added directly (wc columns [0, 7D)) and sources whose TRANSPOSE is added
    # (columns [7D, 10D)); the transpose is applied once per output channel.
    srcs_acc = (Pm                                       # op1, op2, op6(+dup)   (r=0,2,9+11)
                + [Xd[d] * AAt for d in range(D)]        # op3                   (r=4)
                + [Xd[d] * rsA_i for d in range(D)]      # ops8                  (r=13)
                + [Xd[d] * rsA_j for d in range(D)]      # ops9                  (r=14)
                + Xd)                                    # identity, unnormalized (r=19)
    srcs_accT = Pm                                       # op1^T, op2^T, op6^T   (r=1,3,10+12)

    # Static unroll over output channels; weights come from SMEM as true scalars so
    # every term is a scalar-splat FMA on the VPU (no per-term vreg broadcasts).
    for e in range(E):
        base = e * stride
        acc = wc_ref[base] * srcs_acc[0]
        for m in range(1, n_acc):
            acc = acc + wc_ref[base + m] * srcs_acc[m]
        accT = wc_ref[base + n_acc] * srcs_accT[0]
        for m in range(1, n_accT):
            accT = accT + wc_ref[base + n_acc + m] * srcs_accT[m]
        acc = acc + U[E + e:E + e + 1, :]                # column-varying rank-1 bases
        accT = accT + U[e:e + 1, :]                      # row-varying bases (via transpose)
        out_e = acc + accT.T + wc_ref[base + n_acc + n_accT]   # + bias
        if apply_sigmoid:
            out_e = jax.nn.sigmoid(out_e)
        o_ref[0, e] = out_e.astype(o_ref.dtype)


def _prepare_weights(coeffs, bias, norm):
    """coeffs (D, E, 20), bias (E,) -> flat (E*(10D+1),) scalar table and (2E, 4D) vector table."""
    D, E, _ = coeffs.shape
    c = coeffs.astype(jnp.float32)
    w = c * jnp.float32(1.0 / norm)                 # bases 0..18 carry the 1/n normalization
    t = lambda r: w[:, :, r].T                      # (E, D)
    wc = jnp.concatenate([
        # direct sources: op1, op2, op6(+"ops7" dup), op3, ops8, ops9, identity
        t(0), t(2), t(9) + t(11), t(4), t(13), t(14), c[:, :, 19].T,
        # transposed sources: op1^T, op2^T, op6^T(+dup)
        t(1), t(3), t(10) + t(12),
        bias.reshape(E, 1).astype(jnp.float32),
    ], axis=1)                                      # (E, 10D+1), row-major flatten below
    wv = jnp.concatenate([
        jnp.concatenate([t(5), t(7), t(15), t(18)], axis=1),   # row-varying group (via accT)
        jnp.concatenate([t(6), t(8), t(16), t(17)], axis=1),   # column-varying group
    ], axis=0)                                      # (2E, 4D)
    return wc.reshape(-1), wv


def gnn3_layer(x_2d, A, coeffs, bias, *, apply_sigmoid, normalization=True):
    B, D, N, _ = x_2d.shape
    E = coeffs.shape[1]
    norm = float(N) if normalization else 1.0
    wc, wv = _prepare_weights(coeffs, bias, norm)

    kernel = functools.partial(_gnn3_layer_kernel, apply_sigmoid=apply_sigmoid)
    return pl.pallas_call(
        kernel,
        out_shape=jax.ShapeDtypeStruct((B, E, N, N), x_2d.dtype),
        grid_spec=pltpu.PrefetchScalarGridSpec(
            num_scalar_prefetch=0,
            grid=(B,),
            in_specs=[
                pl.BlockSpec((1, D, N, N), lambda b: (b, 0, 0, 0)),
                pl.BlockSpec((1, N, N), lambda b: (b, 0, 0)),
                pl.BlockSpec(memory_space=pltpu.MemorySpace.SMEM),   # scalar weight table
                pl.BlockSpec((2 * E, 4 * D), lambda b: (0, 0)),
            ],
            out_specs=pl.BlockSpec((1, E, N, N), lambda b: (b, 0, 0, 0)),
        ),
        compiler_params=pltpu.CompilerParams(
            dimension_semantics=("parallel",),
            vmem_limit_bytes=32 * 1024 * 1024,
        ),
    )(x_2d, A, wc, wv)


# ---------------- plain-JAX glue (matches the PyTorch module) ----------------

def to_2d_tensor(x, num_graphs, n):
    feat = x.shape[-1]
    x2 = x.reshape(num_graphs, n, feat).transpose(0, 2, 1)       # (B, feat, n)
    row = jnp.broadcast_to(x2[:, :, :, None], (num_graphs, feat, n, n))
    col = jnp.broadcast_to(x2[:, :, None, :], (num_graphs, feat, n, n))
    return jnp.concatenate([row, col], axis=1)                   # (B, 2*feat, n, n)


def to_dense_adj(edge_index, batch, edge_weight, num_graphs, n):
    src, dst = edge_index[0], edge_index[1]
    g = batch[src]
    A = jnp.zeros((num_graphs, n, n), dtype=edge_weight.dtype)
    return A.at[g, src - g * n, dst - g * n].add(edge_weight)


def simple_gnn3_forward(x, edge_index, edge_weight, batch, layer_params):
    num_graphs = int(batch.max()) + 1
    n = x.shape[0] // num_graphs
    x_2d = to_2d_tensor(x, num_graphs, n)
    A = to_dense_adj(edge_index, batch, edge_weight, num_graphs, n)
    L = len(layer_params)
    for i, (coeffs, bias) in enumerate(layer_params):
        x_2d = gnn3_layer(x_2d, A, coeffs, bias, apply_sigmoid=(i < L - 1))
    return jnp.mean(x_2d, axis=(1, 2, 3))


# ---------------- pure-JAX reference (direct translation of the torch code) ----------------

def _ref_operators(x_2d, A, normalization=True):
    xdim = x_2d.shape
    n = xdim[-1]
    norm = n if normalization else 1
    P = jax.lax.Precision.HIGHEST
    T = lambda t: jnp.swapaxes(t, 2, 3)
    op1 = jnp.einsum('bdij,bij,bik->bdjk', x_2d, A, A, precision=P) / norm
    op2 = jnp.einsum('bdij,bij,bjk->bdik', x_2d, A, A, precision=P) / norm
    op3 = jnp.einsum('bdij,bik,bjk->bdij', x_2d, A, A, precision=P) / norm
    op4 = jnp.broadcast_to(jnp.einsum('bdij,bij->bdi', x_2d, A, precision=P)[..., None], xdim) / norm
    op5 = jnp.broadcast_to(jnp.einsum('bdij,bij->bdj', x_2d, A, precision=P)[..., None], xdim) / norm
    op6 = jnp.einsum('bdij,bik->bdjk', x_2d, A, precision=P) / norm
    _op7 = jnp.einsum('bdij,bjk->bdik', x_2d, A, precision=P) / norm  # unused (bug kept from reference)
    op8 = jnp.einsum('bdij,bik->bdij', x_2d, A, precision=P) / norm
    op9 = jnp.einsum('bdij,bjk->bdij', x_2d, A, precision=P) / norm
    op10 = jnp.broadcast_to(x_2d.sum(3, keepdims=True), xdim) / norm
    op11 = jnp.broadcast_to(x_2d.sum(2, keepdims=True), xdim) / norm
    return [op1, T(op1), op2, T(op2), op3, op4, T(op4), op5, T(op5),
            op6, T(op6), op6, T(op6), op8, op9, op10, T(op10), op11, T(op11), x_2d]


def _ref_forward(x, edge_index, edge_weight, batch, layer_params):
    num_graphs = int(batch.max()) + 1
    n = x.shape[0] // num_graphs
    x_2d = to_2d_tensor(x, num_graphs, n)
    A = to_dense_adj(edge_index, batch, edge_weight, num_graphs, n)
    L = len(layer_params)
    for i, (coeffs, bias) in enumerate(layer_params):
        ops = jnp.stack(_ref_operators(x_2d, A), axis=2)
        x_2d = jnp.einsum('der,bdrij->beij', coeffs, ops,
                          precision=jax.lax.Precision.HIGHEST) + bias.reshape(1, -1, 1, 1)
        if i < L - 1:
            x_2d = jax.nn.sigmoid(x_2d)
    return jnp.mean(x_2d, axis=(1, 2, 3))


if __name__ == "__main__":
    key = jax.random.PRNGKey(0)
    in_channels, hidden_channels, num_layers = 2, 4, 2
    B, n = 2, 8                      # 2 graphs, 8 nodes each
    edges_per_graph = 16

    ks = jax.random.split(key, 8)
    x = jax.random.normal(ks[0], (B * n, in_channels), dtype=jnp.float32)
    batch = jnp.repeat(jnp.arange(B, dtype=jnp.int32), n)
    src_l = jax.random.randint(ks[1], (B, edges_per_graph), 0, n)
    dst_l = jax.random.randint(ks[2], (B, edges_per_graph), 0, n)
    offs = (jnp.arange(B, dtype=jnp.int32) * n)[:, None]
    edge_index = jnp.stack([(src_l + offs).reshape(-1),
                            (dst_l + offs).reshape(-1)]).astype(jnp.int32)
    edge_weight = jax.random.uniform(ks[3], (B * edges_per_graph,), dtype=jnp.float32)

    # deterministic parameters (shapes per SimpleGNN3Layer.__init__: channels doubled, basis=20)
    d1, e1 = 2 * in_channels, 2 * hidden_channels
    d2, e2 = 2 * hidden_channels, 2 * hidden_channels
    coeffs1 = jax.random.normal(ks[4], (d1, e1, BASIS_DIM), dtype=jnp.float32) * (np.sqrt(2.0) / (d1 + e1))
    bias1 = jnp.zeros((e1,), dtype=jnp.float32)
    coeffs2 = jax.random.normal(ks[5], (d2, e2, BASIS_DIM), dtype=jnp.float32) * (np.sqrt(2.0) / (d2 + e2))
    bias2 = jnp.zeros((e2,), dtype=jnp.float32)
    layer_params = [(coeffs1, bias1), (coeffs2, bias2)]

    out = jax.block_until_ready(simple_gnn3_forward(x, edge_index, edge_weight, batch, layer_params))
    ref = jax.block_until_ready(_ref_forward(x, edge_index, edge_weight, batch, layer_params))
    np.testing.assert_allclose(np.asarray(out), np.asarray(ref), rtol=1e-2, atol=1e-4)
    print("KERNEL_OK")
</pallas_src>

<mosaic_0001>
module attributes {stable_mosaic.version = 11 : i64} {
  func.func @_gnn3_layer_kernel(%arg0: i32, %arg1: memref<1x4x8x8xf32, #tpu.memory_space<vmem>>, %arg2: memref<1x8x8xf32, #tpu.memory_space<vmem>>, %arg3: memref<328xf32, #tpu.memory_space<smem>>, %arg4: memref<16x16xf32, #tpu.memory_space<vmem>>, %arg5: memref<1x8x8x8xf32, #tpu.memory_space<vmem>>) attributes {dimension_semantics = [#tpu.dimension_semantics<parallel>], iteration_bounds = array<i64: 2>, scalar_prefetch = 0 : i64, scratch_operands = 0 : i64, tpu.core_type = #tpu.core_type<tc>, window_params = [{transform_indices = @transform_0, window_bounds = array<i64: 1, 4, 8, 8>}, {transform_indices = @transform_1, window_bounds = array<i64: 1, 8, 8>}, {transform_indices = @transform_2, window_bounds = array<i64: 328>}, {pipeline_mode = #tpu.pipeline_mode<synchronous>, transform_indices = @transform_3, window_bounds = array<i64: 16, 16>}, {transform_indices = @transform_4, window_bounds = array<i64: 1, 8, 8, 8>}]} {
    %c0 = arith.constant 0 : index
    %c0_0 = arith.constant 0 : index
    %c0_1 = arith.constant 0 : index
    %0 = vector.load %arg2[%c0, %c0_0, %c0_1] : memref<1x8x8xf32, #tpu.memory_space<vmem>>, vector<1x8x8xf32>
    %1 = vector.shape_cast %0 : vector<1x8x8xf32> to vector<8x8xf32>
    %2 = tpu.transpose %1, [1, 0] : vector<8x8xf32> -> vector<8x8xf32>
    %c0_2 = arith.constant 0 : index
    %c0_3 = arith.constant 0 : index
    %c0_4 = arith.constant 0 : index
    %c0_5 = arith.constant 0 : index
    %3 = vector.load %arg1[%c0_2, %c0_3, %c0_4, %c0_5] : memref<1x4x8x8xf32, #tpu.memory_space<vmem>>, vector<1x4x8x8xf32>
    %4 = vector.shape_cast %3 : vector<1x4x8x8xf32> to vector<4x8x8xf32>
    %5 = vector.shape_cast %1 : vector<8x8xf32> to vector<1x8x8xf32>
    %6 = vector.broadcast %5 : vector<1x8x8xf32> to vector<4x8x8xf32>
    %7 = arith.mulf %4, %6 : vector<4x8x8xf32>
    %cst = arith.constant dense<0.000000e+00> : vector<4x8xf32>
    %8 = vector.multi_reduction <add>, %7, %cst [2] : vector<4x8x8xf32> to vector<4x8xf32>
    %cst_6 = arith.constant dense<0.000000e+00> : vector<4x8xf32>
    %9 = vector.multi_reduction <add>, %7, %cst_6 [1] : vector<4x8x8xf32> to vector<4x8xf32>
    %cst_7 = arith.constant dense<0.000000e+00> : vector<4x8xf32>
    %10 = vector.multi_reduction <add>, %4, %cst_7 [2] : vector<4x8x8xf32> to vector<4x8xf32>
    %cst_8 = arith.constant dense<0.000000e+00> : vector<4x8xf32>
    %11 = vector.multi_reduction <add>, %4, %cst_8 [1] : vector<4x8x8xf32> to vector<4x8xf32>
    %12 = tpu.concatenate %8, %9, %10, %11 in 0 : vector<4x8xf32>, vector<4x8xf32>, vector<4x8xf32>, vector<4x8xf32> -> vector<16x8xf32>
    %c0_9 = arith.constant 0 : index
    %c0_10 = arith.constant 0 : index
    %13 = vector.load %arg4[%c0_9, %c0_10] : memref<16x16xf32, #tpu.memory_space<vmem>>, vector<16x16xf32>
    %cst_11 = arith.constant dense<0.000000e+00> : vector<16x8xf32>
    %14 = tpu.matmul %13, %12, %cst_11 {dimension_numbers = #tpu.dot_dimension_numbers<[1], [0], [0], [1], [0, 0, 1, 1], [], []>} : vector<16x16xf32>, vector<16x8xf32>, vector<16x8xf32> -> vector<16x8xf32>
    %cst_12 = arith.constant dense<0.000000e+00> : vector<8x8xf32>
    %15 = tpu.matmul %1, %2, %cst_12 {dimension_numbers = #tpu.dot_dimension_numbers<[1], [0], [0], [1], [0, 0, 1, 1], [], []>} : vector<8x8xf32>, vector<8x8xf32>, vector<8x8xf32> -> vector<8x8xf32>
    %cst_13 = arith.constant dense<0.000000e+00> : vector<8xf32>
    %16 = vector.multi_reduction <add>, %1, %cst_13 [1] : vector<8x8xf32> to vector<8xf32>
    %17 = vector.shape_cast %16 : vector<8xf32> to vector<8x1xf32>
    %cst_14 = arith.constant dense<0.000000e+00> : vector<8xf32>
    %18 = vector.multi_reduction <add>, %2, %cst_14 [0] : vector<8x8xf32> to vector<8xf32>
    %19 = vector.shape_cast %18 : vector<8xf32> to vector<1x8xf32>
    %20 = vector.extract_strided_slice %4 {offsets = [0, 0, 0], sizes = [1, 8, 8], strides = [1, 1, 1]} : vector<4x8x8xf32> to vector<1x8x8xf32>
    %21 = vector.shape_cast %20 : vector<1x8x8xf32> to vector<8x8xf32>
    %22 = vector.extract_strided_slice %4 {offsets = [1, 0, 0], sizes = [1, 8, 8], strides = [1, 1, 1]} : vector<4x8x8xf32> to vector<1x8x8xf32>
    %23 = vector.shape_cast %22 : vector<1x8x8xf32> to vector<8x8xf32>
    %24 = vector.extract_strided_slice %4 {offsets = [2, 0, 0], sizes = [1, 8, 8], strides = [1, 1, 1]} : vector<4x8x8xf32> to vector<1x8x8xf32>
    %25 = vector.shape_cast %24 : vector<1x8x8xf32> to vector<8x8xf32>
    %26 = vector.extract_strided_slice %4 {offsets = [3, 0, 0], sizes = [1, 8, 8], strides = [1, 1, 1]} : vector<4x8x8xf32> to vector<1x8x8xf32>
    %27 = vector.shape_cast %26 : vector<1x8x8xf32> to vector<8x8xf32>
    %28 = tpu.transpose %21, [1, 0] : vector<8x8xf32> -> vector<8x8xf32>
    %29 = tpu.transpose %23, [1, 0] : vector<8x8xf32> -> vector<8x8xf32>
    %30 = tpu.transpose %25, [1, 0] : vector<8x8xf32> -> vector<8x8xf32>
    %31 = tpu.transpose %27, [1, 0] : vector<8x8xf32> -> vector<8x8xf32>
    %32 = vector.extract_strided_slice %7 {offsets = [0, 0, 0], sizes = [1, 8, 8], strides = [1, 1, 1]} : vector<4x8x8xf32> to vector<1x8x8xf32>
    %33 = vector.shape_cast %32 : vector<1x8x8xf32> to vector<8x8xf32>
    %34 = vector.extract_strided_slice %7 {offsets = [1, 0, 0], sizes = [1, 8, 8], strides = [1, 1, 1]} : vector<4x8x8xf32> to vector<1x8x8xf32>
    %35 = vector.shape_cast %34 : vector<1x8x8xf32> to vector<8x8xf32>
    %36 = vector.extract_strided_slice %7 {offsets = [2, 0, 0], sizes = [1, 8, 8], strides = [1, 1, 1]} : vector<4x8x8xf32> to vector<1x8x8xf32>
    %37 = vector.shape_cast %36 : vector<1x8x8xf32> to vector<8x8xf32>
    %38 = vector.extract_strided_slice %7 {offsets = [3, 0, 0], sizes = [1, 8, 8], strides = [1, 1, 1]} : vector<4x8x8xf32> to vector<1x8x8xf32>
    %39 = vector.shape_cast %38 : vector<1x8x8xf32> to vector<8x8xf32>
    %40 = arith.mulf %28, %2 : vector<8x8xf32>
    %41 = arith.mulf %29, %2 : vector<8x8xf32>
    %42 = arith.mulf %30, %2 : vector<8x8xf32>
    %43 = arith.mulf %31, %2 : vector<8x8xf32>
    %44 = tpu.concatenate %40, %41, %42, %43, %33, %35, %37, %39, %28, %29, %30, %31 in 0 : vector<8x8xf32>, vector<8x8xf32>, vector<8x8xf32>, vector<8x8xf32>, vector<8x8xf32>, vector<8x8xf32>, vector<8x8xf32>, vector<8x8xf32>, vector<8x8xf32>, vector<8x8xf32>, vector<8x8xf32>, vector<8x8xf32> -> vector<96x8xf32>
    %cst_15 = arith.constant dense<0.000000e+00> : vector<96x8xf32>
    %45 = tpu.matmul %44, %1, %cst_15 {dimension_numbers = #tpu.dot_dimension_numbers<[1], [0], [0], [1], [0, 0, 1, 1], [], []>} : vector<96x8xf32>, vector<8x8xf32>, vector<96x8xf32> -> vector<96x8xf32>
    %46 = vector.extract_strided_slice %45 {offsets = [0, 0], sizes = [8, 8], strides = [1, 1]} : vector<96x8xf32> to vector<8x8xf32>
    %47 = vector.extract_strided_slice %45 {offsets = [8, 0], sizes = [8, 8], strides = [1, 1]} : vector<96x8xf32> to vector<8x8xf32>
    %48 = vector.extract_strided_slice %45 {offsets = [16, 0], sizes = [8, 8], strides = [1, 1]} : vector<96x8xf32> to vector<8x8xf32>
    %49 = vector.extract_strided_slice %45 {offsets = [24, 0], sizes = [8, 8], strides = [1, 1]} : vector<96x8xf32> to vector<8x8xf32>
    %50 = vector.extract_strided_slice %45 {offsets = [32, 0], sizes = [8, 8], strides = [1, 1]} : vector<96x8xf32> to vector<8x8xf32>
    %51 = vector.extract_strided_slice %45 {offsets = [40, 0], sizes = [8, 8], strides = [1, 1]} : vector<96x8xf32> to vector<8x8xf32>
    %52 = vector.extract_strided_slice %45 {offsets = [48, 0], sizes = [8, 8], strides = [1, 1]} : vector<96x8xf32> to vector<8x8xf32>
    %53 = vector.extract_strided_slice %45 {offsets = [56, 0], sizes = [8, 8], strides = [1, 1]} : vector<96x8xf32> to vector<8x8xf32>
    %54 = vector.extract_strided_slice %45 {offsets = [64, 0], sizes = [8, 8], strides = [1, 1]} : vector<96x8xf32> to vector<8x8xf32>
    %55 = vector.extract_strided_slice %45 {offsets = [72, 0], sizes = [8, 8], strides = [1, 1]} : vector<96x8xf32> to vector<8x8xf32>
    %56 = vector.extract_strided_slice %45 {offsets = [80, 0], sizes = [8, 8], strides = [1, 1]} : vector<96x8xf32> to vector<8x8xf32>
    %57 = vector.extract_strided_slice %45 {offsets = [88, 0], sizes = [8, 8], strides = [1, 1]} : vector<96x8xf32> to vector<8x8xf32>
    %58 = arith.mulf %21, %15 : vector<8x8xf32>
    %59 = arith.mulf %23, %15 : vector<8x8xf32>
    %60 = arith.mulf %25, %15 : vector<8x8xf32>
    %61 = arith.mulf %27, %15 : vector<8x8xf32>
    %62 = vector.broadcast %17 : vector<8x1xf32> to vector<8x8xf32>
    %63 = arith.mulf %21, %62 : vector<8x8xf32>
    %64 = vector.broadcast %17 : vector<8x1xf32> to vector<8x8xf32>
    %65 = arith.mulf %23, %64 : vector<8x8xf32>
    %66 = vector.broadcast %17 : vector<8x1xf32> to vector<8x8xf32>
    %67 = arith.mulf %25, %66 : vector<8x8xf32>
    %68 = vector.broadcast %17 : vector<8x1xf32> to vector<8x8xf32>
    %69 = arith.mulf %27, %68 : vector<8x8xf32>
    %70 = vector.broadcast %19 : vector<1x8xf32> to vector<8x8xf32>
    %71 = arith.mulf %21, %70 : vector<8x8xf32>
    %72 = vector.broadcast %19 : vector<1x8xf32> to vector<8x8xf32>
    %73 = arith.mulf %23, %72 : vector<8x8xf32>
    %74 = vector.broadcast %19 : vector<1x8xf32> to vector<8x8xf32>
    %75 = arith.mulf %25, %74 : vector<8x8xf32>
    %76 = vector.broadcast %19 : vector<1x8xf32> to vector<8x8xf32>
    %77 = arith.mulf %27, %76 : vector<8x8xf32>
    %c0_16 = arith.constant 0 : index
    %78 = memref.load %arg3[%c0_16] : memref<328xf32, #tpu.memory_space<smem>>
    %79 = vector.broadcast %78 : f32 to vector<8x8xf32>
    %80 = arith.mulf %79, %46 : vector<8x8xf32>
    %c1 = arith.constant 1 : index
    %81 = memref.load %arg3[%c1] : memref<328xf32, #tpu.memory_space<smem>>
    %82 = vector.broadcast %81 : f32 to vector<8x8xf32>
    %83 = arith.mulf %82, %47 : vector<8x8xf32>
    %84 = arith.addf %80, %83 : vector<8x8xf32>
    %c2 = arith.constant 2 : index
    %85 = memref.load %arg3[%c2] : memref<328xf32, #tpu.memory_space<smem>>
    %86 = vector.broadcast %85 : f32 to vector<8x8xf32>
    %87 = arith.mulf %86, %48 : vector<8x8xf32>
    %88 = arith.addf %84, %87 : vector<8x8xf32>
    %c3 = arith.constant 3 : index
    %89 = memref.load %arg3[%c3] : memref<328xf32, #tpu.memory_space<smem>>
    %90 = vector.broadcast %89 : f32 to vector<8x8xf32>
    %91 = arith.mulf %90, %49 : vector<8x8xf32>
    %92 = arith.addf %88, %91 : vector<8x8xf32>
    %c4 = arith.constant 4 : index
    %93 = memref.load %arg3[%c4] : memref<328xf32, #tpu.memory_space<smem>>
    %94 = vector.broadcast %93 : f32 to vector<8x8xf32>
    %95 = arith.mulf %94, %50 : vector<8x8xf32>
    %96 = arith.addf %92, %95 : vector<8x8xf32>
    %c5 = arith.constant 5 : index
    %97 = memref.load %arg3[%c5] : memref<328xf32, #tpu.memory_space<smem>>
    %98 = vector.broadcast %97 : f32 to vector<8x8xf32>
    %99 = arith.mulf %98, %51 : vector<8x8xf32>
    %100 = arith.addf %96, %99 : vector<8x8xf32>
    %c6 = arith.constant 6 : index
    %101 = memref.load %arg3[%c6] : memref<328xf32, #tpu.memory_space<smem>>
    %102 = vector.broadcast %101 : f32 to vector<8x8xf32>
    %103 = arith.mulf %102, %52 : vector<8x8xf32>
    %104 = arith.addf %100, %103 : vector<8x8xf32>
    %c7 = arith.constant 7 : index
    %105 = memref.load %arg3[%c7] : memref<328xf32, #tpu.memory_space<smem>>
    %106 = vector.broadcast %105 : f32 to vector<8x8xf32>
    %107 = arith.mulf %106, %53 : vector<8x8xf32>
    %108 = arith.addf %104, %107 : vector<8x8xf32>
    %c8 = arith.constant 8 : index
    %109 = memref.load %arg3[%c8] : memref<328xf32, #tpu.memory_space<smem>>
    %110 = vector.broadcast %109 : f32 to vector<8x8xf32>
    %111 = arith.mulf %110, %54 : vector<8x8xf32>
    %112 = arith.addf %108, %111 : vector<8x8xf32>
    %c9 = arith.constant 9 : index
    %113 = memref.load %arg3[%c9] : memref<328xf32, #tpu.memory_space<smem>>
    %114 = vector.broadcast %113 : f32 to vector<8x8xf32>
    %115 = arith.mulf %114, %55 : vector<8x8xf32>
    %116 = arith.addf %112, %115 : vector<8x8xf32>
    %c10 = arith.constant 10 : index
    %117 = memref.load %arg3[%c10] : memref<328xf32, #tpu.memory_space<smem>>
    %118 = vector.broadcast %117 : f32 to vector<8x8xf32>
    %119 = arith.mulf %118, %56 : vector<8x8xf32>
    %120 = arith.addf %116, %119 : vector<8x8xf32>
    %c11 = arith.constant 11 : index
    %121 = memref.load %arg3[%c11] : memref<328xf32, #tpu.memory_space<smem>>
    %122 = vector.broadcast %121 : f32 to vector<8x8xf32>
    %123 = arith.mulf %122, %57 : vector<8x8xf32>
    %124 = arith.addf %120, %123 : vector<8x8xf32>
    %c12 = arith.constant 12 : index
    %125 = memref.load %arg3[%c12] : memref<328xf32, #tpu.memory_space<smem>>
    %126 = vector.broadcast %125 : f32 to vector<8x8xf32>
    %127 = arith.mulf %126, %58 : vector<8x8xf32>
    %128 = arith.addf %124, %127 : vector<8x8xf32>
    %c13 = arith.constant 13 : index
    %129 = memref.load %arg3[%c13] : memref<328xf32, #tpu.memory_space<smem>>
    %130 = vector.broadcast %129 : f32 to vector<8x8xf32>
    %131 = arith.mulf %130, %59 : vector<8x8xf32>
    %132 = arith.addf %128, %131 : vector<8x8xf32>
    %c14 = arith.constant 14 : index
    %133 = memref.load %arg3[%c14] : memref<328xf32, #tpu.memory_space<smem>>
    %134 = vector.broadcast %133 : f32 to vector<8x8xf32>
    %135 = arith.mulf %134, %60 : vector<8x8xf32>
    %136 = arith.addf %132, %135 : vector<8x8xf32>
    %c15 = arith.constant 15 : index
    %137 = memref.load %arg3[%c15] : memref<328xf32, #tpu.memory_space<smem>>
    %138 = vector.broadcast %137 : f32 to vector<8x8xf32>
    %139 = arith.mulf %138, %61 : vector<8x8xf32>
    %140 = arith.addf %136, %139 : vector<8x8xf32>
    %c16 = arith.constant 16 : index
    %141 = memref.load %arg3[%c16] : memref<328xf32, #tpu.memory_space<smem>>
    %142 = vector.broadcast %141 : f32 to vector<8x8xf32>
    %143 = arith.mulf %142, %63 : vector<8x8xf32>
    %144 = arith.addf %140, %143 : vector<8x8xf32>
    %c17 = arith.constant 17 : index
    %145 = memref.load %arg3[%c17] : memref<328xf32, #tpu.memory_space<smem>>
    %146 = vector.broadcast %145 : f32 to vector<8x8xf32>
    %147 = arith.mulf %146, %65 : vector<8x8xf32>
    %148 = arith.addf %144, %147 : vector<8x8xf32>
    %c18 = arith.constant 18 : index
    %149 = memref.load %arg3[%c18] : memref<328xf32, #tpu.memory_space<smem>>
    %150 = vector.broadcast %149 : f32 to vector<8x8xf32>
    %151 = arith.mulf %150, %67 : vector<8x8xf32>
    %152 = arith.addf %148, %151 : vector<8x8xf32>
    %c19 = arith.constant 19 : index
    %153 = memref.load %arg3[%c19] : memref<328xf32, #tpu.memory_space<smem>>
    %154 = vector.broadcast %153 : f32 to vector<8x8xf32>
    %155 = arith.mulf %154, %69 : vector<8x8xf32>
    %156 = arith.addf %152, %155 : vector<8x8xf32>
    %c20 = arith.constant 20 : index
    %157 = memref.load %arg3[%c20] : memref<328xf32, #tpu.memory_space<smem>>
    %158 = vector.broadcast %157 : f32 to vector<8x8xf32>
    %159 = arith.mulf %158, %71 : vector<8x8xf32>
    %160 = arith.addf %156, %159 : vector<8x8xf32>
    %c21 = arith.constant 21 : index
    %161 = memref.load %arg3[%c21] : memref<328xf32, #tpu.memory_space<smem>>
    %162 = vector.broadcast %161 : f32 to vector<8x8xf32>
    %163 = arith.mulf %162, %73 : vector<8x8xf32>
    %164 = arith.addf %160, %163 : vector<8x8xf32>
    %c22 = arith.constant 22 : index
    %165 = memref.load %arg3[%c22] : memref<328xf32, #tpu.memory_space<smem>>
    %166 = vector.broadcast %165 : f32 to vector<8x8xf32>
    %167 = arith.mulf %166, %75 : vector<8x8xf32>
    %168 = arith.addf %164, %167 : vector<8x8xf32>
    %c23 = arith.constant 23 : index
    %169 = memref.load %arg3[%c23] : memref<328xf32, #tpu.memory_space<smem>>
    %170 = vector.broadcast %169 : f32 to vector<8x8xf32>
    %171 = arith.mulf %170, %77 : vector<8x8xf32>
    %172 = arith.addf %168, %171 : vector<8x8xf32>
    %c24 = arith.constant 24 : index
    %173 = memref.load %arg3[%c24] : memref<328xf32, #tpu.memory_space<smem>>
    %174 = vector.broadcast %173 : f32 to vector<8x8xf32>
    %175 = arith.mulf %174, %21 : vector<8x8xf32>
    %176 = arith.addf %172, %175 : vector<8x8xf32>
    %c25 = arith.constant 25 : index
    %177 = memref.load %arg3[%c25] : memref<328xf32, #tpu.memory_space<smem>>
    %178 = vector.broadcast %177 : f32 to vector<8x8xf32>
    %179 = arith.mulf %178, %23 : vector<8x8xf32>
    %180 = arith.addf %176, %179 : vector<8x8xf32>
    %c26 = arith.constant 26 : index
    %181 = memref.load %arg3[%c26] : memref<328xf32, #tpu.memory_space<smem>>
    %182 = vector.broadcast %181 : f32 to vector<8x8xf32>
    %183 = arith.mulf %182, %25 : vector<8x8xf32>
    %184 = arith.addf %180, %183 : vector<8x8xf32>
    %c27 = arith.constant 27 : index
    %185 = memref.load %arg3[%c27] : memref<328xf32, #tpu.memory_space<smem>>
    %186 = vector.broadcast %185 : f32 to vector<8x8xf32>
    %187 = arith.mulf %186, %27 : vector<8x8xf32>
    %188 = arith.addf %184, %187 : vector<8x8xf32>
    %c28 = arith.constant 28 : index
    %189 = memref.load %arg3[%c28] : memref<328xf32, #tpu.memory_space<smem>>
    %190 = vector.broadcast %189 : f32 to vector<8x8xf32>
    %191 = arith.mulf %190, %46 : vector<8x8xf32>
    %c29 = arith.constant 29 : index
    %192 = memref.load %arg3[%c29] : memref<328xf32, #tpu.memory_space<smem>>
    %193 = vector.broadcast %192 : f32 to vector<8x8xf32>
    %194 = arith.mulf %193, %47 : vector<8x8xf32>
    %195 = arith.addf %191, %194 : vector<8x8xf32>
    %c30 = arith.constant 30 : index
    %196 = memref.load %arg3[%c30] : memref<328xf32, #tpu.memory_space<smem>>
    %197 = vector.broadcast %196 : f32 to vector<8x8xf32>
    %198 = arith.mulf %197, %48 : vector<8x8xf32>
    %199 = arith.addf %195, %198 : vector<8x8xf32>
    %c31 = arith.constant 31 : index
    %200 = memref.load %arg3[%c31] : memref<328xf32, #tpu.memory_space<smem>>
    %201 = vector.broadcast %200 : f32 to vector<8x8xf32>
    %202 = arith.mulf %201, %49 : vector<8x8xf32>
    %203 = arith.addf %199, %202 : vector<8x8xf32>
    %c32 = arith.constant 32 : index
    %204 = memref.load %arg3[%c32] : memref<328xf32, #tpu.memory_space<smem>>
    %205 = vector.broadcast %204 : f32 to vector<8x8xf32>
    %206 = arith.mulf %205, %50 : vector<8x8xf32>
    %207 = arith.addf %203, %206 : vector<8x8xf32>
    %c33 = arith.constant 33 : index
    %208 = memref.load %arg3[%c33] : memref<328xf32, #tpu.memory_space<smem>>
    %209 = vector.broadcast %208 : f32 to vector<8x8xf32>
    %210 = arith.mulf %209, %51 : vector<8x8xf32>
    %211 = arith.addf %207, %210 : vector<8x8xf32>
    %c34 = arith.constant 34 : index
    %212 = memref.load %arg3[%c34] : memref<328xf32, #tpu.memory_space<smem>>
    %213 = vector.broadcast %212 : f32 to vector<8x8xf32>
    %214 = arith.mulf %213, %52 : vector<8x8xf32>
    %215 = arith.addf %211, %214 : vector<8x8xf32>
    %c35 = arith.constant 35 : index
    %216 = memref.load %arg3[%c35] : memref<328xf32, #tpu.memory_space<smem>>
    %217 = vector.broadcast %216 : f32 to vector<8x8xf32>
    %218 = arith.mulf %217, %53 : vector<8x8xf32>
    %219 = arith.addf %215, %218 : vector<8x8xf32>
    %c36 = arith.constant 36 : index
    %220 = memref.load %arg3[%c36] : memref<328xf32, #tpu.memory_space<smem>>
    %221 = vector.broadcast %220 : f32 to vector<8x8xf32>
    %222 = arith.mulf %221, %54 : vector<8x8xf32>
    %223 = arith.addf %219, %222 : vector<8x8xf32>
    %c37 = arith.constant 37 : index
    %224 = memref.load %arg3[%c37] : memref<328xf32, #tpu.memory_space<smem>>
    %225 = vector.broadcast %224 : f32 to vector<8x8xf32>
    %226 = arith.mulf %225, %55 : vector<8x8xf32>
    %227 = arith.addf %223, %226 : vector<8x8xf32>
    %c38 = arith.constant 38 : index
    %228 = memref.load %arg3[%c38] : memref<328xf32, #tpu.memory_space<smem>>
    %229 = vector.broadcast %228 : f32 to vector<8x8xf32>
    %230 = arith.mulf %229, %56 : vector<8x8xf32>
    %231 = arith.addf %227, %230 : vector<8x8xf32>
    %c39 = arith.constant 39 : index
    %232 = memref.load %arg3[%c39] : memref<328xf32, #tpu.memory_space<smem>>
    %233 = vector.broadcast %232 : f32 to vector<8x8xf32>
    %234 = arith.mulf %233, %57 : vector<8x8xf32>
    %235 = arith.addf %231, %234 : vector<8x8xf32>
    %236 = vector.extract_strided_slice %14 {offsets = [8, 0], sizes = [1, 8], strides = [1, 1]} : vector<16x8xf32> to vector<1x8xf32>
    %237 = vector.broadcast %236 : vector<1x8xf32> to vector<8x8xf32>
    %238 = arith.addf %188, %237 : vector<8x8xf32>
    %239 = vector.extract_strided_slice %14 {offsets = [0, 0], sizes = [1, 8], strides = [1, 1]} : vector<16x8xf32> to vector<1x8xf32>
    %240 = vector.broadcast %239 : vector<1x8xf32> to vector<8x8xf32>
    %241 = arith.addf %235, %240 : vector<8x8xf32>
    %242 = tpu.transpose %241, [1, 0] : vector<8x8xf32> -> vector<8x8xf32>
    %243 = arith.addf %238, %242 : vector<8x8xf32>
    %c40 = arith.constant 40 : index
    %244 = memref.load %arg3[%c40] : memref<328xf32, #tpu.memory_space<smem>>
    %245 = vector.broadcast %244 : f32 to vector<8x8xf32>
    %246 = arith.addf %243, %245 : vector<8x8xf32>
    %247 = arith.negf %246 : vector<8x8xf32>
    %248 = math.exp %247 : vector<8x8xf32>
    %cst_17 = arith.constant 1.000000e+00 : f32
    %249 = vector.broadcast %cst_17 : f32 to vector<8x8xf32>
    %250 = arith.addf %249, %248 : vector<8x8xf32>
    %251 = arith.divf %249, %250 : vector<8x8xf32>
    %c0_18 = arith.constant 0 : index
    %c0_19 = arith.constant 0 : index
    %c0_20 = arith.constant 0 : index
    %c0_21 = arith.constant 0 : index
    %252 = vector.load %arg5[%c0_18, %c0_19, %c0_20, %c0_21] : memref<1x8x8x8xf32, #tpu.memory_space<vmem>>, vector<1x1x8x8xf32>
    %253 = vector.shape_cast %252 : vector<1x1x8x8xf32> to vector<8x8xf32>
    %254 = vector.shape_cast %251 : vector<8x8xf32> to vector<1x1x8x8xf32>
    tpu.vector_store %arg5[%c0_18, %c0_19, %c0_20, %c0_21], %254 {strides = array<i32>} : memref<1x8x8x8xf32, #tpu.memory_space<vmem>>, vector<1x1x8x8xf32>,
    %c41 = arith.constant 41 : index
    %255 = memref.load %arg3[%c41] : memref<328xf32, #tpu.memory_space<smem>>
    %256 = vector.broadcast %255 : f32 to vector<8x8xf32>
    %257 = arith.mulf %256, %46 : vector<8x8xf32>
    %c42 = arith.constant 42 : index
    %258 = memref.load %arg3[%c42] : memref<328xf32, #tpu.memory_space<smem>>
    %259 = vector.broadcast %258 : f32 to vector<8x8xf32>
    %260 = arith.mulf %259, %47 : vector<8x8xf32>
    %261 = arith.addf %257, %260 : vector<8x8xf32>
    %c43 = arith.constant 43 : index
    %262 = memref.load %arg3[%c43] : memref<328xf32, #tpu.memory_space<smem>>
    %263 = vector.broadcast %262 : f32 to vector<8x8xf32>
    %264 = arith.mulf %263, %48 : vector<8x8xf32>
    %265 = arith.addf %261, %264 : vector<8x8xf32>
    %c44 = arith.constant 44 : index
    %266 = memref.load %arg3[%c44] : memref<328xf32, #tpu.memory_space<smem>>
    %267 = vector.broadcast %266 : f32 to vector<8x8xf32>
    %268 = arith.mulf %267, %49 : vector<8x8xf32>
    %269 = arith.addf %265, %268 : vector<8x8xf32>
    %c45 = arith.constant 45 : index
    %270 = memref.load %arg3[%c45] : memref<328xf32, #tpu.memory_space<smem>>
    %271 = vector.broadcast %270 : f32 to vector<8x8xf32>
    %272 = arith.mulf %271, %50 : vector<8x8xf32>
    %273 = arith.addf %269, %272 : vector<8x8xf32>
    %c46 = arith.constant 46 : index
    %274 = memref.load %arg3[%c46] : memref<328xf32, #tpu.memory_space<smem>>
    %275 = vector.broadcast %274 : f32 to vector<8x8xf32>
    %276 = arith.mulf %275, %51 : vector<8x8xf32>
    %277 = arith.addf %273, %276 : vector<8x8xf32>
    %c47 = arith.constant 47 : index
    %278 = memref.load %arg3[%c47] : memref<328xf32, #tpu.memory_space<smem>>
    %279 = vector.broadcast %278 : f32 to vector<8x8xf32>
    %280 = arith.mulf %279, %52 : vector<8x8xf32>
    %281 = arith.addf %277, %280 : vector<8x8xf32>
    %c48 = arith.constant 48 : index
    %282 = memref.load %arg3[%c48] : memref<328xf32, #tpu.memory_space<smem>>
    %283 = vector.broadcast %282 : f32 to vector<8x8xf32>
    %284 = arith.mulf %283, %53 : vector<8x8xf32>
    %285 = arith.addf %281, %284 : vector<8x8xf32>
    %c49 = arith.constant 49 : index
    %286 = memref.load %arg3[%c49] : memref<328xf32, #tpu.memory_space<smem>>
    %287 = vector.broadcast %286 : f32 to vector<8x8xf32>
    %288 = arith.mulf %287, %54 : vector<8x8xf32>
    %289 = arith.addf %285, %288 : vector<8x8xf32>
    %c50 = arith.constant 50 : index
    %290 = memref.load %arg3[%c50] : memref<328xf32, #tpu.memory_space<smem>>
    %291 = vector.broadcast %290 : f32 to vector<8x8xf32>
    %292 = arith.mulf %291, %55 : vector<8x8xf32>
    %293 = arith.addf %289, %292 : vector<8x8xf32>
    %c51 = arith.constant 51 : index
    %294 = memref.load %arg3[%c51] : memref<328xf32, #tpu.memory_space<smem>>
    %295 = vector.broadcast %294 : f32 to vector<8x8xf32>
    %296 = arith.mulf %295, %56 : vector<8x8xf32>
    %297 = arith.addf %293, %296 : vector<8x8xf32>
    %c52 = arith.constant 52 : index
    %298 = memref.load %arg3[%c52] : memref<328xf32, #tpu.memory_space<smem>>
    %299 = vector.broadcast %298 : f32 to vector<8x8xf32>
    %300 = arith.mulf %299, %57 : vector<8x8xf32>
    %301 = arith.addf %297, %300 : vector<8x8xf32>
    %c53 = arith.constant 53 : index
    %302 = memref.load %arg3[%c53] : memref<328xf32, #tpu.memory_space<smem>>
    %303 = vector.broadcast %302 : f32 to vector<8x8xf32>
    %304 = arith.mulf %303, %58 : vector<8x8xf32>
    %305 = arith.addf %301, %304 : vector<8x8xf32>
    %c54 = arith.constant 54 : index
    %306 = memref.load %arg3[%c54] : memref<328xf32, #tpu.memory_space<smem>>
    %307 = vector.broadcast %306 : f32 to vector<8x8xf32>
    %308 = arith.mulf %307, %59 : vector<8x8xf32>
    %309 = arith.addf %305, %308 : vector<8x8xf32>
    %c55 = arith.constant 55 : index
    %310 = memref.load %arg3[%c55] : memref<328xf32, #tpu.memory_space<smem>>
    %311 = vector.broadcast %310 : f32 to vector<8x8xf32>
    %312 = arith.mulf %311, %60 : vector<8x8xf32>
    %313 = arith.addf %309, %312 : vector<8x8xf32>
    %c56 = arith.constant 56 : index
    %314 = memref.load %arg3[%c56] : memref<328xf32, #tpu.memory_space<smem>>
    %315 = vector.broadcast %314 : f32 to vector<8x8xf32>
    %316 = arith.mulf %315, %61 : vector<8x8xf32>
    %317 = arith.addf %313, %316 : vector<8x8xf32>
    %c57 = arith.constant 57 : index
    %318 = memref.load %arg3[%c57] : memref<328xf32, #tpu.memory_space<smem>>
    %319 = vector.broadcast %318 : f32 to vector<8x8xf32>
    %320 = arith.mulf %319, %63 : vector<8x8xf32>
    %321 = arith.addf %317, %320 : vector<8x8xf32>
    %c58 = arith.constant 58 : index
    %322 = memref.load %arg3[%c58] : memref<328xf32, #tpu.memory_space<smem>>
    %323 = vector.broadcast %322 : f32 to vector<8x8xf32>
    %324 = arith.mulf %323, %65 : vector<8x8xf32>
    %325 = arith.addf %321, %324 : vector<8x8xf32>
    %c59 = arith.constant 59 : index
    %326 = memref.load %arg3[%c59] : memref<328xf32, #tpu.memory_space<smem>>
    %327 = vector.broadcast %326 : f32 to vector<8x8xf32>
    %328 = arith.mulf %327, %67 : vector<8x8xf32>
    %329 = arith.addf %325, %328 : vector<8x8xf32>
    %c60 = arith.constant 60 : index
    %330 = memref.load %arg3[%c60] : memref<328xf32, #tpu.memory_space<smem>>
    %331 = vector.broadcast %330 : f32 to vector<8x8xf32>
    %332 = arith.mulf %331, %69 : vector<8x8xf32>
    %333 = arith.addf %329, %332 : vector<8x8xf32>
    %c61 = arith.constant 61 : index
    %334 = memref.load %arg3[%c61] : memref<328xf32, #tpu.memory_space<smem>>
    %335 = vector.broadcast %334 : f32 to vector<8x8xf32>
    %336 = arith.mulf %335, %71 : vector<8x8xf32>
    %337 = arith.addf %333, %336 : vector<8x8xf32>
    %c62 = arith.constant 62 : index
    %338 = memref.load %arg3[%c62] : memref<328xf32, #tpu.memory_space<smem>>
    %339 = vector.broadcast %338 : f32 to vector<8x8xf32>
    %340 = arith.mulf %339, %73 : vector<8x8xf32>
    %341 = arith.addf %337, %340 : vector<8x8xf32>
    %c63 = arith.constant 63 : index
    %342 = memref.load %arg3[%c63] : memref<328xf32, #tpu.memory_space<smem>>
    %343 = vector.broadcast %342 : f32 to vector<8x8xf32>
    %344 = arith.mulf %343, %75 : vector<8x8xf32>
    %345 = arith.addf %341, %344 : vector<8x8xf32>
    %c64 = arith.constant 64 : index
    %346 = memref.load %arg3[%c64] : memref<328xf32, #tpu.memory_space<smem>>
    %347 = vector.broadcast %346 : f32 to vector<8x8xf32>
    %348 = arith.mulf %347, %77 : vector<8x8xf32>
    %349 = arith.addf %345, %348 : vector<8x8xf32>
    %c65 = arith.constant 65 : index
    %350 = memref.load %arg3[%c65] : memref<328xf32, #tpu.memory_space<smem>>
    %351 = vector.broadcast %350 : f32 to vector<8x8xf32>
    %352 = arith.mulf %351, %21 : vector<8x8xf32>
    %353 = arith.addf %349, %352 : vector<8x8xf32>
    %c66 = arith.constant 66 : index
    %354 = memref.load %arg3[%c66] : memref<328xf32, #tpu.memory_space<smem>>
    %355 = vector.broadcast %354 : f32 to vector<8x8xf32>
    %356 = arith.mulf %355, %23 : vector<8x8xf32>
    %357 = arith.addf %353, %356 : vector<8x8xf32>
    %c67 = arith.constant 67 : index
    %358 = memref.load %arg3[%c67] : memref<328xf32, #tpu.memory_space<smem>>
    %359 = vector.broadcast %358 : f32 to vector<8x8xf32>
    %360 = arith.mulf %359, %25 : vector<8x8xf32>
    %361 = arith.addf %357, %360 : vector<8x8xf32>
    %c68 = arith.constant 68 : index
    %362 = memref.load %arg3[%c68] : memref<328xf32, #tpu.memory_space<smem>>
    %363 = vector.broadcast %362 : f32 to vector<8x8xf32>
    %364 = arith.mulf %363, %27 : vector<8x8xf32>
    %365 = arith.addf %361, %364 : vector<8x8xf32>
    %c69 = arith.constant 69 : index
    %366 = memref.load %arg3[%c69] : memref<328xf32, #tpu.memory_space<smem>>
    %367 = vector.broadcast %366 : f32 to vector<8x8xf32>
    %368 = arith.mulf %367, %46 : vector<8x8xf32>
    %c70 = arith.constant 70 : index
    %369 = memref.load %arg3[%c70] : memref<328xf32, #tpu.memory_space<smem>>
    %370 = vector.broadcast %369 : f32 to vector<8x8xf32>
    %371 = arith.mulf %370, %47 : vector<8x8xf32>
    %372 = arith.addf %368, %371 : vector<8x8xf32>
    %c71 = arith.constant 71 : index
    %373 = memref.load %arg3[%c71] : memref<328xf32, #tpu.memory_space<smem>>
    %374 = vector.broadcast %373 : f32 to vector<8x8xf32>
    %375 = arith.mulf %374, %48 : vector<8x8xf32>
    %376 = arith.addf %372, %375 : vector<8x8xf32>
    %c72 = arith.constant 72 : index
    %377 = memref.load %arg3[%c72] : memref<328xf32, #tpu.memory_space<smem>>
    %378 = vector.broadcast %377 : f32 to vector<8x8xf32>
    %379 = arith.mulf %378, %49 : vector<8x8xf32>
    %380 = arith.addf %376, %379 : vector<8x8xf32>
    %c73 = arith.constant 73 : index
    %381 = memref.load %arg3[%c73] : memref<328xf32, #tpu.memory_space<smem>>
    %382 = vector.broadcast %381 : f32 to vector<8x8xf32>
    %383 = arith.mulf %382, %50 : vector<8x8xf32>
    %384 = arith.addf %380, %383 : vector<8x8xf32>
    %c74 = arith.constant 74 : index
    %385 = memref.load %arg3[%c74] : memref<328xf32, #tpu.memory_space<smem>>
    %386 = vector.broadcast %385 : f32 to vector<8x8xf32>
    %387 = arith.mulf %386, %51 : vector<8x8xf32>
    %388 = arith.addf %384, %387 : vector<8x8xf32>
    %c75 = arith.constant 75 : index
    %389 = memref.load %arg3[%c75] : memref<328xf32, #tpu.memory_space<smem>>
    %390 = vector.broadcast %389 : f32 to vector<8x8xf32>
    %391 = arith.mulf %390, %52 : vector<8x8xf32>
    %392 = arith.addf %388, %391 : vector<8x8xf32>
    %c76 = arith.constant 76 : index
    %393 = memref.load %arg3[%c76] : memref<328xf32, #tpu.memory_space<smem>>
    %394 = vector.broadcast %393 : f32 to vector<8x8xf32>
    %395 = arith.mulf %394, %53 : vector<8x8xf32>
    %396 = arith.addf %392, %395 : vector<8x8xf32>
    %c77 = arith.constant 77 : index
    %397 = memref.load %arg3[%c77] : memref<328xf32, #tpu.memory_space<smem>>
    %398 = vector.broadcast %397 : f32 to vector<8x8xf32>
    %399 = arith.mulf %398, %54 : vector<8x8xf32>
    %400 = arith.addf %396, %399 : vector<8x8xf32>
    %c78 = arith.constant 78 : index
    %401 = memref.load %arg3[%c78] : memref<328xf32, #tpu.memory_space<smem>>
    %402 = vector.broadcast %401 : f32 to vector<8x8xf32>
    %403 = arith.mulf %402, %55 : vector<8x8xf32>
    %404 = arith.addf %400, %403 : vector<8x8xf32>
    %c79 = arith.constant 79 : index
    %405 = memref.load %arg3[%c79] : memref<328xf32, #tpu.memory_space<smem>>
    %406 = vector.broadcast %405 : f32 to vector<8x8xf32>
    %407 = arith.mulf %406, %56 : vector<8x8xf32>
    %408 = arith.addf %404, %407 : vector<8x8xf32>
    %c80 = arith.constant 80 : index
    %409 = memref.load %arg3[%c80] : memref<328xf32, #tpu.memory_space<smem>>
    %410 = vector.broadcast %409 : f32 to vector<8x8xf32>
    %411 = arith.mulf %410, %57 : vector<8x8xf32>
    %412 = arith.addf %408, %411 : vector<8x8xf32>
    %413 = vector.extract_strided_slice %14 {offsets = [9, 0], sizes = [1, 8], strides = [1, 1]} : vector<16x8xf32> to vector<1x8xf32>
    %414 = vector.broadcast %413 : vector<1x8xf32> to vector<8x8xf32>
    %415 = arith.addf %365, %414 : vector<8x8xf32>
    %416 = vector.extract_strided_slice %14 {offsets = [1, 0], sizes = [1, 8], strides = [1, 1]} : vector<16x8xf32> to vector<1x8xf32>
    %417 = vector.broadcast %416 : vector<1x8xf32> to vector<8x8xf32>
    %418 = arith.addf %412, %417 : vector<8x8xf32>
    %419 = tpu.transpose %418, [1, 0] : vector<8x8xf32> -> vector<8x8xf32>
    %420 = arith.addf %415, %419 : vector<8x8xf32>
    %c81 = arith.constant 81 : index
    %421 = memref.load %arg3[%c81] : memref<328xf32, #tpu.memory_space<smem>>
    %422 = vector.broadcast %421 : f32 to vector<8x8xf32>
    %423 = arith.addf %420, %422 : vector<8x8xf32>
    %424 = arith.negf %423 : vector<8x8xf32>
    %425 = math.exp %424 : vector<8x8xf32>
    %cst_22 = arith.constant 1.000000e+00 : f32
    %426 = vector.broadcast %cst_22 : f32 to vector<8x8xf32>
    %427 = arith.addf %426, %425 : vector<8x8xf32>
    %428 = arith.divf %426, %427 : vector<8x8xf32>
    %c0_23 = arith.constant 0 : index
    %c1_24 = arith.constant 1 : index
    %c0_25 = arith.constant 0 : index
    %c0_26 = arith.constant 0 : index
    %429 = vector.load %arg5[%c0_23, %c1_24, %c0_25, %c0_26] : memref<1x8x8x8xf32, #tpu.memory_space<vmem>>, vector<1x1x8x8xf32>
    %430 = vector.shape_cast %429 : vector<1x1x8x8xf32> to vector<8x8xf32>
    %431 = vector.shape_cast %428 : vector<8x8xf32> to vector<1x1x8x8xf32>
    tpu.vector_store %arg5[%c0_23, %c1_24, %c0_25, %c0_26], %431 {strides = array<i32>} : memref<1x8x8x8xf32, #tpu.memory_space<vmem>>, vector<1x1x8x8xf32>,
    %c82 = arith.constant 82 : index
    %432 = memref.load %arg3[%c82] : memref<328xf32, #tpu.memory_space<smem>>
    %433 = vector.broadcast %432 : f32 to vector<8x8xf32>
    %434 = arith.mulf %433, %46 : vector<8x8xf32>
    %c83 = arith.constant 83 : index
    %435 = memref.load %arg3[%c83] : memref<328xf32, #tpu.memory_space<smem>>
    %436 = vector.broadcast %435 : f32 to vector<8x8xf32>
    %437 = arith.mulf %436, %47 : vector<8x8xf32>
    %438 = arith.addf %434, %437 : vector<8x8xf32>
    %c84 = arith.constant 84 : index
    %439 = memref.load %arg3[%c84] : memref<328xf32, #tpu.memory_space<smem>>
    %440 = vector.broadcast %439 : f32 to vector<8x8xf32>
    %441 = arith.mulf %440, %48 : vector<8x8xf32>
    %442 = arith.addf %438, %441 : vector<8x8xf32>
    %c85 = arith.constant 85 : index
    %443 = memref.load %arg3[%c85] : memref<328xf32, #tpu.memory_space<smem>>
    %444 = vector.broadcast %443 : f32 to vector<8x8xf32>
    %445 = arith.mulf %444, %49 : vector<8x8xf32>
    %446 = arith.addf %442, %445 : vector<8x8xf32>
    %c86 = arith.constant 86 : index
    %447 = memref.load %arg3[%c86] : memref<328xf32, #tpu.memory_space<smem>>
    %448 = vector.broadcast %447 : f32 to vector<8x8xf32>
    %449 = arith.mulf %448, %50 : vector<8x8xf32>
    %450 = arith.addf %446, %449 : vector<8x8xf32>
    %c87 = arith.constant 87 : index
    %451 = memref.load %arg3[%c87] : memref<328xf32, #tpu.memory_space<smem>>
    %452 = vector.broadcast %451 : f32 to vector<8x8xf32>
    %453 = arith.mulf %452, %51 : vector<8x8xf32>
    %454 = arith.addf %450, %453 : vector<8x8xf32>
    %c88 = arith.constant 88 : index
    %455 = memref.load %arg3[%c88] : memref<328xf32, #tpu.memory_space<smem>>
    %456 = vector.broadcast %455 : f32 to vector<8x8xf32>
    %457 = arith.mulf %456, %52 : vector<8x8xf32>
    %458 = arith.addf %454, %457 : vector<8x8xf32>
    %c89 = arith.constant 89 : index
    %459 = memref.load %arg3[%c89] : memref<328xf32, #tpu.memory_space<smem>>
    %460 = vector.broadcast %459 : f32 to vector<8x8xf32>
    %461 = arith.mulf %460, %53 : vector<8x8xf32>
    %462 = arith.addf %458, %461 : vector<8x8xf32>
    %c90 = arith.constant 90 : index
    %463 = memref.load %arg3[%c90] : memref<328xf32, #tpu.memory_space<smem>>
    %464 = vector.broadcast %463 : f32 to vector<8x8xf32>
    %465 = arith.mulf %464, %54 : vector<8x8xf32>
    %466 = arith.addf %462, %465 : vector<8x8xf32>
    %c91 = arith.constant 91 : index
    %467 = memref.load %arg3[%c91] : memref<328xf32, #tpu.memory_space<smem>>
    %468 = vector.broadcast %467 : f32 to vector<8x8xf32>
    %469 = arith.mulf %468, %55 : vector<8x8xf32>
    %470 = arith.addf %466, %469 : vector<8x8xf32>
    %c92 = arith.constant 92 : index
    %471 = memref.load %arg3[%c92] : memref<328xf32, #tpu.memory_space<smem>>
    %472 = vector.broadcast %471 : f32 to vector<8x8xf32>
    %473 = arith.mulf %472, %56 : vector<8x8xf32>
    %474 = arith.addf %470, %473 : vector<8x8xf32>
    %c93 = arith.constant 93 : index
    %475 = memref.load %arg3[%c93] : memref<328xf32, #tpu.memory_space<smem>>
    %476 = vector.broadcast %475 : f32 to vector<8x8xf32>
    %477 = arith.mulf %476, %57 : vector<8x8xf32>
    %478 = arith.addf %474, %477 : vector<8x8xf32>
    %c94 = arith.constant 94 : index
    %479 = memref.load %arg3[%c94] : memref<328xf32, #tpu.memory_space<smem>>
    %480 = vector.broadcast %479 : f32 to vector<8x8xf32>
    %481 = arith.mulf %480, %58 : vector<8x8xf32>
    %482 = arith.addf %478, %481 : vector<8x8xf32>
    %c95 = arith.constant 95 : index
    %483 = memref.load %arg3[%c95] : memref<328xf32, #tpu.memory_space<smem>>
    %484 = vector.broadcast %483 : f32 to vector<8x8xf32>
    %485 = arith.mulf %484, %59 : vector<8x8xf32>
    %486 = arith.addf %482, %485 : vector<8x8xf32>
    %c96 = arith.constant 96 : index
    %487 = memref.load %arg3[%c96] : memref<328xf32, #tpu.memory_space<smem>>
    %488 = vector.broadcast %487 : f32 to vector<8x8xf32>
    %489 = arith.mulf %488, %60 : vector<8x8xf32>
    %490 = arith.addf %486, %489 : vector<8x8xf32>
    %c97 = arith.constant 97 : index
    %491 = memref.load %arg3[%c97] : memref<328xf32, #tpu.memory_space<smem>>
    %492 = vector.broadcast %491 : f32 to vector<8x8xf32>
    %493 = arith.mulf %492, %61 : vector<8x8xf32>
    %494 = arith.addf %490, %493 : vector<8x8xf32>
    %c98 = arith.constant 98 : index
    %495 = memref.load %arg3[%c98] : memref<328xf32, #tpu.memory_space<smem>>
    %496 = vector.broadcast %495 : f32 to vector<8x8xf32>
    %497 = arith.mulf %496, %63 : vector<8x8xf32>
    %498 = arith.addf %494, %497 : vector<8x8xf32>
    %c99 = arith.constant 99 : index
    %499 = memref.load %arg3[%c99] : memref<328xf32, #tpu.memory_space<smem>>
    %500 = vector.broadcast %499 : f32 to vector<8x8xf32>
    %501 = arith.mulf %500, %65 : vector<8x8xf32>
    %502 = arith.addf %498, %501 : vector<8x8xf32>
    %c100 = arith.constant 100 : index
    %503 = memref.load %arg3[%c100] : memref<328xf32, #tpu.memory_space<smem>>
    %504 = vector.broadcast %503 : f32 to vector<8x8xf32>
    %505 = arith.mulf %504, %67 : vector<8x8xf32>
    %506 = arith.addf %502, %505 : vector<8x8xf32>
    %c101 = arith.constant 101 : index
    %507 = memref.load %arg3[%c101] : memref<328xf32, #tpu.memory_space<smem>>
    %508 = vector.broadcast %507 : f32 to vector<8x8xf32>
    %509 = arith.mulf %508, %69 : vector<8x8xf32>
    %510 = arith.addf %506, %509 : vector<8x8xf32>
    %c102 = arith.constant 102 : index
    %511 = memref.load %arg3[%c102] : memref<328xf32, #tpu.memory_space<smem>>
    %512 = vector.broadcast %511 : f32 to vector<8x8xf32>
    %513 = arith.mulf %512, %71 : vector<8x8xf32>
    %514 = arith.addf %510, %513 : vector<8x8xf32>
    %c103 = arith.constant 103 : index
    %515 = memref.load %arg3[%c103] : memref<328xf32, #tpu.memory_space<smem>>
    %516 = vector.broadcast %515 : f32 to vector<8x8xf32>
    %517 = arith.mulf %516, %73 : vector<8x8xf32>
    %518 = arith.addf %514, %517 : vector<8x8xf32>
    %c104 = arith.constant 104 : index
    %519 = memref.load %arg3[%c104] : memref<328xf32, #tpu.memory_space<smem>>
    %520 = vector.broadcast %519 : f32 to vector<8x8xf32>
    %521 = arith.mulf %520, %75 : vector<8x8xf32>
    %522 = arith.addf %518, %521 : vector<8x8xf32>
    %c105 = arith.constant 105 : index
    %523 = memref.load %arg3[%c105] : memref<328xf32, #tpu.memory_space<smem>>
    %524 = vector.broadcast %523 : f32 to vector<8x8xf32>
    %525 = arith.mulf %524, %77 : vector<8x8xf32>
    %526 = arith.addf %522, %525 : vector<8x8xf32>
    %c106 = arith.constant 106 : index
    %527 = memref.load %arg3[%c106] : memref<328xf32, #tpu.memory_space<smem>>
    %528 = vector.broadcast %527 : f32 to vector<8x8xf32>
    %529 = arith.mulf %528, %21 : vector<8x8xf32>
    %530 = arith.addf %526, %529 : vector<8x8xf32>
    %c107 = arith.constant 107 : index
    %531 = memref.load %arg3[%c107] : memref<328xf32, #tpu.memory_space<smem>>
    %532 = vector.broadcast %531 : f32 to vector<8x8xf32>
    %533 = arith.mulf %532, %23 : vector<8x8xf32>
    %534 = arith.addf %530, %533 : vector<8x8xf32>
    %c108 = arith.constant 108 : index
    %535 = memref.load %arg3[%c108] : memref<328xf32, #tpu.memory_space<smem>>
    %536 = vector.broadcast %535 : f32 to vector<8x8xf32>
    %537 = arith.mulf %536, %25 : vector<8x8xf32>
    %538 = arith.addf %534, %537 : vector<8x8xf32>
    %c109 = arith.constant 109 : index
    %539 = memref.load %arg3[%c109] : memref<328xf32, #tpu.memory_space<smem>>
    %540 = vector.broadcast %539 : f32 to vector<8x8xf32>
    %541 = arith.mulf %540, %27 : vector<8x8xf32>
    %542 = arith.addf %538, %541 : vector<8x8xf32>
    %c110 = arith.constant 110 : index
    %543 = memref.load %arg3[%c110] : memref<328xf32, #tpu.memory_space<smem>>
    %544 = vector.broadcast %543 : f32 to vector<8x8xf32>
    %545 = arith.mulf %544, %46 : vector<8x8xf32>
    %c111 = arith.constant 111 : index
    %546 = memref.load %arg3[%c111] : memref<328xf32, #tpu.memory_space<smem>>
    %547 = vector.broadcast %546 : f32 to vector<8x8xf32>
    %548 = arith.mulf %547, %47 : vector<8x8xf32>
    %549 = arith.addf %545, %548 : vector<8x8xf32>
    %c112 = arith.constant 112 : index
    %550 = memref.load %arg3[%c112] : memref<328xf32, #tpu.memory_space<smem>>
    %551 = vector.broadcast %550 : f32 to vector<8x8xf32>
    %552 = arith.mulf %551, %48 : vector<8x8xf32>
    %553 = arith.addf %549, %552 : vector<8x8xf32>
    %c113 = arith.constant 113 : index
    %554 = memref.load %arg3[%c113] : memref<328xf32, #tpu.memory_space<smem>>
    %555 = vector.broadcast %554 : f32 to vector<8x8xf32>
    %556 = arith.mulf %555, %49 : vector<8x8xf32>
    %557 = arith.addf %553, %556 : vector<8x8xf32>
    %c114 = arith.constant 114 : index
    %558 = memref.load %arg3[%c114] : memref<328xf32, #tpu.memory_space<smem>>
    %559 = vector.broadcast %558 : f32 to vector<8x8xf32>
    %560 = arith.mulf %559, %50 : vector<8x8xf32>
    %561 = arith.addf %557, %560 : vector<8x8xf32>
    %c115 = arith.constant 115 : index
    %562 = memref.load %arg3[%c115] : memref<328xf32, #tpu.memory_space<smem>>
    %563 = vector.broadcast %562 : f32 to vector<8x8xf32>
    %564 = arith.mulf %563, %51 : vector<8x8xf32>
    %565 = arith.addf %561, %564 : vector<8x8xf32>
    %c116 = arith.constant 116 : index
    %566 = memref.load %arg3[%c116] : memref<328xf32, #tpu.memory_space<smem>>
    %567 = vector.broadcast %566 : f32 to vector<8x8xf32>
    %568 = arith.mulf %567, %52 : vector<8x8xf32>
    %569 = arith.addf %565, %568 : vector<8x8xf32>
    %c117 = arith.constant 117 : index
    %570 = memref.load %arg3[%c117] : memref<328xf32, #tpu.memory_space<smem>>
    %571 = vector.broadcast %570 : f32 to vector<8x8xf32>
    %572 = arith.mulf %571, %53 : vector<8x8xf32>
    %573 = arith.addf %569, %572 : vector<8x8xf32>
    %c118 = arith.constant 118 : index
    %574 = memref.load %arg3[%c118] : memref<328xf32, #tpu.memory_space<smem>>
    %575 = vector.broadcast %574 : f32 to vector<8x8xf32>
    %576 = arith.mulf %575, %54 : vector<8x8xf32>
    %577 = arith.addf %573, %576 : vector<8x8xf32>
    %c119 = arith.constant 119 : index
    %578 = memref.load %arg3[%c119] : memref<328xf32, #tpu.memory_space<smem>>
    %579 = vector.broadcast %578 : f32 to vector<8x8xf32>
    %580 = arith.mulf %579, %55 : vector<8x8xf32>
    %581 = arith.addf %577, %580 : vector<8x8xf32>
    %c120 = arith.constant 120 : index
    %582 = memref.load %arg3[%c120] : memref<328xf32, #tpu.memory_space<smem>>
    %583 = vector.broadcast %582 : f32 to vector<8x8xf32>
    %584 = arith.mulf %583, %56 : vector<8x8xf32>
    %585 = arith.addf %581, %584 : vector<8x8xf32>
    %c121 = arith.constant 121 : index
    %586 = memref.load %arg3[%c121] : memref<328xf32, #tpu.memory_space<smem>>
    %587 = vector.broadcast %586 : f32 to vector<8x8xf32>
    %588 = arith.mulf %587, %57 : vector<8x8xf32>
    %589 = arith.addf %585, %588 : vector<8x8xf32>
    %590 = vector.extract_strided_slice %14 {offsets = [10, 0], sizes = [1, 8], strides = [1, 1]} : vector<16x8xf32> to vector<1x8xf32>
    %591 = vector.broadcast %590 : vector<1x8xf32> to vector<8x8xf32>
    %592 = arith.addf %542, %591 : vector<8x8xf32>
    %593 = vector.extract_strided_slice %14 {offsets = [2, 0], sizes = [1, 8], strides = [1, 1]} : vector<16x8xf32> to vector<1x8xf32>
    %594 = vector.broadcast %593 : vector<1x8xf32> to vector<8x8xf32>
    %595 = arith.addf %589, %594 : vector<8x8xf32>
    %596 = tpu.transpose %595, [1, 0] : vector<8x8xf32> -> vector<8x8xf32>
    %597 = arith.addf %592, %596 : vector<8x8xf32>
    %c122 = arith.constant 122 : index
    %598 = memref.load %arg3[%c122] : memref<328xf32, #tpu.memory_space<smem>>
    %599 = vector.broadcast %598 : f32 to vector<8x8xf32>
    %600 = arith.addf %597, %599 : vector<8x8xf32>
    %601 = arith.negf %600 : vector<8x8xf32>
    %602 = math.exp %601 : vector<8x8xf32>
    %cst_27 = arith.constant 1.000000e+00 : f32
    %603 = vector.broadcast %cst_27 : f32 to vector<8x8xf32>
    %604 = arith.addf %603, %602 : vector<8x8xf32>
    %605 = arith.divf %603, %604 : vector<8x8xf32>
    %c0_28 = arith.constant 0 : index
    %c2_29 = arith.constant 2 : index
    %c0_30 = arith.constant 0 : index
    %c0_31 = arith.constant 0 : index
    %606 = vector.load %arg5[%c0_28, %c2_29, %c0_30, %c0_31] : memref<1x8x8x8xf32, #tpu.memory_space<vmem>>, vector<1x1x8x8xf32>
    %607 = vector.shape_cast %606 : vector<1x1x8x8xf32> to vector<8x8xf32>
    %608 = vector.shape_cast %605 : vector<8x8xf32> to vector<1x1x8x8xf32>
    tpu.vector_store %arg5[%c0_28, %c2_29, %c0_30, %c0_31], %608 {strides = array<i32>} : memref<1x8x8x8xf32, #tpu.memory_space<vmem>>, vector<1x1x8x8xf32>,
    %c123 = arith.constant 123 : index
    %609 = memref.load %arg3[%c123] : memref<328xf32, #tpu.memory_space<smem>>
    %610 = vector.broadcast %609 : f32 to vector<8x8xf32>
    %611 = arith.mulf %610, %46 : vector<8x8xf32>
    %c124 = arith.constant 124 : index
    %612 = memref.load %arg3[%c124] : memref<328xf32, #tpu.memory_space<smem>>
    %613 = vector.broadcast %612 : f32 to vector<8x8xf32>
    %614 = arith.mulf %613, %47 : vector<8x8xf32>
    %615 = arith.addf %611, %614 : vector<8x8xf32>
    %c125 = arith.constant 125 : index
    %616 = memref.load %arg3[%c125] : memref<328xf32, #tpu.memory_space<smem>>
    %617 = vector.broadcast %616 : f32 to vector<8x8xf32>
    %618 = arith.mulf %617, %48 : vector<8x8xf32>
    %619 = arith.addf %615, %618 : vector<8x8xf32>
    %c126 = arith.constant 126 : index
    %620 = memref.load %arg3[%c126] : memref<328xf32, #tpu.memory_space<smem>>
    %621 = vector.broadcast %620 : f32 to vector<8x8xf32>
    %622 = arith.mulf %621, %49 : vector<8x8xf32>
    %623 = arith.addf %619, %622 : vector<8x8xf32>
    %c127 = arith.constant 127 : index
    %624 = memref.load %arg3[%c127] : memref<328xf32, #tpu.memory_space<smem>>
    %625 = vector.broadcast %624 : f32 to vector<8x8xf32>
    %626 = arith.mulf %625, %50 : vector<8x8xf32>
    %627 = arith.addf %623, %626 : vector<8x8xf32>
    %c128 = arith.constant 128 : index
    %628 = memref.load %arg3[%c128] : memref<328xf32, #tpu.memory_space<smem>>
    %629 = vector.broadcast %628 : f32 to vector<8x8xf32>
    %630 = arith.mulf %629, %51 : vector<8x8xf32>
    %631 = arith.addf %627, %630 : vector<8x8xf32>
    %c129 = arith.constant 129 : index
    %632 = memref.load %arg3[%c129] : memref<328xf32, #tpu.memory_space<smem>>
    %633 = vector.broadcast %632 : f32 to vector<8x8xf32>
    %634 = arith.mulf %633, %52 : vector<8x8xf32>
    %635 = arith.addf %631, %634 : vector<8x8xf32>
    %c130 = arith.constant 130 : index
    %636 = memref.load %arg3[%c130] : memref<328xf32, #tpu.memory_space<smem>>
    %637 = vector.broadcast %636 : f32 to vector<8x8xf32>
    %638 = arith.mulf %637, %53 : vector<8x8xf32>
    %639 = arith.addf %635, %638 : vector<8x8xf32>
    %c131 = arith.constant 131 : index
    %640 = memref.load %arg3[%c131] : memref<328xf32, #tpu.memory_space<smem>>
    %641 = vector.broadcast %640 : f32 to vector<8x8xf32>
    %642 = arith.mulf %641, %54 : vector<8x8xf32>
    %643 = arith.addf %639, %642 : vector<8x8xf32>
    %c132 = arith.constant 132 : index
    %644 = memref.load %arg3[%c132] : memref<328xf32, #tpu.memory_space<smem>>
    %645 = vector.broadcast %644 : f32 to vector<8x8xf32>
    %646 = arith.mulf %645, %55 : vector<8x8xf32>
    %647 = arith.addf %643, %646 : vector<8x8xf32>
    %c133 = arith.constant 133 : index
    %648 = memref.load %arg3[%c133] : memref<328xf32, #tpu.memory_space<smem>>
    %649 = vector.broadcast %648 : f32 to vector<8x8xf32>
    %650 = arith.mulf %649, %56 : vector<8x8xf32>
    %651 = arith.addf %647, %650 : vector<8x8xf32>
    %c134 = arith.constant 134 : index
    %652 = memref.load %arg3[%c134] : memref<328xf32, #tpu.memory_space<smem>>
    %653 = vector.broadcast %652 : f32 to vector<8x8xf32>
    %654 = arith.mulf %653, %57 : vector<8x8xf32>
    %655 = arith.addf %651, %654 : vector<8x8xf32>
    %c135 = arith.constant 135 : index
    %656 = memref.load %arg3[%c135] : memref<328xf32, #tpu.memory_space<smem>>
    %657 = vector.broadcast %656 : f32 to vector<8x8xf32>
    %658 = arith.mulf %657, %58 : vector<8x8xf32>
    %659 = arith.addf %655, %658 : vector<8x8xf32>
    %c136 = arith.constant 136 : index
    %660 = memref.load %arg3[%c136] : memref<328xf32, #tpu.memory_space<smem>>
    %661 = vector.broadcast %660 : f32 to vector<8x8xf32>
    %662 = arith.mulf %661, %59 : vector<8x8xf32>
    %663 = arith.addf %659, %662 : vector<8x8xf32>
    %c137 = arith.constant 137 : index
    %664 = memref.load %arg3[%c137] : memref<328xf32, #tpu.memory_space<smem>>
    %665 = vector.broadcast %664 : f32 to vector<8x8xf32>
    %666 = arith.mulf %665, %60 : vector<8x8xf32>
    %667 = arith.addf %663, %666 : vector<8x8xf32>
    %c138 = arith.constant 138 : index
    %668 = memref.load %arg3[%c138] : memref<328xf32, #tpu.memory_space<smem>>
    %669 = vector.broadcast %668 : f32 to vector<8x8xf32>
    %670 = arith.mulf %669, %61 : vector<8x8xf32>
    %671 = arith.addf %667, %670 : vector<8x8xf32>
    %c139 = arith.constant 139 : index
    %672 = memref.load %arg3[%c139] : memref<328xf32, #tpu.memory_space<smem>>
    %673 = vector.broadcast %672 : f32 to vector<8x8xf32>
    %674 = arith.mulf %673, %63 : vector<8x8xf32>
    %675 = arith.addf %671, %674 : vector<8x8xf32>
    %c140 = arith.constant 140 : index
    %676 = memref.load %arg3[%c140] : memref<328xf32, #tpu.memory_space<smem>>
    %677 = vector.broadcast %676 : f32 to vector<8x8xf32>
    %678 = arith.mulf %677, %65 : vector<8x8xf32>
    %679 = arith.addf %675, %678 : vector<8x8xf32>
    %c141 = arith.constant 141 : index
    %680 = memref.load %arg3[%c141] : memref<328xf32, #tpu.memory_space<smem>>
    %681 = vector.broadcast %680 : f32 to vector<8x8xf32>
    %682 = arith.mulf %681, %67 : vector<8x8xf32>
    %683 = arith.addf %679, %682 : vector<8x8xf32>
    %c142 = arith.constant 142 : index
    %684 = memref.load %arg3[%c142] : memref<328xf32, #tpu.memory_space<smem>>
    %685 = vector.broadcast %684 : f32 to vector<8x8xf32>
    %686 = arith.mulf %685, %69 : vector<8x8xf32>
    %687 = arith.addf %683, %686 : vector<8x8xf32>
    %c143 = arith.constant 143 : index
    %688 = memref.load %arg3[%c143] : memref<328xf32, #tpu.memory_space<smem>>
    %689 = vector.broadcast %688 : f32 to vector<8x8xf32>
    %690 = arith.mulf %689, %71 : vector<8x8xf32>
    %691 = arith.addf %687, %690 : vector<8x8xf32>
    %c144 = arith.constant 144 : index
    %692 = memref.load %arg3[%c144] : memref<328xf32, #tpu.memory_space<smem>>
    %693 = vector.broadcast %692 : f32 to vector<8x8xf32>
    %694 = arith.mulf %693, %73 : vector<8x8xf32>
    %695 = arith.addf %691, %694 : vector<8x8xf32>
    %c145 = arith.constant 145 : index
    %696 = memref.load %arg3[%c145] : memref<328xf32, #tpu.memory_space<smem>>
    %697 = vector.broadcast %696 : f32 to vector<8x8xf32>
    %698 = arith.mulf %697, %75 : vector<8x8xf32>
    %699 = arith.addf %695, %698 : vector<8x8xf32>
    %c146 = arith.constant 146 : index
    %700 = memref.load %arg3[%c146] : memref<328xf32, #tpu.memory_space<smem>>
    %701 = vector.broadcast %700 : f32 to vector<8x8xf32>
    %702 = arith.mulf %701, %77 : vector<8x8xf32>
    %703 = arith.addf %699, %702 : vector<8x8xf32>
    %c147 = arith.constant 147 : index
    %704 = memref.load %arg3[%c147] : memref<328xf32, #tpu.memory_space<smem>>
    %705 = vector.broadcast %704 : f32 to vector<8x8xf32>
    %706 = arith.mulf %705, %21 : vector<8x8xf32>
    %707 = arith.addf %703, %706 : vector<8x8xf32>
    %c148 = arith.constant 148 : index
    %708 = memref.load %arg3[%c148] : memref<328xf32, #tpu.memory_space<smem>>
    %709 = vector.broadcast %708 : f32 to vector<8x8xf32>
    %710 = arith.mulf %709, %23 : vector<8x8xf32>
    %711 = arith.addf %707, %710 : vector<8x8xf32>
    %c149 = arith.constant 149 : index
    %712 = memref.load %arg3[%c149] : memref<328xf32, #tpu.memory_space<smem>>
    %713 = vector.broadcast %712 : f32 to vector<8x8xf32>
    %714 = arith.mulf %713, %25 : vector<8x8xf32>
    %715 = arith.addf %711, %714 : vector<8x8xf32>
    %c150 = arith.constant 150 : index
    %716 = memref.load %arg3[%c150] : memref<328xf32, #tpu.memory_space<smem>>
    %717 = vector.broadcast %716 : f32 to vector<8x8xf32>
    %718 = arith.mulf %717, %27 : vector<8x8xf32>
    %719 = arith.addf %715, %718 : vector<8x8xf32>
    %c151 = arith.constant 151 : index
    %720 = memref.load %arg3[%c151] : memref<328xf32, #tpu.memory_space<smem>>
    %721 = vector.broadcast %720 : f32 to vector<8x8xf32>
    %722 = arith.mulf %721, %46 : vector<8x8xf32>
    %c152 = arith.constant 152 : index
    %723 = memref.load %arg3[%c152] : memref<328xf32, #tpu.memory_space<smem>>
    %724 = vector.broadcast %723 : f32 to vector<8x8xf32>
    %725 = arith.mulf %724, %47 : vector<8x8xf32>
    %726 = arith.addf %722, %725 : vector<8x8xf32>
    %c153 = arith.constant 153 : index
    %727 = memref.load %arg3[%c153] : memref<328xf32, #tpu.memory_space<smem>>
    %728 = vector.broadcast %727 : f32 to vector<8x8xf32>
    %729 = arith.mulf %728, %48 : vector<8x8xf32>
    %730 = arith.addf %726, %729 : vector<8x8xf32>
    %c154 = arith.constant 154 : index
    %731 = memref.load %arg3[%c154] : memref<328xf32, #tpu.memory_space<smem>>
    %732 = vector.broadcast %731 : f32 to vector<8x8xf32>
    %733 = arith.mulf %732, %49 : vector<8x8xf32>
    %734 = arith.addf %730, %733 : vector<8x8xf32>
    %c155 = arith.constant 155 : index
    %735 = memref.load %arg3[%c155] : memref<328xf32, #tpu.memory_space<smem>>
    %736 = vector.broadcast %735 : f32 to vector<8x8xf32>
    %737 = arith.mulf %736, %50 : vector<8x8xf32>
    %738 = arith.addf %734, %737 : vector<8x8xf32>
    %c156 = arith.constant 156 : index
    %739 = memref.load %arg3[%c156] : memref<328xf32, #tpu.memory_space<smem>>
    %740 = vector.broadcast %739 : f32 to vector<8x8xf32>
    %741 = arith.mulf %740, %51 : vector<8x8xf32>
    %742 = arith.addf %738, %741 : vector<8x8xf32>
    %c157 = arith.constant 157 : index
    %743 = memref.load %arg3[%c157] : memref<328xf32, #tpu.memory_space<smem>>
    %744 = vector.broadcast %743 : f32 to vector<8x8xf32>
    %745 = arith.mulf %744, %52 : vector<8x8xf32>
    %746 = arith.addf %742, %745 : vector<8x8xf32>
    %c158 = arith.constant 158 : index
    %747 = memref.load %arg3[%c158] : memref<328xf32, #tpu.memory_space<smem>>
    %748 = vector.broadcast %747 : f32 to vector<8x8xf32>
    %749 = arith.mulf %748, %53 : vector<8x8xf32>
    %750 = arith.addf %746, %749 : vector<8x8xf32>
    %c159 = arith.constant 159 : index
    %751 = memref.load %arg3[%c159] : memref<328xf32, #tpu.memory_space<smem>>
    %752 = vector.broadcast %751 : f32 to vector<8x8xf32>
    %753 = arith.mulf %752, %54 : vector<8x8xf32>
    %754 = arith.addf %750, %753 : vector<8x8xf32>
    %c160 = arith.constant 160 : index
    %755 = memref.load %arg3[%c160] : memref<328xf32, #tpu.memory_space<smem>>
    %756 = vector.broadcast %755 : f32 to vector<8x8xf32>
    %757 = arith.mulf %756, %55 : vector<8x8xf32>
    %758 = arith.addf %754, %757 : vector<8x8xf32>
    %c161 = arith.constant 161 : index
    %759 = memref.load %arg3[%c161] : memref<328xf32, #tpu.memory_space<smem>>
    %760 = vector.broadcast %759 : f32 to vector<8x8xf32>
    %761 = arith.mulf %760, %56 : vector<8x8xf32>
    %762 = arith.addf %758, %761 : vector<8x8xf32>
    %c162 = arith.constant 162 : index
    %763 = memref.load %arg3[%c162] : memref<328xf32, #tpu.memory_space<smem>>
    %764 = vector.broadcast %763 : f32 to vector<8x8xf32>
    %765 = arith.mulf %764, %57 : vector<8x8xf32>
    %766 = arith.addf %762, %765 : vector<8x8xf32>
    %767 = vector.extract_strided_slice %14 {offsets = [11, 0], sizes = [1, 8], strides = [1, 1]} : vector<16x8xf32> to vector<1x8xf32>
    %768 = vector.broadcast %767 : vector<1x8xf32> to vector<8x8xf32>
    %769 = arith.addf %719, %768 : vector<8x8xf32>
    %770 = vector.extract_strided_slice %14 {offsets = [3, 0], sizes = [1, 8], strides = [1, 1]} : vector<16x8xf32> to vector<1x8xf32>
    %771 = vector.broadcast %770 : vector<1x8xf32> to vector<8x8xf32>
    %772 = arith.addf %766, %771 : vector<8x8xf32>
    %773 = tpu.transpose %772, [1, 0] : vector<8x8xf32> -> vector<8x8xf32>
    %774 = arith.addf %769, %773 : vector<8x8xf32>
    %c163 = arith.constant 163 : index
    %775 = memref.load %arg3[%c163] : memref<328xf32, #tpu.memory_space<smem>>
    %776 = vector.broadcast %775 : f32 to vector<8x8xf32>
    %777 = arith.addf %774, %776 : vector<8x8xf32>
    %778 = arith.negf %777 : vector<8x8xf32>
    %779 = math.exp %778 : vector<8x8xf32>
    %cst_32 = arith.constant 1.000000e+00 : f32
    %780 = vector.broadcast %cst_32 : f32 to vector<8x8xf32>
    %781 = arith.addf %780, %779 : vector<8x8xf32>
    %782 = arith.divf %780, %781 : vector<8x8xf32>
    %c0_33 = arith.constant 0 : index
    %c3_34 = arith.constant 3 : index
    %c0_35 = arith.constant 0 : index
    %c0_36 = arith.constant 0 : index
    %783 = vector.load %arg5[%c0_33, %c3_34, %c0_35, %c0_36] : memref<1x8x8x8xf32, #tpu.memory_space<vmem>>, vector<1x1x8x8xf32>
    %784 = vector.shape_cast %783 : vector<1x1x8x8xf32> to vector<8x8xf32>
    %785 = vector.shape_cast %782 : vector<8x8xf32> to vector<1x1x8x8xf32>
    tpu.vector_store %arg5[%c0_33, %c3_34, %c0_35, %c0_36], %785 {strides = array<i32>} : memref<1x8x8x8xf32, #tpu.memory_space<vmem>>, vector<1x1x8x8xf32>,
    %c164 = arith.constant 164 : index
    %786 = memref.load %arg3[%c164] : memref<328xf32, #tpu.memory_space<smem>>
    %787 = vector.broadcast %786 : f32 to vector<8x8xf32>
    %788 = arith.mulf %787, %46 : vector<8x8xf32>
    %c165 = arith.constant 165 : index
    %789 = memref.load %arg3[%c165] : memref<328xf32, #tpu.memory_space<smem>>
    %790 = vector.broadcast %789 : f32 to vector<8x8xf32>
    %791 = arith.mulf %790, %47 : vector<8x8xf32>
    %792 = arith.addf %788, %791 : vector<8x8xf32>
    %c166 = arith.constant 166 : index
    %793 = memref.load %arg3[%c166] : memref<328xf32, #tpu.memory_space<smem>>
    %794 = vector.broadcast %793 : f32 to vector<8x8xf32>
    %795 = arith.mulf %794, %48 : vector<8x8xf32>
    %796 = arith.addf %792, %795 : vector<8x8xf32>
    %c167 = arith.constant 167 : index
    %797 = memref.load %arg3[%c167] : memref<328xf32, #tpu.memory_space<smem>>
    %798 = vector.broadcast %797 : f32 to vector<8x8xf32>
    %799 = arith.mulf %798, %49 : vector<8x8xf32>
    %800 = arith.addf %796, %799 : vector<8x8xf32>
    %c168 = arith.constant 168 : index
    %801 = memref.load %arg3[%c168] : memref<328xf32, #tpu.memory_space<smem>>
    %802 = vector.broadcast %801 : f32 to vector<8x8xf32>
    %803 = arith.mulf %802, %50 : vector<8x8xf32>
    %804 = arith.addf %800, %803 : vector<8x8xf32>
    %c169 = arith.constant 169 : index
    %805 = memref.load %arg3[%c169] : memref<328xf32, #tpu.memory_space<smem>>
    %806 = vector.broadcast %805 : f32 to vector<8x8xf32>
    %807 = arith.mulf %806, %51 : vector<8x8xf32>
    %808 = arith.addf %804, %807 : vector<8x8xf32>
    %c170 = arith.constant 170 : index
    %809 = memref.load %arg3[%c170] : memref<328xf32, #tpu.memory_space<smem>>
    %810 = vector.broadcast %809 : f32 to vector<8x8xf32>
    %811 = arith.mulf %810, %52 : vector<8x8xf32>
    %812 = arith.addf %808, %811 : vector<8x8xf32>
    %c171 = arith.constant 171 : index
    %813 = memref.load %arg3[%c171] : memref<328xf32, #tpu.memory_space<smem>>
    %814 = vector.broadcast %813 : f32 to vector<8x8xf32>
    %815 = arith.mulf %814, %53 : vector<8x8xf32>
    %816 = arith.addf %812, %815 : vector<8x8xf32>
    %c172 = arith.constant 172 : index
    %817 = memref.load %arg3[%c172] : memref<328xf32, #tpu.memory_space<smem>>
    %818 = vector.broadcast %817 : f32 to vector<8x8xf32>
    %819 = arith.mulf %818, %54 : vector<8x8xf32>
    %820 = arith.addf %816, %819 : vector<8x8xf32>
    %c173 = arith.constant 173 : index
    %821 = memref.load %arg3[%c173] : memref<328xf32, #tpu.memory_space<smem>>
    %822 = vector.broadcast %821 : f32 to vector<8x8xf32>
    %823 = arith.mulf %822, %55 : vector<8x8xf32>
    %824 = arith.addf %820, %823 : vector<8x8xf32>
    %c174 = arith.constant 174 : index
    %825 = memref.load %arg3[%c174] : memref<328xf32, #tpu.memory_space<smem>>
    %826 = vector.broadcast %825 : f32 to vector<8x8xf32>
    %827 = arith.mulf %826, %56 : vector<8x8xf32>
    %828 = arith.addf %824, %827 : vector<8x8xf32>
    %c175 = arith.constant 175 : index
    %829 = memref.load %arg3[%c175] : memref<328xf32, #tpu.memory_space<smem>>
    %830 = vector.broadcast %829 : f32 to vector<8x8xf32>
    %831 = arith.mulf %830, %57 : vector<8x8xf32>
    %832 = arith.addf %828, %831 : vector<8x8xf32>
    %c176 = arith.constant 176 : index
    %833 = memref.load %arg3[%c176] : memref<328xf32, #tpu.memory_space<smem>>
    %834 = vector.broadcast %833 : f32 to vector<8x8xf32>
    %835 = arith.mulf %834, %58 : vector<8x8xf32>
    %836 = arith.addf %832, %835 : vector<8x8xf32>
    %c177 = arith.constant 177 : index
    %837 = memref.load %arg3[%c177] : memref<328xf32, #tpu.memory_space<smem>>
    %838 = vector.broadcast %837 : f32 to vector<8x8xf32>
    %839 = arith.mulf %838, %59 : vector<8x8xf32>
    %840 = arith.addf %836, %839 : vector<8x8xf32>
    %c178 = arith.constant 178 : index
    %841 = memref.load %arg3[%c178] : memref<328xf32, #tpu.memory_space<smem>>
    %842 = vector.broadcast %841 : f32 to vector<8x8xf32>
    %843 = arith.mulf %842, %60 : vector<8x8xf32>
    %844 = arith.addf %840, %843 : vector<8x8xf32>
    %c179 = arith.constant 179 : index
    %845 = memref.load %arg3[%c179] : memref<328xf32, #tpu.memory_space<smem>>
    %846 = vector.broadcast %845 : f32 to vector<8x8xf32>
    %847 = arith.mulf %846, %61 : vector<8x8xf32>
    %848 = arith.addf %844, %847 : vector<8x8xf32>
    %c180 = arith.constant 180 : index
    %849 = memref.load %arg3[%c180] : memref<328xf32, #tpu.memory_space<smem>>
    %850 = vector.broadcast %849 : f32 to vector<8x8xf32>
    %851 = arith.mulf %850, %63 : vector<8x8xf32>
    %852 = arith.addf %848, %851 : vector<8x8xf32>
    %c181 = arith.constant 181 : index
    %853 = memref.load %arg3[%c181] : memref<328xf32, #tpu.memory_space<smem>>
    %854 = vector.broadcast %853 : f32 to vector<8x8xf32>
    %855 = arith.mulf %854, %65 : vector<8x8xf32>
    %856 = arith.addf %852, %855 : vector<8x8xf32>
    %c182 = arith.constant 182 : index
    %857 = memref.load %arg3[%c182] : memref<328xf32, #tpu.memory_space<smem>>
    %858 = vector.broadcast %857 : f32 to vector<8x8xf32>
    %859 = arith.mulf %858, %67 : vector<8x8xf32>
    %860 = arith.addf %856, %859 : vector<8x8xf32>
    %c183 = arith.constant 183 : index
    %861 = memref.load %arg3[%c183] : memref<328xf32, #tpu.memory_space<smem>>
    %862 = vector.broadcast %861 : f32 to vector<8x8xf32>
    %863 = arith.mulf %862, %69 : vector<8x8xf32>
    %864 = arith.addf %860, %863 : vector<8x8xf32>
    %c184 = arith.constant 184 : index
    %865 = memref.load %arg3[%c184] : memref<328xf32, #tpu.memory_space<smem>>
    %866 = vector.broadcast %865 : f32 to vector<8x8xf32>
    %867 = arith.mulf %866, %71 : vector<8x8xf32>
    %868 = arith.addf %864, %867 : vector<8x8xf32>
    %c185 = arith.constant 185 : index
    %869 = memref.load %arg3[%c185] : memref<328xf32, #tpu.memory_space<smem>>
    %870 = vector.broadcast %869 : f32 to vector<8x8xf32>
    %871 = arith.mulf %870, %73 : vector<8x8xf32>
    %872 = arith.addf %868, %871 : vector<8x8xf32>
    %c186 = arith.constant 186 : index
    %873 = memref.load %arg3[%c186] : memref<328xf32, #tpu.memory_space<smem>>
    %874 = vector.broadcast %873 : f32 to vector<8x8xf32>
    %875 = arith.mulf %874, %75 : vector<8x8xf32>
    %876 = arith.addf %872, %875 : vector<8x8xf32>
    %c187 = arith.constant 187 : index
    %877 = memref.load %arg3[%c187] : memref<328xf32, #tpu.memory_space<smem>>
    %878 = vector.broadcast %877 : f32 to vector<8x8xf32>
    %879 = arith.mulf %878, %77 : vector<8x8xf32>
    %880 = arith.addf %876, %879 : vector<8x8xf32>
    %c188 = arith.constant 188 : index
    %881 = memref.load %arg3[%c188] : memref<328xf32, #tpu.memory_space<smem>>
    %882 = vector.broadcast %881 : f32 to vector<8x8xf32>
    %883 = arith.mulf %882, %21 : vector<8x8xf32>
    %884 = arith.addf %880, %883 : vector<8x8xf32>
    %c189 = arith.constant 189 : index
    %885 = memref.load %arg3[%c189] : memref<328xf32, #tpu.memory_space<smem>>
    %886 = vector.broadcast %885 : f32 to vector<8x8xf32>
    %887 = arith.mulf %886, %23 : vector<8x8xf32>
    %888 = arith.addf %884, %887 : vector<8x8xf32>
    %c190 = arith.constant 190 : index
    %889 = memref.load %arg3[%c190] : memref<328xf32, #tpu.memory_space<smem>>
    %890 = vector.broadcast %889 : f32 to vector<8x8xf32>
    %891 = arith.mulf %890, %25 : vector<8x8xf32>
    %892 = arith.addf %888, %891 : vector<8x8xf32>
    %c191 = arith.constant 191 : index
    %893 = memref.load %arg3[%c191] : memref<328xf32, #tpu.memory_space<smem>>
    %894 = vector.broadcast %893 : f32 to vector<8x8xf32>
    %895 = arith.mulf %894, %27 : vector<8x8xf32>
    %896 = arith.addf %892, %895 : vector<8x8xf32>
    %c192 = arith.constant 192 : index
    %897 = memref.load %arg3[%c192] : memref<328xf32, #tpu.memory_space<smem>>
    %898 = vector.broadcast %897 : f32 to vector<8x8xf32>
    %899 = arith.mulf %898, %46 : vector<8x8xf32>
    %c193 = arith.constant 193 : index
    %900 = memref.load %arg3[%c193] : memref<328xf32, #tpu.memory_space<smem>>
    %901 = vector.broadcast %900 : f32 to vector<8x8xf32>
    %902 = arith.mulf %901, %47 : vector<8x8xf32>
    %903 = arith.addf %899, %902 : vector<8x8xf32>
    %c194 = arith.constant 194 : index
    %904 = memref.load %arg3[%c194] : memref<328xf32, #tpu.memory_space<smem>>
    %905 = vector.broadcast %904 : f32 to vector<8x8xf32>
    %906 = arith.mulf %905, %48 : vector<8x8xf32>
    %907 = arith.addf %903, %906 : vector<8x8xf32>
    %c195 = arith.constant 195 : index
    %908 = memref.load %arg3[%c195] : memref<328xf32, #tpu.memory_space<smem>>
    %909 = vector.broadcast %908 : f32 to vector<8x8xf32>
    %910 = arith.mulf %909, %49 : vector<8x8xf32>
    %911 = arith.addf %907, %910 : vector<8x8xf32>
    %c196 = arith.constant 196 : index
    %912 = memref.load %arg3[%c196] : memref<328xf32, #tpu.memory_space<smem>>
    %913 = vector.broadcast %912 : f32 to vector<8x8xf32>
    %914 = arith.mulf %913, %50 : vector<8x8xf32>
    %915 = arith.addf %911, %914 : vector<8x8xf32>
    %c197 = arith.constant 197 : index
    %916 = memref.load %arg3[%c197] : memref<328xf32, #tpu.memory_space<smem>>
    %917 = vector.broadcast %916 : f32 to vector<8x8xf32>
    %918 = arith.mulf %917, %51 : vector<8x8xf32>
    %919 = arith.addf %915, %918 : vector<8x8xf32>
    %c198 = arith.constant 198 : index
    %920 = memref.load %arg3[%c198] : memref<328xf32, #tpu.memory_space<smem>>
    %921 = vector.broadcast %920 : f32 to vector<8x8xf32>
    %922 = arith.mulf %921, %52 : vector<8x8xf32>
    %923 = arith.addf %919, %922 : vector<8x8xf32>
    %c199 = arith.constant 199 : index
    %924 = memref.load %arg3[%c199] : memref<328xf32, #tpu.memory_space<smem>>
    %925 = vector.broadcast %924 : f32 to vector<8x8xf32>
    %926 = arith.mulf %925, %53 : vector<8x8xf32>
    %927 = arith.addf %923, %926 : vector<8x8xf32>
    %c200 = arith.constant 200 : index
    %928 = memref.load %arg3[%c200] : memref<328xf32, #tpu.memory_space<smem>>
    %929 = vector.broadcast %928 : f32 to vector<8x8xf32>
    %930 = arith.mulf %929, %54 : vector<8x8xf32>
    %931 = arith.addf %927, %930 : vector<8x8xf32>
    %c201 = arith.constant 201 : index
    %932 = memref.load %arg3[%c201] : memref<328xf32, #tpu.memory_space<smem>>
    %933 = vector.broadcast %932 : f32 to vector<8x8xf32>
    %934 = arith.mulf %933, %55 : vector<8x8xf32>
    %935 = arith.addf %931, %934 : vector<8x8xf32>
    %c202 = arith.constant 202 : index
    %936 = memref.load %arg3[%c202] : memref<328xf32, #tpu.memory_space<smem>>
    %937 = vector.broadcast %936 : f32 to vector<8x8xf32>
    %938 = arith.mulf %937, %56 : vector<8x8xf32>
    %939 = arith.addf %935, %938 : vector<8x8xf32>
    %c203 = arith.constant 203 : index
    %940 = memref.load %arg3[%c203] : memref<328xf32, #tpu.memory_space<smem>>
    %941 = vector.broadcast %940 : f32 to vector<8x8xf32>
    %942 = arith.mulf %941, %57 : vector<8x8xf32>
    %943 = arith.addf %939, %942 : vector<8x8xf32>
    %944 = vector.extract_strided_slice %14 {offsets = [12, 0], sizes = [1, 8], strides = [1, 1]} : vector<16x8xf32> to vector<1x8xf32>
    %945 = vector.broadcast %944 : vector<1x8xf32> to vector<8x8xf32>
    %946 = arith.addf %896, %945 : vector<8x8xf32>
    %947 = vector.extract_strided_slice %14 {offsets = [4, 0], sizes = [1, 8], strides = [1, 1]} : vector<16x8xf32> to vector<1x8xf32>
    %948 = vector.broadcast %947 : vector<1x8xf32> to vector<8x8xf32>
    %949 = arith.addf %943, %948 : vector<8x8xf32>
    %950 = tpu.transpose %949, [1, 0] : vector<8x8xf32> -> vector<8x8xf32>
    %951 = arith.addf %946, %950 : vector<8x8xf32>
    %c204 = arith.constant 204 : index
    %952 = memref.load %arg3[%c204] : memref<328xf32, #tpu.memory_space<smem>>
    %953 = vector.broadcast %952 : f32 to vector<8x8xf32>
    %954 = arith.addf %951, %953 : vector<8x8xf32>
    %955 = arith.negf %954 : vector<8x8xf32>
    %956 = math.exp %955 : vector<8x8xf32>
    %cst_37 = arith.constant 1.000000e+00 : f32
    %957 = vector.broadcast %cst_37 : f32 to vector<8x8xf32>
    %958 = arith.addf %957, %956 : vector<8x8xf32>
    %959 = arith.divf %957, %958 : vector<8x8xf32>
    %c0_38 = arith.constant 0 : index
    %c4_39 = arith.constant 4 : index
    %c0_40 = arith.constant 0 : index
    %c0_41 = arith.constant 0 : index
    %960 = vector.load %arg5[%c0_38, %c4_39, %c0_40, %c0_41] : memref<1x8x8x8xf32, #tpu.memory_space<vmem>>, vector<1x1x8x8xf32>
    %961 = vector.shape_cast %960 : vector<1x1x8x8xf32> to vector<8x8xf32>
    %962 = vector.shape_cast %959 : vector<8x8xf32> to vector<1x1x8x8xf32>
    tpu.vector_store %arg5[%c0_38, %c4_39, %c0_40, %c0_41], %962 {strides = array<i32>} : memref<1x8x8x8xf32, #tpu.memory_space<vmem>>, vector<1x1x8x8xf32>,
    %c205 = arith.constant 205 : index
    %963 = memref.load %arg3[%c205] : memref<328xf32, #tpu.memory_space<smem>>
    %964 = vector.broadcast %963 : f32 to vector<8x8xf32>
    %965 = arith.mulf %964, %46 : vector<8x8xf32>
    %c206 = arith.constant 206 : index
    %966 = memref.load %arg3[%c206] : memref<328xf32, #tpu.memory_space<smem>>
    %967 = vector.broadcast %966 : f32 to vector<8x8xf32>
    %968 = arith.mulf %967, %47 : vector<8x8xf32>
    %969 = arith.addf %965, %968 : vector<8x8xf32>
    %c207 = arith.constant 207 : index
    %970 = memref.load %arg3[%c207] : memref<328xf32, #tpu.memory_space<smem>>
    %971 = vector.broadcast %970 : f32 to vector<8x8xf32>
    %972 = arith.mulf %971, %48 : vector<8x8xf32>
    %973 = arith.addf %969, %972 : vector<8x8xf32>
    %c208 = arith.constant 208 : index
    %974 = memref.load %arg3[%c208] : memref<328xf32, #tpu.memory_space<smem>>
    %975 = vector.broadcast %974 : f32 to vector<8x8xf32>
    %976 = arith.mulf %975, %49 : vector<8x8xf32>
    %977 = arith.addf %973, %976 : vector<8x8xf32>
    %c209 = arith.constant 209 : index
    %978 = memref.load %arg3[%c209] : memref<328xf32, #tpu.memory_space<smem>>
    %979 = vector.broadcast %978 : f32 to vector<8x8xf32>
    %980 = arith.mulf %979, %50 : vector<8x8xf32>
    %981 = arith.addf %977, %980 : vector<8x8xf32>
    %c210 = arith.constant 210 : index
    %982 = memref.load %arg3[%c210] : memref<328xf32, #tpu.memory_space<smem>>
    %983 = vector.broadcast %982 : f32 to vector<8x8xf32>
    %984 = arith.mulf %983, %51 : vector<8x8xf32>
    %985 = arith.addf %981, %984 : vector<8x8xf32>
    %c211 = arith.constant 211 : index
    %986 = memref.load %arg3[%c211] : memref<328xf32, #tpu.memory_space<smem>>
    %987 = vector.broadcast %986 : f32 to vector<8x8xf32>
    %988 = arith.mulf %987, %52 : vector<8x8xf32>
    %989 = arith.addf %985, %988 : vector<8x8xf32>
    %c212 = arith.constant 212 : index
    %990 = memref.load %arg3[%c212] : memref<328xf32, #tpu.memory_space<smem>>
    %991 = vector.broadcast %990 : f32 to vector<8x8xf32>
    %992 = arith.mulf %991, %53 : vector<8x8xf32>
    %993 = arith.addf %989, %992 : vector<8x8xf32>
    %c213 = arith.constant 213 : index
    %994 = memref.load %arg3[%c213] : memref<328xf32, #tpu.memory_space<smem>>
    %995 = vector.broadcast %994 : f32 to vector<8x8xf32>
    %996 = arith.mulf %995, %54 : vector<8x8xf32>
    %997 = arith.addf %993, %996 : vector<8x8xf32>
    %c214 = arith.constant 214 : index
    %998 = memref.load %arg3[%c214] : memref<328xf32, #tpu.memory_space<smem>>
    %999 = vector.broadcast %998 : f32 to vector<8x8xf32>
    %1000 = arith.mulf %999, %55 : vector<8x8xf32>
    %1001 = arith.addf %997, %1000 : vector<8x8xf32>
    %c215 = arith.constant 215 : index
    %1002 = memref.load %arg3[%c215] : memref<328xf32, #tpu.memory_space<smem>>
    %1003 = vector.broadcast %1002 : f32 to vector<8x8xf32>
    %1004 = arith.mulf %1003, %56 : vector<8x8xf32>
    %1005 = arith.addf %1001, %1004 : vector<8x8xf32>
    %c216 = arith.constant 216 : index
    %1006 = memref.load %arg3[%c216] : memref<328xf32, #tpu.memory_space<smem>>
    %1007 = vector.broadcast %1006 : f32 to vector<8x8xf32>
    %1008 = arith.mulf %1007, %57 : vector<8x8xf32>
    %1009 = arith.addf %1005, %1008 : vector<8x8xf32>
    %c217 = arith.constant 217 : index
    %1010 = memref.load %arg3[%c217] : memref<328xf32, #tpu.memory_space<smem>>
    %1011 = vector.broadcast %1010 : f32 to vector<8x8xf32>
    %1012 = arith.mulf %1011, %58 : vector<8x8xf32>
    %1013 = arith.addf %1009, %1012 : vector<8x8xf32>
    %c218 = arith.constant 218 : index
    %1014 = memref.load %arg3[%c218] : memref<328xf32, #tpu.memory_space<smem>>
    %1015 = vector.broadcast %1014 : f32 to vector<8x8xf32>
    %1016 = arith.mulf %1015, %59 : vector<8x8xf32>
    %1017 = arith.addf %1013, %1016 : vector<8x8xf32>
    %c219 = arith.constant 219 : index
    %1018 = memref.load %arg3[%c219] : memref<328xf32, #tpu.memory_space<smem>>
    %1019 = vector.broadcast %1018 : f32 to vector<8x8xf32>
    %1020 = arith.mulf %1019, %60 : vector<8x8xf32>
    %1021 = arith.addf %1017, %1020 : vector<8x8xf32>
    %c220 = arith.constant 220 : index
    %1022 = memref.load %arg3[%c220] : memref<328xf32, #tpu.memory_space<smem>>
    %1023 = vector.broadcast %1022 : f32 to vector<8x8xf32>
    %1024 = arith.mulf %1023, %61 : vector<8x8xf32>
    %1025 = arith.addf %1021, %1024 : vector<8x8xf32>
    %c221 = arith.constant 221 : index
    %1026 = memref.load %arg3[%c221] : memref<328xf32, #tpu.memory_space<smem>>
    %1027 = vector.broadcast %1026 : f32 to vector<8x8xf32>
    %1028 = arith.mulf %1027, %63 : vector<8x8xf32>
    %1029 = arith.addf %1025, %1028 : vector<8x8xf32>
    %c222 = arith.constant 222 : index
    %1030 = memref.load %arg3[%c222] : memref<328xf32, #tpu.memory_space<smem>>
    %1031 = vector.broadcast %1030 : f32 to vector<8x8xf32>
    %1032 = arith.mulf %1031, %65 : vector<8x8xf32>
    %1033 = arith.addf %1029, %1032 : vector<8x8xf32>
    %c223 = arith.constant 223 : index
    %1034 = memref.load %arg3[%c223] : memref<328xf32, #tpu.memory_space<smem>>
    %1035 = vector.broadcast %1034 : f32 to vector<8x8xf32>
    %1036 = arith.mulf %1035, %67 : vector<8x8xf32>
    %1037 = arith.addf %1033, %1036 : vector<8x8xf32>
    %c224 = arith.constant 224 : index
    %1038 = memref.load %arg3[%c224] : memref<328xf32, #tpu.memory_space<smem>>
    %1039 = vector.broadcast %1038 : f32 to vector<8x8xf32>
    %1040 = arith.mulf %1039, %69 : vector<8x8xf32>
    %1041 = arith.addf %1037, %1040 : vector<8x8xf32>
    %c225 = arith.constant 225 : index
    %1042 = memref.load %arg3[%c225] : memref<328xf32, #tpu.memory_space<smem>>
    %1043 = vector.broadcast %1042 : f32 to vector<8x8xf32>
    %1044 = arith.mulf %1043, %71 : vector<8x8xf32>
    %1045 = arith.addf %1041, %1044 : vector<8x8xf32>
    %c226 = arith.constant 226 : index
    %1046 = memref.load %arg3[%c226] : memref<328xf32, #tpu.memory_space<smem>>
    %1047 = vector.broadcast %1046 : f32 to vector<8x8xf32>
    %1048 = arith.mulf %1047, %73 : vector<8x8xf32>
    %1049 = arith.addf %1045, %1048 : vector<8x8xf32>
    %c227 = arith.constant 227 : index
    %1050 = memref.load %arg3[%c227] : memref<328xf32, #tpu.memory_space<smem>>
    %1051 = vector.broadcast %1050 : f32 to vector<8x8xf32>
    %1052 = arith.mulf %1051, %75 : vector<8x8xf32>
    %1053 = arith.addf %1049, %1052 : vector<8x8xf32>
    %c228 = arith.constant 228 : index
    %1054 = memref.load %arg3[%c228] : memref<328xf32, #tpu.memory_space<smem>>
    %1055 = vector.broadcast %1054 : f32 to vector<8x8xf32>
    %1056 = arith.mulf %1055, %77 : vector<8x8xf32>
    %1057 = arith.addf %1053, %1056 : vector<8x8xf32>
    %c229 = arith.constant 229 : index
    %1058 = memref.load %arg3[%c229] : memref<328xf32, #tpu.memory_space<smem>>
    %1059 = vector.broadcast %1058 : f32 to vector<8x8xf32>
    %1060 = arith.mulf %1059, %21 : vector<8x8xf32>
    %1061 = arith.addf %1057, %1060 : vector<8x8xf32>
    %c230 = arith.constant 230 : index
    %1062 = memref.load %arg3[%c230] : memref<328xf32, #tpu.memory_space<smem>>
    %1063 = vector.broadcast %1062 : f32 to vector<8x8xf32>
    %1064 = arith.mulf %1063, %23 : vector<8x8xf32>
    %1065 = arith.addf %1061, %1064 : vector<8x8xf32>
    %c231 = arith.constant 231 : index
    %1066 = memref.load %arg3[%c231] : memref<328xf32, #tpu.memory_space<smem>>
    %1067 = vector.broadcast %1066 : f32 to vector<8x8xf32>
    %1068 = arith.mulf %1067, %25 : vector<8x8xf32>
    %1069 = arith.addf %1065, %1068 : vector<8x8xf32>
    %c232 = arith.constant 232 : index
    %1070 = memref.load %arg3[%c232] : memref<328xf32, #tpu.memory_space<smem>>
    %1071 = vector.broadcast %1070 : f32 to vector<8x8xf32>
    %1072 = arith.mulf %1071, %27 : vector<8x8xf32>
    %1073 = arith.addf %1069, %1072 : vector<8x8xf32>
    %c233 = arith.constant 233 : index
    %1074 = memref.load %arg3[%c233] : memref<328xf32, #tpu.memory_space<smem>>
    %1075 = vector.broadcast %1074 : f32 to vector<8x8xf32>
    %1076 = arith.mulf %1075, %46 : vector<8x8xf32>
    %c234 = arith.constant 234 : index
    %1077 = memref.load %arg3[%c234] : memref<328xf32, #tpu.memory_space<smem>>
    %1078 = vector.broadcast %1077 : f32 to vector<8x8xf32>
    %1079 = arith.mulf %1078, %47 : vector<8x8xf32>
    %1080 = arith.addf %1076, %1079 : vector<8x8xf32>
    %c235 = arith.constant 235 : index
    %1081 = memref.load %arg3[%c235] : memref<328xf32, #tpu.memory_space<smem>>
    %1082 = vector.broadcast %1081 : f32 to vector<8x8xf32>
    %1083 = arith.mulf %1082, %48 : vector<8x8xf32>
    %1084 = arith.addf %1080, %1083 : vector<8x8xf32>
    %c236 = arith.constant 236 : index
    %1085 = memref.load %arg3[%c236] : memref<328xf32, #tpu.memory_space<smem>>
    %1086 = vector.broadcast %1085 : f32 to vector<8x8xf32>
    %1087 = arith.mulf %1086, %49 : vector<8x8xf32>
    %1088 = arith.addf %1084, %1087 : vector<8x8xf32>
    %c237 = arith.constant 237 : index
    %1089 = memref.load %arg3[%c237] : memref<328xf32, #tpu.memory_space<smem>>
    %1090 = vector.broadcast %1089 : f32 to vector<8x8xf32>
    %1091 = arith.mulf %1090, %50 : vector<8x8xf32>
    %1092 = arith.addf %1088, %1091 : vector<8x8xf32>
    %c238 = arith.constant 238 : index
    %1093 = memref.load %arg3[%c238] : memref<328xf32, #tpu.memory_space<smem>>
    %1094 = vector.broadcast %1093 : f32 to vector<8x8xf32>
    %1095 = arith.mulf %1094, %51 : vector<8x8xf32>
    %1096 = arith.addf %1092, %1095 : vector<8x8xf32>
    %c239 = arith.constant 239 : index
    %1097 = memref.load %arg3[%c239] : memref<328xf32, #tpu.memory_space<smem>>
    %1098 = vector.broadcast %1097 : f32 to vector<8x8xf32>
    %1099 = arith.mulf %1098, %52 : vector<8x8xf32>
    %1100 = arith.addf %1096, %1099 : vector<8x8xf32>
    %c240 = arith.constant 240 : index
    %1101 = memref.load %arg3[%c240] : memref<328xf32, #tpu.memory_space<smem>>
    %1102 = vector.broadcast %1101 : f32 to vector<8x8xf32>
    %1103 = arith.mulf %1102, %53 : vector<8x8xf32>
    %1104 = arith.addf %1100, %1103 : vector<8x8xf32>
    %c241 = arith.constant 241 : index
    %1105 = memref.load %arg3[%c241] : memref<328xf32, #tpu.memory_space<smem>>
    %1106 = vector.broadcast %1105 : f32 to vector<8x8xf32>
    %1107 = arith.mulf %1106, %54 : vector<8x8xf32>
    %1108 = arith.addf %1104, %1107 : vector<8x8xf32>
    %c242 = arith.constant 242 : index
    %1109 = memref.load %arg3[%c242] : memref<328xf32, #tpu.memory_space<smem>>
    %1110 = vector.broadcast %1109 : f32 to vector<8x8xf32>
    %1111 = arith.mulf %1110, %55 : vector<8x8xf32>
    %1112 = arith.addf %1108, %1111 : vector<8x8xf32>
    %c243 = arith.constant 243 : index
    %1113 = memref.load %arg3[%c243] : memref<328xf32, #tpu.memory_space<smem>>
    %1114 = vector.broadcast %1113 : f32 to vector<8x8xf32>
    %1115 = arith.mulf %1114, %56 : vector<8x8xf32>
    %1116 = arith.addf %1112, %1115 : vector<8x8xf32>
    %c244 = arith.constant 244 : index
    %1117 = memref.load %arg3[%c244] : memref<328xf32, #tpu.memory_space<smem>>
    %1118 = vector.broadcast %1117 : f32 to vector<8x8xf32>
    %1119 = arith.mulf %1118, %57 : vector<8x8xf32>
    %1120 = arith.addf %1116, %1119 : vector<8x8xf32>
    %1121 = vector.extract_strided_slice %14 {offsets = [13, 0], sizes = [1, 8], strides = [1, 1]} : vector<16x8xf32> to vector<1x8xf32>
    %1122 = vector.broadcast %1121 : vector<1x8xf32> to vector<8x8xf32>
    %1123 = arith.addf %1073, %1122 : vector<8x8xf32>
    %1124 = vector.extract_strided_slice %14 {offsets = [5, 0], sizes = [1, 8], strides = [1, 1]} : vector<16x8xf32> to vector<1x8xf32>
    %1125 = vector.broadcast %1124 : vector<1x8xf32> to vector<8x8xf32>
    %1126 = arith.addf %1120, %1125 : vector<8x8xf32>
    %1127 = tpu.transpose %1126, [1, 0] : vector<8x8xf32> -> vector<8x8xf32>
    %1128 = arith.addf %1123, %1127 : vector<8x8xf32>
    %c245 = arith.constant 245 : index
    %1129 = memref.load %arg3[%c245] : memref<328xf32, #tpu.memory_space<smem>>
    %1130 = vector.broadcast %1129 : f32 to vector<8x8xf32>
    %1131 = arith.addf %1128, %1130 : vector<8x8xf32>
    %1132 = arith.negf %1131 : vector<8x8xf32>
    %1133 = math.exp %1132 : vector<8x8xf32>
    %cst_42 = arith.constant 1.000000e+00 : f32
    %1134 = vector.broadcast %cst_42 : f32 to vector<8x8xf32>
    %1135 = arith.addf %1134, %1133 : vector<8x8xf32>
    %1136 = arith.divf %1134, %1135 : vector<8x8xf32>
    %c0_43 = arith.constant 0 : index
    %c5_44 = arith.constant 5 : index
    %c0_45 = arith.constant 0 : index
    %c0_46 = arith.constant 0 : index
    %1137 = vector.load %arg5[%c0_43, %c5_44, %c0_45, %c0_46] : memref<1x8x8x8xf32, #tpu.memory_space<vmem>>, vector<1x1x8x8xf32>
    %1138 = vector.shape_cast %1137 : vector<1x1x8x8xf32> to vector<8x8xf32>
    %1139 = vector.shape_cast %1136 : vector<8x8xf32> to vector<1x1x8x8xf32>
    tpu.vector_store %arg5[%c0_43, %c5_44, %c0_45, %c0_46], %1139 {strides = array<i32>} : memref<1x8x8x8xf32, #tpu.memory_space<vmem>>, vector<1x1x8x8xf32>,
    %c246 = arith.constant 246 : index
    %1140 = memref.load %arg3[%c246] : memref<328xf32, #tpu.memory_space<smem>>
    %1141 = vector.broadcast %1140 : f32 to vector<8x8xf32>
    %1142 = arith.mulf %1141, %46 : vector<8x8xf32>
    %c247 = arith.constant 247 : index
    %1143 = memref.load %arg3[%c247] : memref<328xf32, #tpu.memory_space<smem>>
    %1144 = vector.broadcast %1143 : f32 to vector<8x8xf32>
    %1145 = arith.mulf %1144, %47 : vector<8x8xf32>
    %1146 = arith.addf %1142, %1145 : vector<8x8xf32>
    %c248 = arith.constant 248 : index
    %1147 = memref.load %arg3[%c248] : memref<328xf32, #tpu.memory_space<smem>>
    %1148 = vector.broadcast %1147 : f32 to vector<8x8xf32>
    %1149 = arith.mulf %1148, %48 : vector<8x8xf32>
    %1150 = arith.addf %1146, %1149 : vector<8x8xf32>
    %c249 = arith.constant 249 : index
    %1151 = memref.load %arg3[%c249] : memref<328xf32, #tpu.memory_space<smem>>
    %1152 = vector.broadcast %1151 : f32 to vector<8x8xf32>
    %1153 = arith.mulf %1152, %49 : vector<8x8xf32>
    %1154 = arith.addf %1150, %1153 : vector<8x8xf32>
    %c250 = arith.constant 250 : index
    %1155 = memref.load %arg3[%c250] : memref<328xf32, #tpu.memory_space<smem>>
    %1156 = vector.broadcast %1155 : f32 to vector<8x8xf32>
    %1157 = arith.mulf %1156, %50 : vector<8x8xf32>
    %1158 = arith.addf %1154, %1157 : vector<8x8xf32>
    %c251 = arith.constant 251 : index
    %1159 = memref.load %arg3[%c251] : memref<328xf32, #tpu.memory_space<smem>>
    %1160 = vector.broadcast %1159 : f32 to vector<8x8xf32>
    %1161 = arith.mulf %1160, %51 : vector<8x8xf32>
    %1162 = arith.addf %1158, %1161 : vector<8x8xf32>
    %c252 = arith.constant 252 : index
    %1163 = memref.load %arg3[%c252] : memref<328xf32, #tpu.memory_space<smem>>
    %1164 = vector.broadcast %1163 : f32 to vector<8x8xf32>
    %1165 = arith.mulf %1164, %52 : vector<8x8xf32>
    %1166 = arith.addf %1162, %1165 : vector<8x8xf32>
    %c253 = arith.constant 253 : index
    %1167 = memref.load %arg3[%c253] : memref<328xf32, #tpu.memory_space<smem>>
    %1168 = vector.broadcast %1167 : f32 to vector<8x8xf32>
    %1169 = arith.mulf %1168, %53 : vector<8x8xf32>
    %1170 = arith.addf %1166, %1169 : vector<8x8xf32>
    %c254 = arith.constant 254 : index
    %1171 = memref.load %arg3[%c254] : memref<328xf32, #tpu.memory_space<smem>>
    %1172 = vector.broadcast %1171 : f32 to vector<8x8xf32>
    %1173 = arith.mulf %1172, %54 : vector<8x8xf32>
    %1174 = arith.addf %1170, %1173 : vector<8x8xf32>
    %c255 = arith.constant 255 : index
    %1175 = memref.load %arg3[%c255] : memref<328xf32, #tpu.memory_space<smem>>
    %1176 = vector.broadcast %1175 : f32 to vector<8x8xf32>
    %1177 = arith.mulf %1176, %55 : vector<8x8xf32>
    %1178 = arith.addf %1174, %1177 : vector<8x8xf32>
    %c256 = arith.constant 256 : index
    %1179 = memref.load %arg3[%c256] : memref<328xf32, #tpu.memory_space<smem>>
    %1180 = vector.broadcast %1179 : f32 to vector<8x8xf32>
    %1181 = arith.mulf %1180, %56 : vector<8x8xf32>
    %1182 = arith.addf %1178, %1181 : vector<8x8xf32>
    %c257 = arith.constant 257 : index
    %1183 = memref.load %arg3[%c257] : memref<328xf32, #tpu.memory_space<smem>>
    %1184 = vector.broadcast %1183 : f32 to vector<8x8xf32>
    %1185 = arith.mulf %1184, %57 : vector<8x8xf32>
    %1186 = arith.addf %1182, %1185 : vector<8x8xf32>
    %c258 = arith.constant 258 : index
    %1187 = memref.load %arg3[%c258] : memref<328xf32, #tpu.memory_space<smem>>
    %1188 = vector.broadcast %1187 : f32 to vector<8x8xf32>
    %1189 = arith.mulf %1188, %58 : vector<8x8xf32>
    %1190 = arith.addf %1186, %1189 : vector<8x8xf32>
    %c259 = arith.constant 259 : index
    %1191 = memref.load %arg3[%c259] : memref<328xf32, #tpu.memory_space<smem>>
    %1192 = vector.broadcast %1191 : f32 to vector<8x8xf32>
    %1193 = arith.mulf %1192, %59 : vector<8x8xf32>
    %1194 = arith.addf %1190, %1193 : vector<8x8xf32>
    %c260 = arith.constant 260 : index
    %1195 = memref.load %arg3[%c260] : memref<328xf32, #tpu.memory_space<smem>>
    %1196 = vector.broadcast %1195 : f32 to vector<8x8xf32>
    %1197 = arith.mulf %1196, %60 : vector<8x8xf32>
    %1198 = arith.addf %1194, %1197 : vector<8x8xf32>
    %c261 = arith.constant 261 : index
    %1199 = memref.load %arg3[%c261] : memref<328xf32, #tpu.memory_space<smem>>
    %1200 = vector.broadcast %1199 : f32 to vector<8x8xf32>
    %1201 = arith.mulf %1200, %61 : vector<8x8xf32>
    %1202 = arith.addf %1198, %1201 : vector<8x8xf32>
    %c262 = arith.constant 262 : index
    %1203 = memref.load %arg3[%c262] : memref<328xf32, #tpu.memory_space<smem>>
    %1204 = vector.broadcast %1203 : f32 to vector<8x8xf32>
    %1205 = arith.mulf %1204, %63 : vector<8x8xf32>
    %1206 = arith.addf %1202, %1205 : vector<8x8xf32>
    %c263 = arith.constant 263 : index
    %1207 = memref.load %arg3[%c263] : memref<328xf32, #tpu.memory_space<smem>>
    %1208 = vector.broadcast %1207 : f32 to vector<8x8xf32>
    %1209 = arith.mulf %1208, %65 : vector<8x8xf32>
    %1210 = arith.addf %1206, %1209 : vector<8x8xf32>
    %c264 = arith.constant 264 : index
    %1211 = memref.load %arg3[%c264] : memref<328xf32, #tpu.memory_space<smem>>
    %1212 = vector.broadcast %1211 : f32 to vector<8x8xf32>
    %1213 = arith.mulf %1212, %67 : vector<8x8xf32>
    %1214 = arith.addf %1210, %1213 : vector<8x8xf32>
    %c265 = arith.constant 265 : index
    %1215 = memref.load %arg3[%c265] : memref<328xf32, #tpu.memory_space<smem>>
    %1216 = vector.broadcast %1215 : f32 to vector<8x8xf32>
    %1217 = arith.mulf %1216, %69 : vector<8x8xf32>
    %1218 = arith.addf %1214, %1217 : vector<8x8xf32>
    %c266 = arith.constant 266 : index
    %1219 = memref.load %arg3[%c266] : memref<328xf32, #tpu.memory_space<smem>>
    %1220 = vector.broadcast %1219 : f32 to vector<8x8xf32>
    %1221 = arith.mulf %1220, %71 : vector<8x8xf32>
    %1222 = arith.addf %1218, %1221 : vector<8x8xf32>
    %c267 = arith.constant 267 : index
    %1223 = memref.load %arg3[%c267] : memref<328xf32, #tpu.memory_space<smem>>
    %1224 = vector.broadcast %1223 : f32 to vector<8x8xf32>
    %1225 = arith.mulf %1224, %73 : vector<8x8xf32>
    %1226 = arith.addf %1222, %1225 : vector<8x8xf32>
    %c268 = arith.constant 268 : index
    %1227 = memref.load %arg3[%c268] : memref<328xf32, #tpu.memory_space<smem>>
    %1228 = vector.broadcast %1227 : f32 to vector<8x8xf32>
    %1229 = arith.mulf %1228, %75 : vector<8x8xf32>
    %1230 = arith.addf %1226, %1229 : vector<8x8xf32>
    %c269 = arith.constant 269 : index
    %1231 = memref.load %arg3[%c269] : memref<328xf32, #tpu.memory_space<smem>>
    %1232 = vector.broadcast %1231 : f32 to vector<8x8xf32>
    %1233 = arith.mulf %1232, %77 : vector<8x8xf32>
    %1234 = arith.addf %1230, %1233 : vector<8x8xf32>
    %c270 = arith.constant 270 : index
    %1235 = memref.load %arg3[%c270] : memref<328xf32, #tpu.memory_space<smem>>
    %1236 = vector.broadcast %1235 : f32 to vector<8x8xf32>
    %1237 = arith.mulf %1236, %21 : vector<8x8xf32>
    %1238 = arith.addf %1234, %1237 : vector<8x8xf32>
    %c271 = arith.constant 271 : index
    %1239 = memref.load %arg3[%c271] : memref<328xf32, #tpu.memory_space<smem>>
    %1240 = vector.broadcast %1239 : f32 to vector<8x8xf32>
    %1241 = arith.mulf %1240, %23 : vector<8x8xf32>
    %1242 = arith.addf %1238, %1241 : vector<8x8xf32>
    %c272 = arith.constant 272 : index
    %1243 = memref.load %arg3[%c272] : memref<328xf32, #tpu.memory_space<smem>>
    %1244 = vector.broadcast %1243 : f32 to vector<8x8xf32>
    %1245 = arith.mulf %1244, %25 : vector<8x8xf32>
    %1246 = arith.addf %1242, %1245 : vector<8x8xf32>
    %c273 = arith.constant 273 : index
    %1247 = memref.load %arg3[%c273] : memref<328xf32, #tpu.memory_space<smem>>
    %1248 = vector.broadcast %1247 : f32 to vector<8x8xf32>
    %1249 = arith.mulf %1248, %27 : vector<8x8xf32>
    %1250 = arith.addf %1246, %1249 : vector<8x8xf32>
    %c274 = arith.constant 274 : index
    %1251 = memref.load %arg3[%c274] : memref<328xf32, #tpu.memory_space<smem>>
    %1252 = vector.broadcast %1251 : f32 to vector<8x8xf32>
    %1253 = arith.mulf %1252, %46 : vector<8x8xf32>
    %c275 = arith.constant 275 : index
    %1254 = memref.load %arg3[%c275] : memref<328xf32, #tpu.memory_space<smem>>
    %1255 = vector.broadcast %1254 : f32 to vector<8x8xf32>
    %1256 = arith.mulf %1255, %47 : vector<8x8xf32>
    %1257 = arith.addf %1253, %1256 : vector<8x8xf32>
    %c276 = arith.constant 276 : index
    %1258 = memref.load %arg3[%c276] : memref<328xf32, #tpu.memory_space<smem>>
    %1259 = vector.broadcast %1258 : f32 to vector<8x8xf32>
    %1260 = arith.mulf %1259, %48 : vector<8x8xf32>
    %1261 = arith.addf %1257, %1260 : vector<8x8xf32>
    %c277 = arith.constant 277 : index
    %1262 = memref.load %arg3[%c277] : memref<328xf32, #tpu.memory_space<smem>>
    %1263 = vector.broadcast %1262 : f32 to vector<8x8xf32>
    %1264 = arith.mulf %1263, %49 : vector<8x8xf32>
    %1265 = arith.addf %1261, %1264 : vector<8x8xf32>
    %c278 = arith.constant 278 : index
    %1266 = memref.load %arg3[%c278] : memref<328xf32, #tpu.memory_space<smem>>
    %1267 = vector.broadcast %1266 : f32 to vector<8x8xf32>
    %1268 = arith.mulf %1267, %50 : vector<8x8xf32>
    %1269 = arith.addf %1265, %1268 : vector<8x8xf32>
    %c279 = arith.constant 279 : index
    %1270 = memref.load %arg3[%c279] : memref<328xf32, #tpu.memory_space<smem>>
    %1271 = vector.broadcast %1270 : f32 to vector<8x8xf32>
    %1272 = arith.mulf %1271, %51 : vector<8x8xf32>
    %1273 = arith.addf %1269, %1272 : vector<8x8xf32>
    %c280 = arith.constant 280 : index
    %1274 = memref.load %arg3[%c280] : memref<328xf32, #tpu.memory_space<smem>>
    %1275 = vector.broadcast %1274 : f32 to vector<8x8xf32>
    %1276 = arith.mulf %1275, %52 : vector<8x8xf32>
    %1277 = arith.addf %1273, %1276 : vector<8x8xf32>
    %c281 = arith.constant 281 : index
    %1278 = memref.load %arg3[%c281] : memref<328xf32, #tpu.memory_space<smem>>
    %1279 = vector.broadcast %1278 : f32 to vector<8x8xf32>
    %1280 = arith.mulf %1279, %53 : vector<8x8xf32>
    %1281 = arith.addf %1277, %1280 : vector<8x8xf32>
    %c282 = arith.constant 282 : index
    %1282 = memref.load %arg3[%c282] : memref<328xf32, #tpu.memory_space<smem>>
    %1283 = vector.broadcast %1282 : f32 to vector<8x8xf32>
    %1284 = arith.mulf %1283, %54 : vector<8x8xf32>
    %1285 = arith.addf %1281, %1284 : vector<8x8xf32>
    %c283 = arith.constant 283 : index
    %1286 = memref.load %arg3[%c283] : memref<328xf32, #tpu.memory_space<smem>>
    %1287 = vector.broadcast %1286 : f32 to vector<8x8xf32>
    %1288 = arith.mulf %1287, %55 : vector<8x8xf32>
    %1289 = arith.addf %1285, %1288 : vector<8x8xf32>
    %c284 = arith.constant 284 : index
    %1290 = memref.load %arg3[%c284] : memref<328xf32, #tpu.memory_space<smem>>
    %1291 = vector.broadcast %1290 : f32 to vector<8x8xf32>
    %1292 = arith.mulf %1291, %56 : vector<8x8xf32>
    %1293 = arith.addf %1289, %1292 : vector<8x8xf32>
    %c285 = arith.constant 285 : index
    %1294 = memref.load %arg3[%c285] : memref<328xf32, #tpu.memory_space<smem>>
    %1295 = vector.broadcast %1294 : f32 to vector<8x8xf32>
    %1296 = arith.mulf %1295, %57 : vector<8x8xf32>
    %1297 = arith.addf %1293, %1296 : vector<8x8xf32>
    %1298 = vector.extract_strided_slice %14 {offsets = [14, 0], sizes = [1, 8], strides = [1, 1]} : vector<16x8xf32> to vector<1x8xf32>
    %1299 = vector.broadcast %1298 : vector<1x8xf32> to vector<8x8xf32>
    %1300 = arith.addf %1250, %1299 : vector<8x8xf32>
    %1301 = vector.extract_strided_slice %14 {offsets = [6, 0], sizes = [1, 8], strides = [1, 1]} : vector<16x8xf32> to vector<1x8xf32>
    %1302 = vector.broadcast %1301 : vector<1x8xf32> to vector<8x8xf32>
    %1303 = arith.addf %1297, %1302 : vector<8x8xf32>
    %1304 = tpu.transpose %1303, [1, 0] : vector<8x8xf32> -> vector<8x8xf32>
    %1305 = arith.addf %1300, %1304 : vector<8x8xf32>
    %c286 = arith.constant 286 : index
    %1306 = memref.load %arg3[%c286] : memref<328xf32, #tpu.memory_space<smem>>
    %1307 = vector.broadcast %1306 : f32 to vector<8x8xf32>
    %1308 = arith.addf %1305, %1307 : vector<8x8xf32>
    %1309 = arith.negf %1308 : vector<8x8xf32>
    %1310 = math.exp %1309 : vector<8x8xf32>
    %cst_47 = arith.constant 1.000000e+00 : f32
    %1311 = vector.broadcast %cst_47 : f32 to vector<8x8xf32>
    %1312 = arith.addf %1311, %1310 : vector<8x8xf32>
    %1313 = arith.divf %1311, %1312 : vector<8x8xf32>
    %c0_48 = arith.constant 0 : index
    %c6_49 = arith.constant 6 : index
    %c0_50 = arith.constant 0 : index
    %c0_51 = arith.constant 0 : index
    %1314 = vector.load %arg5[%c0_48, %c6_49, %c0_50, %c0_51] : memref<1x8x8x8xf32, #tpu.memory_space<vmem>>, vector<1x1x8x8xf32>
    %1315 = vector.shape_cast %1314 : vector<1x1x8x8xf32> to vector<8x8xf32>
    %1316 = vector.shape_cast %1313 : vector<8x8xf32> to vector<1x1x8x8xf32>
    tpu.vector_store %arg5[%c0_48, %c6_49, %c0_50, %c0_51], %1316 {strides = array<i32>} : memref<1x8x8x8xf32, #tpu.memory_space<vmem>>, vector<1x1x8x8xf32>,
    %c287 = arith.constant 287 : index
    %1317 = memref.load %arg3[%c287] : memref<328xf32, #tpu.memory_space<smem>>
    %1318 = vector.broadcast %1317 : f32 to vector<8x8xf32>
    %1319 = arith.mulf %1318, %46 : vector<8x8xf32>
    %c288 = arith.constant 288 : index
    %1320 = memref.load %arg3[%c288] : memref<328xf32, #tpu.memory_space<smem>>
    %1321 = vector.broadcast %1320 : f32 to vector<8x8xf32>
    %1322 = arith.mulf %1321, %47 : vector<8x8xf32>
    %1323 = arith.addf %1319, %1322 : vector<8x8xf32>
    %c289 = arith.constant 289 : index
    %1324 = memref.load %arg3[%c289] : memref<328xf32, #tpu.memory_space<smem>>
    %1325 = vector.broadcast %1324 : f32 to vector<8x8xf32>
    %1326 = arith.mulf %1325, %48 : vector<8x8xf32>
    %1327 = arith.addf %1323, %1326 : vector<8x8xf32>
    %c290 = arith.constant 290 : index
    %1328 = memref.load %arg3[%c290] : memref<328xf32, #tpu.memory_space<smem>>
    %1329 = vector.broadcast %1328 : f32 to vector<8x8xf32>
    %1330 = arith.mulf %1329, %49 : vector<8x8xf32>
    %1331 = arith.addf %1327, %1330 : vector<8x8xf32>
    %c291 = arith.constant 291 : index
    %1332 = memref.load %arg3[%c291] : memref<328xf32, #tpu.memory_space<smem>>
    %1333 = vector.broadcast %1332 : f32 to vector<8x8xf32>
    %1334 = arith.mulf %1333, %50 : vector<8x8xf32>
    %1335 = arith.addf %1331, %1334 : vector<8x8xf32>
    %c292 = arith.constant 292 : index
    %1336 = memref.load %arg3[%c292] : memref<328xf32, #tpu.memory_space<smem>>
    %1337 = vector.broadcast %1336 : f32 to vector<8x8xf32>
    %1338 = arith.mulf %1337, %51 : vector<8x8xf32>
    %1339 = arith.addf %1335, %1338 : vector<8x8xf32>
    %c293 = arith.constant 293 : index
    %1340 = memref.load %arg3[%c293] : memref<328xf32, #tpu.memory_space<smem>>
    %1341 = vector.broadcast %1340 : f32 to vector<8x8xf32>
    %1342 = arith.mulf %1341, %52 : vector<8x8xf32>
    %1343 = arith.addf %1339, %1342 : vector<8x8xf32>
    %c294 = arith.constant 294 : index
    %1344 = memref.load %arg3[%c294] : memref<328xf32, #tpu.memory_space<smem>>
    %1345 = vector.broadcast %1344 : f32 to vector<8x8xf32>
    %1346 = arith.mulf %1345, %53 : vector<8x8xf32>
    %1347 = arith.addf %1343, %1346 : vector<8x8xf32>
    %c295 = arith.constant 295 : index
    %1348 = memref.load %arg3[%c295] : memref<328xf32, #tpu.memory_space<smem>>
    %1349 = vector.broadcast %1348 : f32 to vector<8x8xf32>
    %1350 = arith.mulf %1349, %54 : vector<8x8xf32>
    %1351 = arith.addf %1347, %1350 : vector<8x8xf32>
    %c296 = arith.constant 296 : index
    %1352 = memref.load %arg3[%c296] : memref<328xf32, #tpu.memory_space<smem>>
    %1353 = vector.broadcast %1352 : f32 to vector<8x8xf32>
    %1354 = arith.mulf %1353, %55 : vector<8x8xf32>
    %1355 = arith.addf %1351, %1354 : vector<8x8xf32>
    %c297 = arith.constant 297 : index
    %1356 = memref.load %arg3[%c297] : memref<328xf32, #tpu.memory_space<smem>>
    %1357 = vector.broadcast %1356 : f32 to vector<8x8xf32>
    %1358 = arith.mulf %1357, %56 : vector<8x8xf32>
    %1359 = arith.addf %1355, %1358 : vector<8x8xf32>
    %c298 = arith.constant 298 : index
    %1360 = memref.load %arg3[%c298] : memref<328xf32, #tpu.memory_space<smem>>
    %1361 = vector.broadcast %1360 : f32 to vector<8x8xf32>
    %1362 = arith.mulf %1361, %57 : vector<8x8xf32>
    %1363 = arith.addf %1359, %1362 : vector<8x8xf32>
    %c299 = arith.constant 299 : index
    %1364 = memref.load %arg3[%c299] : memref<328xf32, #tpu.memory_space<smem>>
    %1365 = vector.broadcast %1364 : f32 to vector<8x8xf32>
    %1366 = arith.mulf %1365, %58 : vector<8x8xf32>
    %1367 = arith.addf %1363, %1366 : vector<8x8xf32>
    %c300 = arith.constant 300 : index
    %1368 = memref.load %arg3[%c300] : memref<328xf32, #tpu.memory_space<smem>>
    %1369 = vector.broadcast %1368 : f32 to vector<8x8xf32>
    %1370 = arith.mulf %1369, %59 : vector<8x8xf32>
    %1371 = arith.addf %1367, %1370 : vector<8x8xf32>
    %c301 = arith.constant 301 : index
    %1372 = memref.load %arg3[%c301] : memref<328xf32, #tpu.memory_space<smem>>
    %1373 = vector.broadcast %1372 : f32 to vector<8x8xf32>
    %1374 = arith.mulf %1373, %60 : vector<8x8xf32>
    %1375 = arith.addf %1371, %1374 : vector<8x8xf32>
    %c302 = arith.constant 302 : index
    %1376 = memref.load %arg3[%c302] : memref<328xf32, #tpu.memory_space<smem>>
    %1377 = vector.broadcast %1376 : f32 to vector<8x8xf32>
    %1378 = arith.mulf %1377, %61 : vector<8x8xf32>
    %1379 = arith.addf %1375, %1378 : vector<8x8xf32>
    %c303 = arith.constant 303 : index
    %1380 = memref.load %arg3[%c303] : memref<328xf32, #tpu.memory_space<smem>>
    %1381 = vector.broadcast %1380 : f32 to vector<8x8xf32>
    %1382 = arith.mulf %1381, %63 : vector<8x8xf32>
    %1383 = arith.addf %1379, %1382 : vector<8x8xf32>
    %c304 = arith.constant 304 : index
    %1384 = memref.load %arg3[%c304] : memref<328xf32, #tpu.memory_space<smem>>
    %1385 = vector.broadcast %1384 : f32 to vector<8x8xf32>
    %1386 = arith.mulf %1385, %65 : vector<8x8xf32>
    %1387 = arith.addf %1383, %1386 : vector<8x8xf32>
    %c305 = arith.constant 305 : index
    %1388 = memref.load %arg3[%c305] : memref<328xf32, #tpu.memory_space<smem>>
    %1389 = vector.broadcast %1388 : f32 to vector<8x8xf32>
    %1390 = arith.mulf %1389, %67 : vector<8x8xf32>
    %1391 = arith.addf %1387, %1390 : vector<8x8xf32>
    %c306 = arith.constant 306 : index
    %1392 = memref.load %arg3[%c306] : memref<328xf32, #tpu.memory_space<smem>>
    %1393 = vector.broadcast %1392 : f32 to vector<8x8xf32>
    %1394 = arith.mulf %1393, %69 : vector<8x8xf32>
    %1395 = arith.addf %1391, %1394 : vector<8x8xf32>
    %c307 = arith.constant 307 : index
    %1396 = memref.load %arg3[%c307] : memref<328xf32, #tpu.memory_space<smem>>
    %1397 = vector.broadcast %1396 : f32 to vector<8x8xf32>
    %1398 = arith.mulf %1397, %71 : vector<8x8xf32>
    %1399 = arith.addf %1395, %1398 : vector<8x8xf32>
    %c308 = arith.constant 308 : index
    %1400 = memref.load %arg3[%c308] : memref<328xf32, #tpu.memory_space<smem>>
    %1401 = vector.broadcast %1400 : f32 to vector<8x8xf32>
    %1402 = arith.mulf %1401, %73 : vector<8x8xf32>
    %1403 = arith.addf %1399, %1402 : vector<8x8xf32>
    %c309 = arith.constant 309 : index
    %1404 = memref.load %arg3[%c309] : memref<328xf32, #tpu.memory_space<smem>>
    %1405 = vector.broadcast %1404 : f32 to vector<8x8xf32>
    %1406 = arith.mulf %1405, %75 : vector<8x8xf32>
    %1407 = arith.addf %1403, %1406 : vector<8x8xf32>
    %c310 = arith.constant 310 : index
    %1408 = memref.load %arg3[%c310] : memref<328xf32, #tpu.memory_space<smem>>
    %1409 = vector.broadcast %1408 : f32 to vector<8x8xf32>
    %1410 = arith.mulf %1409, %77 : vector<8x8xf32>
    %1411 = arith.addf %1407, %1410 : vector<8x8xf32>
    %c311 = arith.constant 311 : index
    %1412 = memref.load %arg3[%c311] : memref<328xf32, #tpu.memory_space<smem>>
    %1413 = vector.broadcast %1412 : f32 to vector<8x8xf32>
    %1414 = arith.mulf %1413, %21 : vector<8x8xf32>
    %1415 = arith.addf %1411, %1414 : vector<8x8xf32>
    %c312 = arith.constant 312 : index
    %1416 = memref.load %arg3[%c312] : memref<328xf32, #tpu.memory_space<smem>>
    %1417 = vector.broadcast %1416 : f32 to vector<8x8xf32>
    %1418 = arith.mulf %1417, %23 : vector<8x8xf32>
    %1419 = arith.addf %1415, %1418 : vector<8x8xf32>
    %c313 = arith.constant 313 : index
    %1420 = memref.load %arg3[%c313] : memref<328xf32, #tpu.memory_space<smem>>
    %1421 = vector.broadcast %1420 : f32 to vector<8x8xf32>
    %1422 = arith.mulf %1421, %25 : vector<8x8xf32>
    %1423 = arith.addf %1419, %1422 : vector<8x8xf32>
    %c314 = arith.constant 314 : index
    %1424 = memref.load %arg3[%c314] : memref<328xf32, #tpu.memory_space<smem>>
    %1425 = vector.broadcast %1424 : f32 to vector<8x8xf32>
    %1426 = arith.mulf %1425, %27 : vector<8x8xf32>
    %1427 = arith.addf %1423, %1426 : vector<8x8xf32>
    %c315 = arith.constant 315 : index
    %1428 = memref.load %arg3[%c315] : memref<328xf32, #tpu.memory_space<smem>>
    %1429 = vector.broadcast %1428 : f32 to vector<8x8xf32>
    %1430 = arith.mulf %1429, %46 : vector<8x8xf32>
    %c316 = arith.constant 316 : index
    %1431 = memref.load %arg3[%c316] : memref<328xf32, #tpu.memory_space<smem>>
    %1432 = vector.broadcast %1431 : f32 to vector<8x8xf32>
    %1433 = arith.mulf %1432, %47 : vector<8x8xf32>
    %1434 = arith.addf %1430, %1433 : vector<8x8xf32>
    %c317 = arith.constant 317 : index
    %1435 = memref.load %arg3[%c317] : memref<328xf32, #tpu.memory_space<smem>>
    %1436 = vector.broadcast %1435 : f32 to vector<8x8xf32>
    %1437 = arith.mulf %1436, %48 : vector<8x8xf32>
    %1438 = arith.addf %1434, %1437 : vector<8x8xf32>
    %c318 = arith.constant 318 : index
    %1439 = memref.load %arg3[%c318] : memref<328xf32, #tpu.memory_space<smem>>
    %1440 = vector.broadcast %1439 : f32 to vector<8x8xf32>
    %1441 = arith.mulf %1440, %49 : vector<8x8xf32>
    %1442 = arith.addf %1438, %1441 : vector<8x8xf32>
    %c319 = arith.constant 319 : index
    %1443 = memref.load %arg3[%c319] : memref<328xf32, #tpu.memory_space<smem>>
    %1444 = vector.broadcast %1443 : f32 to vector<8x8xf32>
    %1445 = arith.mulf %1444, %50 : vector<8x8xf32>
    %1446 = arith.addf %1442, %1445 : vector<8x8xf32>
    %c320 = arith.constant 320 : index
    %1447 = memref.load %arg3[%c320] : memref<328xf32, #tpu.memory_space<smem>>
    %1448 = vector.broadcast %1447 : f32 to vector<8x8xf32>
    %1449 = arith.mulf %1448, %51 : vector<8x8xf32>
    %1450 = arith.addf %1446, %1449 : vector<8x8xf32>
    %c321 = arith.constant 321 : index
    %1451 = memref.load %arg3[%c321] : memref<328xf32, #tpu.memory_space<smem>>
    %1452 = vector.broadcast %1451 : f32 to vector<8x8xf32>
    %1453 = arith.mulf %1452, %52 : vector<8x8xf32>
    %1454 = arith.addf %1450, %1453 : vector<8x8xf32>
    %c322 = arith.constant 322 : index
    %1455 = memref.load %arg3[%c322] : memref<328xf32, #tpu.memory_space<smem>>
    %1456 = vector.broadcast %1455 : f32 to vector<8x8xf32>
    %1457 = arith.mulf %1456, %53 : vector<8x8xf32>
    %1458 = arith.addf %1454, %1457 : vector<8x8xf32>
    %c323 = arith.constant 323 : index
    %1459 = memref.load %arg3[%c323] : memref<328xf32, #tpu.memory_space<smem>>
    %1460 = vector.broadcast %1459 : f32 to vector<8x8xf32>
    %1461 = arith.mulf %1460, %54 : vector<8x8xf32>
    %1462 = arith.addf %1458, %1461 : vector<8x8xf32>
    %c324 = arith.constant 324 : index
    %1463 = memref.load %arg3[%c324] : memref<328xf32, #tpu.memory_space<smem>>
    %1464 = vector.broadcast %1463 : f32 to vector<8x8xf32>
    %1465 = arith.mulf %1464, %55 : vector<8x8xf32>
    %1466 = arith.addf %1462, %1465 : vector<8x8xf32>
    %c325 = arith.constant 325 : index
    %1467 = memref.load %arg3[%c325] : memref<328xf32, #tpu.memory_space<smem>>
    %1468 = vector.broadcast %1467 : f32 to vector<8x8xf32>
    %1469 = arith.mulf %1468, %56 : vector<8x8xf32>
    %1470 = arith.addf %1466, %1469 : vector<8x8xf32>
    %c326 = arith.constant 326 : index
    %1471 = memref.load %arg3[%c326] : memref<328xf32, #tpu.memory_space<smem>>
    %1472 = vector.broadcast %1471 : f32 to vector<8x8xf32>
    %1473 = arith.mulf %1472, %57 : vector<8x8xf32>
    %1474 = arith.addf %1470, %1473 : vector<8x8xf32>
    %1475 = vector.extract_strided_slice %14 {offsets = [15, 0], sizes = [1, 8], strides = [1, 1]} : vector<16x8xf32> to vector<1x8xf32>
    %1476 = vector.broadcast %1475 : vector<1x8xf32> to vector<8x8xf32>
    %1477 = arith.addf %1427, %1476 : vector<8x8xf32>
    %1478 = vector.extract_strided_slice %14 {offsets = [7, 0], sizes = [1, 8], strides = [1, 1]} : vector<16x8xf32> to vector<1x8xf32>
    %1479 = vector.broadcast %1478 : vector<1x8xf32> to vector<8x8xf32>
    %1480 = arith.addf %1474, %1479 : vector<8x8xf32>
    %1481 = tpu.transpose %1480, [1, 0] : vector<8x8xf32> -> vector<8x8xf32>
    %1482 = arith.addf %1477, %1481 : vector<8x8xf32>
    %c327 = arith.constant 327 : index
    %1483 = memref.load %arg3[%c327] : memref<328xf32, #tpu.memory_space<smem>>
    %1484 = vector.broadcast %1483 : f32 to vector<8x8xf32>
    %1485 = arith.addf %1482, %1484 : vector<8x8xf32>
    %1486 = arith.negf %1485 : vector<8x8xf32>
    %1487 = math.exp %1486 : vector<8x8xf32>
    %cst_52 = arith.constant 1.000000e+00 : f32
    %1488 = vector.broadcast %cst_52 : f32 to vector<8x8xf32>
    %1489 = arith.addf %1488, %1487 : vector<8x8xf32>
    %1490 = arith.divf %1488, %1489 : vector<8x8xf32>
    %c0_53 = arith.constant 0 : index
    %c7_54 = arith.constant 7 : index
    %c0_55 = arith.constant 0 : index
    %c0_56 = arith.constant 0 : index
    %1491 = vector.load %arg5[%c0_53, %c7_54, %c0_55, %c0_56] : memref<1x8x8x8xf32, #tpu.memory_space<vmem>>, vector<1x1x8x8xf32>
    %1492 = vector.shape_cast %1491 : vector<1x1x8x8xf32> to vector<8x8xf32>
    %1493 = vector.shape_cast %1490 : vector<8x8xf32> to vector<1x1x8x8xf32>
    tpu.vector_store %arg5[%c0_53, %c7_54, %c0_55, %c0_56], %1493 {strides = array<i32>} : memref<1x8x8x8xf32, #tpu.memory_space<vmem>>, vector<1x1x8x8xf32>,
    return
  }
  func.func @transform_0(%arg0: i32) -> (i32, i32, i32, i32) {
    %c0_i32 = arith.constant 0 : i32
    %c0_i32_0 = arith.constant 0 : i32
    %c0_i32_1 = arith.constant 0 : i32
    %c0_i32_2 = arith.constant 0 : i32
    return %arg0, %c0_i32, %c0_i32_0, %c0_i32_1 : i32, i32, i32, i32
  }
  func.func @transform_1(%arg0: i32) -> (i32, i32, i32) {
    %c0_i32 = arith.constant 0 : i32
    %c0_i32_0 = arith.constant 0 : i32
    %c0_i32_1 = arith.constant 0 : i32
    return %arg0, %c0_i32, %c0_i32_0 : i32, i32, i32
  }
  func.func @transform_2(%arg0: i32) -> i32 {
    %c0_i32 = arith.constant 0 : i32
    %c0_i32_0 = arith.constant 0 : i32
    return %c0_i32 : i32
  }
  func.func @transform_3(%arg0: i32) -> (i32, i32) {
    %c0_i32 = arith.constant 0 : i32
    %c0_i32_0 = arith.constant 0 : i32
    %c0_i32_1 = arith.constant 0 : i32
    return %c0_i32, %c0_i32_0 : i32, i32
  }
  func.func @transform_4(%arg0: i32) -> (i32, i32, i32, i32) {
    %c0_i32 = arith.constant 0 : i32
    %c0_i32_0 = arith.constant 0 : i32
    %c0_i32_1 = arith.constant 0 : i32
    %c0_i32_2 = arith.constant 0 : i32
    return %arg0, %c0_i32, %c0_i32_0, %c0_i32_1 : i32, i32, i32, i32
  }
}

</mosaic_0001>

<bundles_post_ra>
// kernel: tpu_custom_call.1
= control target key start
LH: loop header
LB: loop body
LE: loop exit
PB: predicated region body
PF: predicated region fallthrough
CT: control target
= control target key end

     0   :  { %s6096_s0 = inlined_call_operand.hbm [shape: f32[2,4,8,8], index: 0, kind: input, shape index: {}]   ;;  %s6097_s1 = inlined_call_operand.hbm [shape: f32[2,8,8], index: 1, kind: input, shape index: {}]   ;;  %s6098_s2 = inlined_call_operand.vmem [shape: f32[328], index: 2, kind: input, shape index: {}]   ;;  %s6099_s3 = inlined_call_operand.hbm [shape: f32[16,16], index: 3, kind: input, shape index: {}]   ;;  %s6100_s4 = inlined_call_operand.hbm [shape: f32[2,8,8,8], index: 4, kind: output, shape index: {}]  }
   0x1   :  { %6278 = sst [smem:[#allocation294_spill]] %s6096_s0 }
   0x2   :  { %6279 = sst [smem:[#allocation295_spill]] %s6097_s1 }
   0x3   :  { %6280 = sst [smem:[#allocation296_spill]] %s6098_s2 }
   0x4   :  { %6281 = sst [smem:[#allocation297_spill]] %s6099_s3 }
   0x5   :  { %6282 = sst [smem:[#allocation298_spill]] %s6100_s4 }
   0x6   :  { %9 = vsyncpa [#allocation3], 0 }
   0x7   :  { %11 = vsyncpa [#allocation3 + $0x1], 0 }
   0x8   :  { %12 = vsyncpa [#allocation7], 0 }
   0x9   :  { %14 = vsyncpa [#allocation7 + $0x1], 0 }
   0xa   :  { %15 = vsyncpa [#allocation5], 0 }
   0xb   :  { %16 = vsyncpa [#allocation4], 0 }
   0xc   :  { %18 = vsyncpa [#allocation4 + $0x1], 0  ;;  %s3542_s15 = smov 0   ;;  %s3544_s16 = smov 0  }
   0xd   :  { %s3546_s17 = smov 0   ;;  %s3548_s18 = smov 0  }
   0xe LB: > { %6283 = sst [smem:[#allocation16_spill]] %s3492_s15  ;;  %s3563_s19 = sadd.s32 4294967295, %s3504_s18   ;;  %s3504_s18 = sphi %s3548_s18, %s7168_s18   ;;  %s3500_s17 = sphi %s3546_s17, %s7171_s17   ;;  %s3496_s16 = sphi %s3544_s16, %s7170_s16   ;;  %s3492_s15 = sphi %s3542_s15, %s7169_s15  }
   0xf   : > { %6284 = sst [smem:[#allocation17_spill]] %s3496_s16  ;;  %s2768_s20 = sadd.s32 4294967294, %s3504_s18  }
  0x10   : > { %6285 = sst [smem:[#allocation18_spill]] %s3500_s17  ;;  %p44_p0 = scmp.ne.s32.totalorder %s3496_s16, %s3492_s15 }
  0x11   : > { %6286 = sst [smem:[#allocation19_spill]] %s3504_s18  ;;  %p6101_p1 = scmp.eq.s32.totalorder %s3563_s19, 0 }
  0x12   : > { %6287 = sst [smem:[#allocation20_spill]] %s3563_s19  ;;  %p142_p3 = scmp.eq.s32.totalorder %s2768_s20, 1 }
  0x13   : > { %p3572_p4 = por %p6101_p1, %p44_p0  ;;  %p2769_p5 = scmp.ge.s32.totalorder %s3504_s18, 1 }
  0x14   : > { %p3577_p6 = por %p142_p3, %p44_p0  ;;  %p149_p7 = scmp.lt.s32.totalorder %s3504_s18, 3 }
  0x15   : > { %s6288_s21 = scalar_select %p3572_p4, 1, 0 }
  0x16   : > { %s6289_s22 = scalar_select %p3577_p6, 1, 0 }
  0x17   : > { %p3582_p8 = pnand %p2769_p5, %p149_p7  ;;  %s3506_s24 = smov [#allocation9]  }
  0x18   : > { %6290 = sst [smem:[#allocation21_spill]] %s6289_s22  ;;  %s172_s25 = sshll.u32 %s3506_s24, 4  ;;  %s173_s25 = int_to_ptr.vmem [resolvable:$true] %s172_s25 }
  0x19   : > { %s6291_s23 = scalar_select %p3582_p8, 1, 0 }
  0x1a   : > { %p3219_p9 = pneg %p3582_p8  ;;  %s6292_s2 = sld [smem:[#allocation296_spill]] }
  0x1b   : > { %s6294_s3 = sld [smem:[#allocation297_spill]] }
  0x1c   : > { %p3594_p11 = pnand %p3219_p9, %p6101_p1 }
  0x1e   : > { %p3325_p13 = pneg %p3594_p11 }
  0x20   : > { %s162_s28 = sshll.u32 %s6292_s2, 4  ;;  %s3598_s28 = int_to_ptr.vmem [resolvable:$true] %s162_s28 }
  0x21   : > { %s3323_s6 = scalar_lea.hbm %s6294_s3, 256 }
  0x22   : > { %p3324_p12 = scmp.ne.s32.totalorder %s6294_s3, %s3323_s6  ;;  %p3330_p5 = scmp.lt.u32.totalorder %s3323_s6, %s6294_s3 }
  0x24   : > { %p3326_p0 = pnand %p3325_p13, %p3324_p12 }
  0x26   : > { %p3327_p3 = pneg %p3326_p0 }
  0x28   : > { %p3332_p7 = pnand %p3330_p5, %p3327_p3 }
  0x2a   : > { %3335 = shalt.err (!%p3332_p7)
}
  0x2b   : > { %s3336_s11 = scalar_lea.vmem %s173_s25, 256  ;;  %p3344_p2 = scmp.lt.s32.totalorder %s173_s25, %s173_s25 }
  0x2c   : > { %p3337_p9 = scmp.ne.s32.totalorder %s173_s25, %s3336_s11  ;;  %p3345_p6 = scmp.lt.s32.totalorder %s3336_s11, %s3336_s11 }
  0x2e   : > { %p3339_p10 = pnand %p3337_p9, %p3325_p13  ;;  %p3346_p4 = por %p3345_p6, %p3344_p2 }
  0x30   : > { %p3340_p1 = pneg %p3339_p10 }
  0x32   : > { %p3347_p8 = pnand %p3346_p4, %p3340_p1 }
  0x34   : > { %3350 = shalt.err (!%p3347_p8)
}
  0x35   : > { %s3507_s12 = smov 128   ;;  %s3508_s13 = smov 8  }
  0x36   : > { %3225 = dma.hbm_to_vmem [thread:$0]  (!%p3594_p11), %s6294_s3, 256, %s173_s25, [#allocation7], %s3507_s12, %s3507_s12, %s3508_s13  }
  0x37   : > { %s3351_s24 = scalar_lea.vmem %s3598_s28, 48  ;;  %s3358_s26 = scalar_lea.vmem %s3598_s28, 64 }
  0x38   : > { %p3352_p2 = scmp.ne.s32.totalorder %s3598_s28, %s3351_s24  ;;  %p3359_p6 = scmp.lt.s32.totalorder %s3598_s28, %s3598_s28 }
  0x39   : > { %p3360_p8 = scmp.lt.s32.totalorder %s3358_s26, %s3351_s24 }
  0x3a   : > { %p3354_p1 = pnand %p3352_p2, %p3325_p13 }
  0x3b   : > { %p3361_p10 = por %p3360_p8, %p3359_p6 }
  0x3c   : > { %p3355_p4 = pneg %p3354_p1 }
  0x3e   : > { %p3362_p12 = pnand %p3361_p10, %p3355_p4 }
  0x40   : > { %3365 = shalt.err (!%p3362_p12)
}
  0x41   : > { %s3509_s27 = smov [#allocation8]   ;;  %s3637_s25 = sadd.s32 1, %s3504_s18  }
  0x42   : > { %3222 = dma.vmem_to_smem (!%p3594_p11), %s3598_s28, 48, %s3509_s27, [#allocation5]  }
  0x43   : > { %6295 = sst [smem:[#allocation22_spill]] %s3637_s25  ;;  %s31_s30 = sadd.s32 1, %s3500_s17 }
  0x44   : > { %s28_s5 = ssub.s32 %s3504_s18, %s3637_s25  ;;  %p38_p13 = scmp.ne.s32.totalorder %s3500_s17, %s3496_s16 }
  0x45   : > { %p29_p0 = scmp.eq.s32.totalorder %s28_s5, 0  ;;  %p39_p3 = scmp.eq.s32.totalorder %s3504_s18, 0 }
  0x46   : > { %p6296_p5 = scmp.eq.s32.totalorder %s3563_s19, 1  ;;  %p3239_p9 = scmp.lt.s32.totalorder %s3504_s18, 2 }
  0x47   : > { %s3653_s6 = scalar_select %p29_p0, %s3500_s17, %s31_s30  }
  0x48   : > { %p3647_p7 = por %p6296_p5, %p38_p13  ;;  %p40_p2 = por %p39_p3, %p38_p13 }
  0x49   : > { %6299 = sst [smem:[#allocation24_spill]] %s3653_s6  ;;  %s3656_s7 = sand.u32 1, %s3500_s17  }
  0x4a   : > { %s6297_s29 = scalar_select %p3647_p7, 1, 0 }
  0x4b   : > { %s2773_s28 = sshll.u32 %s3656_s7, 5  ;;  %s3146_s8 = sshll.u32 %s3504_s18, 9 }
  0x4c   : > { %6298 = sst [smem:[#allocation23_spill]] %s6297_s29  ;;  %s6300_s0 = sld [smem:[#allocation294_spill]] }
  0x4d   : > { %s190_s14 = scalar_lea.vmem [#allocation2], %s2773_s28  ;;  %p3667_p11 = pnand %p3239_p9, %p40_p2 }
  0x4e   : > { %s197_s20 = sshll.u32 %s190_s14, 4  ;;  %s2776_s27 = sshll.u32 %s3656_s7, 3  ;;  %s3665_s20 = int_to_ptr.vmem [resolvable:$true] %s197_s20 }
  0x4f   : > { %s187_s30 = scalar_lea.sflag [#allocation3], %s3656_s7  ;;  %p3368_p4 = pneg %p3667_p11 }
  0x52   : > { %s3663_s11 = scalar_lea.hbm %s6300_s0, %s3146_s8  ;;  %s3371_s9 = scalar_lea.hbm %s6300_s0, 1024 }
  0x53   : > { %s3366_s5 = scalar_lea.hbm %s3663_s11, 512  ;;  %p3372_p10 = scmp.lt.u32.totalorder %s3663_s11, %s6300_s0 }
  0x54   : > { %p3367_p1 = scmp.ne.s32.totalorder %s3663_s11, %s3366_s5  ;;  %p3373_p12 = scmp.lt.u32.totalorder %s3371_s9, %s3366_s5 }
  0x55   : > { %p3375_p0 = scmp.lt.u32.totalorder %s3366_s5, %s3663_s11 }
  0x56   : > { %p3369_p6 = pnand %p3368_p4, %p3367_p1  ;;  %p3374_p13 = por %p3373_p12, %p3372_p10 }
  0x58   : > { %p3370_p8 = pneg %p3369_p6  ;;  %p3376_p3 = por %p3375_p0, %p3374_p13 }
  0x5a   : > { %p3377_p5 = pnand %p3376_p3, %p3370_p8 }
  0x5c   : > { %3380 = shalt.err (!%p3377_p5)
}
  0x5d   : > { %s3381_s26 = scalar_lea.vmem %s3665_s20, 512  ;;  %s3510_s28 = smov [#allocation2]  }
  0x5e   : > { %p3382_p9 = scmp.ne.s32.totalorder %s3665_s20, %s3381_s26  ;;  %s3386_s8 = sshll.u32 %s3510_s28, 4  ;;  %s3387_s8 = int_to_ptr.vmem [resolvable:$false] %s3386_s8 }
  0x5f   : > { %s3388_s10 = scalar_lea.vmem %s3387_s8, 1024  ;;  %p3389_p6 = scmp.lt.s32.totalorder %s3665_s20, %s3387_s8 }
  0x60   : > { %p3384_p2 = pnand %p3382_p9, %p3368_p4  ;;  %p3390_p10 = scmp.lt.s32.totalorder %s3388_s10, %s3381_s26 }
  0x62   : > { %p3385_p1 = pneg %p3384_p2  ;;  %p3391_p12 = por %p3390_p10, %p3389_p6 }
  0x64   : > { %p3392_p13 = pnand %p3391_p12, %p3385_p1 }
  0x66   : > { %3395 = shalt.err (!%p3392_p13)
}
  0x67   : > { %3229 = dma.hbm_to_vmem [thread:$0]  (!%p3667_p11), %s3663_s11, 512, %s3665_s20, %s187_s30, %s3507_s12, %s3507_s12, %s3508_s13  }
  0x68   : > { %s2777_s5 = sshll.u32 %s3504_s18, 7  ;;  %s6302_s1 = sld [smem:[#allocation295_spill]] }
  0x69   : > { %s211_s28 = scalar_lea.vmem [#allocation6], %s2776_s27  ;;  %s6303_s10 = sand.u32 1, %s3504_s18  }
  0x6a   : > { %s218_s8 = sshll.u32 %s211_s28, 4  ;;  %s208_s0 = scalar_lea.sflag [#allocation7], %s6303_s10  ;;  %s219_s8 = int_to_ptr.vmem [resolvable:$true] %s218_s8 }
  0x6e   : > { %s3708_s14 = scalar_lea.hbm %s6302_s1, %s2777_s5  ;;  %s3401_s11 = scalar_lea.hbm %s6302_s1, 256 }
  0x6f   : > { %s3396_s2 = scalar_lea.hbm %s3708_s14, 128  ;;  %p3402_p5 = scmp.lt.u32.totalorder %s3708_s14, %s6302_s1 }
  0x70   : > { %p3397_p8 = scmp.ne.s32.totalorder %s3708_s14, %s3396_s2  ;;  %p3403_p9 = scmp.lt.u32.totalorder %s3401_s11, %s3396_s2 }
  0x71   : > { %p3405_p1 = scmp.lt.u32.totalorder %s3396_s2, %s3708_s14 }
  0x72   : > { %p3399_p0 = pnand %p3397_p8, %p3368_p4  ;;  %p3404_p2 = por %p3403_p9, %p3402_p5 }
  0x74   : > { %p3400_p3 = pneg %p3399_p0  ;;  %p3406_p6 = por %p3405_p1, %p3404_p2 }
  0x76   : > { %p3407_p10 = pnand %p3406_p6, %p3400_p3 }
  0x78   : > { %3410 = shalt.err (!%p3407_p10)
}
  0x79   : > { %s3411_s27 = scalar_lea.vmem %s219_s8, 128  ;;  %s3511_s30 = smov [#allocation6]  }
  0x7a   : > { %p3412_p12 = scmp.ne.s32.totalorder %s219_s8, %s3411_s27  ;;  %s3416_s5 = sshll.u32 %s3511_s30, 4  ;;  %s3417_s5 = int_to_ptr.vmem [resolvable:$false] %s3416_s5 }
  0x7b   : > { %s3418_s9 = scalar_lea.vmem %s3417_s5, 256  ;;  %p3419_p0 = scmp.lt.s32.totalorder %s219_s8, %s3417_s5 }
  0x7c   : > { %p3414_p13 = pnand %p3412_p12, %p3368_p4  ;;  %p3420_p7 = scmp.lt.s32.totalorder %s3418_s9, %s3411_s27 }
  0x7e   : > { %p3415_p8 = pneg %p3414_p13  ;;  %p3421_p5 = por %p3420_p7, %p3419_p0 }
  0x80   : > { %p3422_p9 = pnand %p3421_p5, %p3415_p8 }
  0x82   : > { %3425 = shalt.err (!%p3422_p9)
}
  0x83   : > { %3232 = dma.hbm_to_vmem [thread:$0]  (!%p3667_p11), %s3708_s14, 128, %s219_s8, %s208_s0  }
  0x84   : > { %p6304_p3 = scmp.ne.s32.totalorder %s6291_s23, 0 }
  0x86   : > { %227 = sbr.rel (%p6304_p3) target bundleno = 822 (0x336), region = 36 }
  0x8d   : > { %s3736_s2 = sand.u32 1, %s3496_s16   ;;  %p6307_p7 = scmp.ne.s32.totalorder %s6288_s21, 0 }
  0x8e   : > { %6305 = sst [smem:[#allocation25_spill]] %s3736_s2  ;;  %s2779_s26 = sshll.u32 %s3736_s2, 5 }
  0x8f   : > { %s230_s28 = scalar_lea.sflag [#allocation3], %s3736_s2  ;;  %s3740_s10 = scalar_lea.vmem [#allocation2], %s2779_s26 }
  0x90   : > { %6306 = sst [smem:[#allocation26_spill]] %s3740_s10 }
  0x91   : > { %3471 = dma.done.wait (%p6307_p7), %s230_s28, 512  }
  0x92   : > { %3473 = vsyncadd (%p6307_p7), %s230_s28, 4294966784  ;;  %s238_s0 = sand.u32 1, %s3563_s19   ;;  %s2780_s23 = sshll.u32 %s3736_s2, 3 }
  0x93   : > { %s239_s24 = scalar_lea.sflag [#allocation7], %s238_s0  ;;  %s242_s14 = scalar_lea.vmem [#allocation6], %s2780_s23 }
  0x94   : > { %3475 = dma.done.wait (%p6307_p7), %s239_s24, 128  }
  0x95   : > { %3477 = vsyncadd (%p6307_p7), %s239_s24, 4294967168  ;;  %p6308_p11 = scmp.eq.s32.totalorder %s3563_s19, 0 }
  0x97   : > { %3479 = dma.done.wait (%p6308_p11), [#allocation5], 48   ;;  %p6309_p4 = pmov %p6308_p11 }
  0x99   : > { %3481 = vsyncadd (%p6309_p4), [#allocation5], 4294967248  ;;  %p6310_p2 = pmov %p6309_p4 }
  0x9b   : > { %3483 = dma.done.wait (%p6310_p2), [#allocation7], 256   ;;  %p6311_p1 = pmov %p6310_p2 }
  0x9d   : > { %3485 = vsyncadd (%p6311_p1), [#allocation7], 4294967040 }
  0x9e   : > { %255 = sfence }
  0x9f   : > { %v3761_v0 = vld [vmem:[%s3740_s10] sm:$0xff]  ;;  %vm322_vm0 = vcmask 64512   ;;  %v3766_v2 = vld [vmem:[%s3740_s10 + $0x8] sm:$0xff]  ;;  %v3775_v6 = vld [vmem:[%s3740_s10 + $0x10] sm:$0xff]  ;;  %vm428_vm1 = vcmask 1045509   ;;  %vm430_vm2 = vcmask 1046534  }
  0xa0   : > { %v3763_v1 = vld [vmem:[%s242_s14] sm:$0xff]  ;;  %v359_v3 = vsel %vm322_vm0, %v3761_v0, 0.0  ;;  %v3781_v8 = vld [vmem:[%s3740_s10 + $0x18] sm:$0xff]  ;;  %v362_v10 = vsel %vm322_vm0, %v3766_v2, 0.0  ;;  %v365_v13 = vsel %vm322_vm0, %v3775_v6, 0.0  ;;  %vm432_vm3 = vcmask 1047559  }
  0xa1   : > { %v318_v4 = vmul.f32 %v3761_v0, %v3763_v1  ;;  %v319_v5 = vmul.f32 %v3766_v2, %v3763_v1  ;;  %3203 = vmatprep.subr.mxu1 %v3763_v1  ;;  %360 = vadd.xlane.f32.xlu1 %v359_v3  ;;  %v320_v7 = vmul.f32 %v3775_v6, %v3763_v1  ;;  %v371_v11 = vrot.slane %v359_v3, 4  ;;  %s3828_s21 = sld [smem:[#allocation8 + $0x14]]  ;;  %s3830_s8 = sld [smem:[#allocation8 + $0x15]] }
  0xa2   : > { %3204 = vmatpush3.msra.mxu1 %v3763_v1  ;;  %v377_v12 = vrot.slane %v362_v10, 4  ;;  %v383_v15 = vrot.slane %v365_v13, 4  ;;  %v368_v16 = vsel %vm322_vm0, %v3781_v8, 0.0  ;;  %v321_v17 = vmul.f32 %v3781_v8, %v3763_v1  ;;  %s3832_s12 = sld [smem:[#allocation8 + $0x16]]  ;;  %s3834_s13 = sld [smem:[#allocation8 + $0x17]] }
  0xa3   : > { %v323_v9 = vsel %vm322_vm0, %v318_v4, 0.0  ;;  %3187 = vmatprep.mubr.msk.f32.mxu1 %vm322_vm0, %v318_v4  ;;  %v326_v14 = vsel %vm322_vm0, %v319_v5, 0.0  ;;  %v329_v20 = vsel %vm322_vm0, %v320_v7, 0.0  ;;  %v389_v21 = vrot.slane %v368_v16, 4  ;;  %s3836_s11 = sld [smem:[#allocation8 + $0x3d]]  ;;  %s3838_s7 = sld [smem:[#allocation8 + $0x3e]] }
  0xa4   : > { %324 = vadd.xlane.f32.xlu0 %v323_v9  ;;  %3188 = vmatmul.mubr.msk.f32.vlgmr.msra.gmra.mrb[0].mxu1 %vm322_vm0, %v319_v5  ;;  %v335_v18 = vrot.slane %v323_v9, 4  ;;  %v341_v19 = vrot.slane %v326_v14, 4  ;;  %v347_v22 = vrot.slane %v329_v20, 4  ;;  %v372_v23 = vadd.f32 %v371_v11, %v359_v3  ;;  %s3840_s20 = sld [smem:[#allocation8 + $0x3f]]  ;;  %s3842_s27 = sld [smem:[#allocation8 + $0x40]] }
  0xa5   : > { %3190 = vmatprep.mubr.msk.f32.mxu1 %vm322_vm0, %v320_v7  ;;  %363 = vadd.xlane.f32.xlu1 %v362_v10  ;;  %v378_v24 = vadd.f32 %v377_v12, %v362_v10  ;;  %v332_v25 = vsel %vm322_vm0, %v321_v17, 0.0  ;;  %v384_v26 = vadd.f32 %v383_v15, %v365_v13  ;;  %v390_v30 = vadd.f32 %v389_v21, %v368_v16  ;;  %v470_v12 = vld [vmem:[#allocation9] sm:$0xff]  ;;  %s3844_s30 = sld [smem:[#allocation8 + $0x66]]  ;;  %s3846_s5 = sld [smem:[#allocation8 + $0x67]] }
  0xa6   : > { %v353_v27 = vrot.slane %v332_v25, 4  ;;  %v336_v28 = vadd.f32 %v335_v18, %v323_v9  ;;  %v342_v29 = vadd.f32 %v341_v19, %v326_v14  ;;  %v348_v31 = vadd.f32 %v347_v22, %v329_v20  ;;  %s3848_s9 = sld [smem:[#allocation8 + $0x68]]  ;;  %s3850_s26 = sld [smem:[#allocation8 + $0x69]] }
  0xa7   : > { %v373_v32 = vrot.slane %v372_v23, 2  ;;  %v379_v33 = vrot.slane %v378_v24, 2  ;;  %v385_v35 = vrot.slane %v384_v26, 2  ;;  %v391_v38 = vrot.slane %v390_v30, 2  ;;  %s3852_s28 = sld [smem:[#allocation8 + $0x8f]]  ;;  %s3854_s0 = sld [smem:[#allocation8 + $0x90]] }
  0xa8   : > { %327 = vadd.xlane.f32.xlu0 %v326_v14  ;;  %3191 = vmatmul.mubr.msk.f32.gmra.mrb[2].mxu1 %vm322_vm0, %v321_v17  ;;  %v354_v34 = vadd.f32 %v353_v27, %v332_v25  ;;  %v337_v36 = vrot.slane %v336_v28, 2  ;;  %v343_v37 = vrot.slane %v342_v29, 2  ;;  %v349_v39 = vrot.slane %v348_v31, 2  ;;  %s3856_s23 = sld [smem:[#allocation8 + $0x91]]  ;;  %s3858_s24 = sld [smem:[#allocation8 + $0x92]] }
  0xa9   : > { %366 = vadd.xlane.f32.xlu1 %v365_v13  ;;  %v374_v40 = vadd.f32 %v373_v32, %v372_v23  ;;  %v380_v41 = vadd.f32 %v379_v33, %v378_v24  ;;  %v386_v43 = vadd.f32 %v385_v35, %v384_v26  ;;  %v392_v46 = vadd.f32 %v391_v38, %v390_v30  ;;  %s3860_s14 = sld [smem:[#allocation8 + $0xb8]]  ;;  %s3862_s1 = sld [smem:[#allocation8 + $0xb9]] }
  0xaa   : > { %v355_v42 = vrot.slane %v354_v34, 2  ;;  %v338_v44 = vadd.f32 %v337_v36, %v336_v28  ;;  %v344_v45 = vadd.f32 %v343_v37, %v342_v29  ;;  %v350_v47 = vadd.f32 %v349_v39, %v348_v31  ;;  %s3866_s3 = sld [smem:[#allocation8 + $0xba]]  ;;  %s3868_s6 = sld [smem:[#allocation8 + $0xbb]] }
  0xab   : > { %v375_v48 = vrot.slane %v374_v40, 1  ;;  %v381_v49 = vrot.slane %v380_v41, 1  ;;  %v387_v51 = vrot.slane %v386_v43, 1  ;;  %v393_v54 = vrot.slane %v392_v46, 1  ;;  %s3872_s17 = sld [smem:[#allocation8 + $0xe1]]  ;;  %s3874_s16 = sld [smem:[#allocation8 + $0xe2]] }
  0xac   : > { %330 = vadd.xlane.f32.xlu0 %v329_v20  ;;  %v356_v50 = vadd.f32 %v355_v42, %v354_v34  ;;  %v339_v52 = vrot.slane %v338_v44, 1  ;;  %v345_v53 = vrot.slane %v344_v45, 1  ;;  %v351_v55 = vrot.slane %v350_v47, 1  ;;  %s3877_s25 = sld [smem:[#allocation8 + $0xe3]]  ;;  %s3879_s18 = sld [smem:[#allocation8 + $0xe4]] }
  0xad   : > { %369 = vadd.xlane.f32.xlu1 %v368_v16  ;;  %v376_v56 = vadd.f32 %v375_v48, %v374_v40  ;;  %v382_v57 = vadd.f32 %v381_v49, %v380_v41  ;;  %v388_v59 = vadd.f32 %v387_v51, %v386_v43  ;;  %v394_v62 = vadd.f32 %v393_v54, %v392_v46  ;;  %v471_v43 = vld [vmem:[#allocation9 + $0x8] sm:$0xff]  ;;  %s3881_s22 = sld [smem:[#allocation8 + $0x25]]  ;;  %s3883_s15 = sld [smem:[#allocation8 + $0x4e]] }
  0xae   : > { %v357_v58 = vrot.slane %v356_v50, 1  ;;  %v340_v60 = vadd.f32 %v339_v52, %v338_v44  ;;  %v346_v61 = vadd.f32 %v345_v53, %v344_v45  ;;  %v352_v63 = vadd.f32 %v351_v55, %v350_v47  ;;  %s3885_s4 = sld [smem:[#allocation8 + $0x24]]  ;;  %s3887_s29 = sld [smem:[#allocation8 + $0x4d]] }
  0xaf   : > { %v463_v4 = vsel %vm428_vm1, %v382_v57, %v376_v56  ;;  %vm472_vm4 = vcmask 130048   ;;  %v627_v13 = vsel %vm322_vm0, %v3763_v1, 0.0  ;;  %v399_v14 = vlaneseq  ;;  %s3889_s19 = sld [smem:[#allocation8 + $0x1d]]  ;;  %s3891_s2 = sld [smem:[#allocation8 + $0x46]] }
  0xb0   : > { %333 = vadd.xlane.f32.xlu0 %v332_v25  ;;  %v358_v3 = vadd.f32 %v357_v58, %v356_v50  ;;  %v464_v5 = vsel %vm430_vm2, %v388_v59, %v463_v4  ;;  %v429_v7 = vsel %vm428_vm1, %v346_v61, %v340_v60  ;;  %3171 = vmatprep.mubr.msk.f32.mxu0 %vm472_vm4, %v470_v12  ;;  %vm417_vm5 = vcmask 1041409   ;;  %s3893_s10 = sld [smem:[#allocation8 + $0x1c]] }
  0xb1   : > { %v465_v9 = vsel %vm432_vm3, %v394_v62, %v464_v5  ;;  %v431_v10 = vsel %vm430_vm2, %v352_v63, %v429_v7  ;;  %v400_v17 = vand.u32 127, %v399_v14  ;;  %v3808_v18 = vshrl.u32 %v399_v14, 7  ;;  %6316 = sst [smem:[#allocation31_spill]] %s3874_s16  ;;  %s3895_s16 = sld [smem:[#allocation8 + $0x45]] }
  0xb2   : > { %v433_v11 = vsel %vm432_vm3, %v358_v3, %v431_v10  ;;  %vm419_vm6 = vcmask 1042434   ;;  %vm421_vm7 = vcmask 1043459   ;;  %vm467_vm8 = vcmask 1043456   ;;  %6317 = sst [smem:[#allocation32_spill]] %s3877_s25  ;;  %s3897_s25 = sld [smem:[#allocation8 + $0x27]] }
  0xb3   : > { %v403_v21 = vsub.s32 %v400_v17, %v3808_v18  ;;  %v3512_v44 = vmov 0.0   ;;  %vm3513_vm9 = vmmov 0   ;;  %6318 = sst [smem:[#allocation33_spill]] %s3879_s18  ;;  %s3899_s18 = sld [smem:[#allocation8 + $0x50]]  ;;  %v1022_v3 = vstv %s3828_s21 }
  0xb4   : > { %6319 = sst [smem:[#allocation34_spill]] %s3881_s22  ;;  %v1026_v4 = vstv %s3830_s8  ;;  %v1030_v5 = vstv %s3832_s12  ;;  %v1034_v7 = vstv %s3834_s13  ;;  %v1237_v10 = vstv %s3838_s7  ;;  %s4001_s21 = sld [smem:[#allocation8 + $0xc4]] }
  0xb5   : > { %6320 = sst [smem:[#allocation35_spill]] %s3883_s15  ;;  %s3901_s22 = sld [smem:[#allocation8 + $0x26]]  ;;  %v1245_v12 = vstv %s3842_s27  ;;  %v1449_v14 = vstv %s3846_s5  ;;  %v1453_v17 = vstv %s3848_s9 }
  0xb6   : > { %6321 = sst [smem:[#allocation36_spill]] %s3885_s4  ;;  %s3903_s15 = sld [smem:[#allocation8 + $0x4f]] }
  0xb7   : > { %6322 = sst [smem:[#allocation37_spill]] %s3887_s29  ;;  %s3905_s4 = sld [smem:[#allocation8 + $0x1f]] }
  0xb8   : > { %6323 = sst [smem:[#allocation38_spill]] %s3889_s19  ;;  %s3907_s29 = sld [smem:[#allocation8 + $0x48]] }
  0xb9   : > { %6324 = sst [smem:[#allocation39_spill]] %s3891_s2  ;;  %s3909_s19 = sld [smem:[#allocation8 + $0x1e]] }
  0xba   : > { %6325 = sst [smem:[#allocation40_spill]] %s3893_s10  ;;  %s3911_s2 = sld [smem:[#allocation8 + $0x47]] }
  0xbb   : > { %6326 = sst [smem:[#allocation41_spill]] %s3895_s16  ;;  %s3913_s10 = sld [smem:[#allocation8 + $0x6e]] }
  0xbc   : > { %6327 = sst [smem:[#allocation42_spill]] %s3897_s25  ;;  %s3915_s16 = sld [smem:[#allocation8 + $0x6f]] }
  0xbd   : > { %6328 = sst [smem:[#allocation43_spill]] %s3899_s18  ;;  %s3917_s25 = sld [smem:[#allocation8 + $0x70]] }
  0xbe   : > { %6329 = sst [smem:[#allocation44_spill]] %s3901_s22  ;;  %s3919_s18 = sld [smem:[#allocation8 + $0x71]] }
  0xbf   : > { %6330 = sst [smem:[#allocation45_spill]] %s3903_s15  ;;  %s3921_s22 = sld [smem:[#allocation8 + $0x20]] }
  0xc0   : > { %6331 = sst [smem:[#allocation46_spill]] %s3905_s4  ;;  %s3923_s15 = sld [smem:[#allocation8 + $0x21]] }
  0xc1   : > { %6332 = sst [smem:[#allocation47_spill]] %s3907_s29  ;;  %s3925_s4 = sld [smem:[#allocation8 + $0x49]] }
  0xc2   : > { %6333 = sst [smem:[#allocation48_spill]] %s3909_s19  ;;  %s3927_s29 = sld [smem:[#allocation8 + $0x4a]] }
  0xc3   : > { %6334 = sst [smem:[#allocation49_spill]] %s3911_s2  ;;  %s3929_s19 = sld [smem:[#allocation8 + $0x72]] }
  0xc4   : > { %6335 = sst [smem:[#allocation50_spill]] %s3913_s10  ;;  %s3931_s2 = sld [smem:[#allocation8 + $0x73]] }
  0xc5   : > { %6336 = sst [smem:[#allocation51_spill]] %s3915_s16  ;;  %s3933_s10 = sld [smem:[#allocation8 + $0x76]] }
  0xc6   : > { %6337 = sst [smem:[#allocation52_spill]] %s3917_s25  ;;  %s3935_s16 = sld [smem:[#allocation8 + $0x77]] }
  0xc7   : > { %6338 = sst [smem:[#allocation53_spill]] %s3919_s18  ;;  %s3937_s25 = sld [smem:[#allocation8 + $0x22]] }
  0xc8   : > { %6339 = sst [smem:[#allocation54_spill]] %s3921_s22  ;;  %s3939_s18 = sld [smem:[#allocation8 + $0x23]] }
  0xc9   : > { %6340 = sst [smem:[#allocation55_spill]] %s3923_s15  ;;  %s3943_s15 = sld [smem:[#allocation8 + $0x4c]] }
  0xca   : > { %6341 = sst [smem:[#allocation56_spill]] %s3925_s4  ;;  %s3941_s22 = sld [smem:[#allocation8 + $0x4b]] }
  0xcb   : > { %6342 = sst [smem:[#allocation57_spill]] %s3927_s29  ;;  %s3945_s4 = sld [smem:[#allocation8 + $0x74]] }
  0xcc   : > { %6343 = sst [smem:[#allocation58_spill]] %s3929_s19  ;;  %s3947_s29 = sld [smem:[#allocation8 + $0x75]] }
  0xcd   : > { %6344 = sst [smem:[#allocation59_spill]] %s3931_s2  ;;  %s3949_s19 = sld [smem:[#allocation8 + $0x78]] }
  0xce   : > { %6345 = sst [smem:[#allocation60_spill]] %s3933_s10  ;;  %s3951_s2 = sld [smem:[#allocation8 + $0x79]] }
  0xcf   : > { %6346 = sst [smem:[#allocation61_spill]] %s3935_s16  ;;  %s3953_s16 = sld [smem:[#allocation8 + $0x97]] }
  0xd0   : > { %6347 = sst [smem:[#allocation62_spill]] %s3939_s18  ;;  %s3955_s10 = sld [smem:[#allocation8 + $0x98]] }
  0xd1   : > { %6348 = sst [smem:[#allocation63_spill]] %s3943_s15  ;;  %s3957_s18 = sld [smem:[#allocation8 + $0x99]] }
  0xd2   : > { %6349 = sst [smem:[#allocation64_spill]] %s3945_s4  ;;  %s3959_s15 = sld [smem:[#allocation8 + $0x9a]] }
  0xd3   : > { %6350 = sst [smem:[#allocation65_spill]] %s3947_s29  ;;  %s3961_s4 = sld [smem:[#allocation8 + $0x9b]] }
  0xd4   : > { %6351 = sst [smem:[#allocation66_spill]] %s3949_s19  ;;  %s3963_s19 = sld [smem:[#allocation8 + $0x9c]] }
  0xd5   : > { %6352 = sst [smem:[#allocation67_spill]] %s3951_s2  ;;  %s3965_s29 = sld [smem:[#allocation8 + $0x9d]] }
  0xd6   : > { %6353 = sst [smem:[#allocation68_spill]] %s3953_s16  ;;  %s3967_s2 = sld [smem:[#allocation8 + $0x9e]] }
  0xd7   : > { %6354 = sst [smem:[#allocation69_spill]] %s3955_s10  ;;  %s3969_s10 = sld [smem:[#allocation8 + $0x9f]] }
  0xd8   : > { %6355 = sst [smem:[#allocation70_spill]] %s3957_s18  ;;  %s3971_s18 = sld [smem:[#allocation8 + $0xa0]] }
  0xd9   : > { %6356 = sst [smem:[#allocation71_spill]] %s3959_s15  ;;  %s3973_s15 = sld [smem:[#allocation8 + $0xa1]] }
  0xda   : > { %6357 = sst [smem:[#allocation72_spill]] %s3963_s19  ;;  %s3975_s16 = sld [smem:[#allocation8 + $0xa2]] }
  0xdb   : > { %6358 = sst [smem:[#allocation73_spill]] %s3965_s29  ;;  %s3979_s19 = sld [smem:[#allocation8 + $0xc0]] }
  0xdc   : > { %s3981_s29 = sld [smem:[#allocation8 + $0xc1]]  ;;  %s4003_s8 = sld [smem:[#allocation8 + $0xc5]] }
  0xdd   : > { %282 = vxpose.xlu0.b32.start.end [1/1] (short) (narrow) %v3763_v1, 8  ;;  %6359 = sst [smem:[#allocation74_spill]] %s3969_s10  ;;  %s3987_s10 = sld [smem:[#allocation8 + $0xc2]] }
  0xde   : > { %6360 = sst [smem:[#allocation75_spill]] %s3971_s18  ;;  %s3989_s18 = sld [smem:[#allocation8 + $0xc3]] }
  0xdf   : > { %6361 = sst [smem:[#allocation76_spill]] %s3973_s15  ;;  %s6371_s12 = sld [smem:[#allocation31_spill]] }
  0xe0   : > { %637 = vxpose.xlu1.b32.start.end [1/1] (short) (narrow) %v3761_v0, 8  ;;  %6362 = sst [smem:[#allocation77_spill]] %s3975_s16  ;;  %s4013_s13 = sld [smem:[#allocation8 + $0xc6]] }
  0xe1   : > { %669 = vxpose.xlu0.b32.start.end [1/1] (short) (narrow) %v3766_v2, 8  ;;  %6363 = sst [smem:[#allocation78_spill]] %s3979_s19  ;;  %s4019_s7 = sld [smem:[#allocation8 + $0xc8]] }
  0xe2   : > { %6364 = sst [smem:[#allocation79_spill]] %s3981_s29  ;;  %s4021_s27 = sld [smem:[#allocation8 + $0xc9]] }
  0xe3   : > { %6365 = sst [smem:[#allocation80_spill]] %s3987_s10  ;;  %s4027_s5 = sld [smem:[#allocation8 + $0xca]] }
  0xe4   : > { %733 = vxpose.xlu1.b32.start.end [1/1] (short) (narrow) %v3781_v8, 8  ;;  %6366 = sst [smem:[#allocation81_spill]] %s3989_s18  ;;  %s4029_s9 = sld [smem:[#allocation8 + $0xcb]] }
  0xe5   : > { %701 = vxpose.xlu0.b32.start.end [1/1] (short) (narrow) %v3775_v6, 8  ;;  %s4151_s18 = sld [smem:[#allocation8 + $0x116]]  ;;  %s6435_s10 = sld [smem:[#allocation56_spill]] }
  0xe6   : > { %s4159_s19 = sld [smem:[#allocation8 + $0x118]]  ;;  %s4213_s29 = sld [smem:[#allocation8 + $0x141]] }
  0xe7   : > { %6372 = sst [smem:[#allocation31_spill]] %s4019_s7 }
  0xe8   : > { %s6432_s7 = sld [smem:[#allocation55_spill]] }
  0xea   : > { %6377 = sst [smem:[#allocation86_spill]] %s4029_s9  ;;  %s4143_s9 = sld [smem:[#allocation8 + $0x114]] }
  0xf0   : > { %6428 = sst [smem:[#allocation125_spill]] %s4143_s9  ;;  %s6457_s9 = sld [smem:[#allocation64_spill]] }
 0x112   : > { %628 = vadd.xlane.f32.xlu0 %v627_v13  ;;  %v1445_v13 = vstv %s3844_s30  ;;  %s6375_s30 = sld [smem:[#allocation33_spill]] }
 0x113   : > { %6376 = sst [smem:[#allocation33_spill]] %s4027_s5 }
 0x114   : > { %s4145_s5 = sld [smem:[#allocation8 + $0x115]] }
 0x11a   : > { %6430 = sst [smem:[#allocation126_spill]] %s4145_s5  ;;  %s4205_s5 = sld [smem:[#allocation8 + $0x13f]] }
 0x12e   : > { %v361_v15 = vpop.xlane.xlu1 %360 }
 0x12f   : > { %v442_v26 = vrot.slane %v361_v15, %v403_v21 }
 0x131   : > { %v325_v16 = vpop.xlane.xlu0 %324 }
 0x132   : > { %v364_v19 = vpop.xlane.xlu1 %363  ;;  %v404_v30 = vrot.slane %v325_v16, %v403_v21 }
 0x133   : > { %v446_v23 = vrot.slane %v364_v19, %v403_v21  ;;  %v1457_v19 = vstv %s3850_s26  ;;  %s4035_s26 = sld [smem:[#allocation8 + $0xe9]] }
 0x135   : > { %v328_v20 = vpop.xlane.xlu0 %327  ;;  %v455_v31 = vsel %vm417_vm5, %v446_v23, %v442_v26  ;;  %v1661_v23 = vstv %s3854_s0  ;;  %v1869_v26 = vstv %s3860_s14  ;;  %s4049_s0 = sld [smem:[#allocation8 + $0xec]]  ;;  %s4097_s14 = sld [smem:[#allocation8 + $0xf2]] }
 0x136   : > { %v367_v22 = vpop.xlane.xlu1 %366  ;;  %v408_v27 = vrot.slane %v328_v20, %v403_v21 }
 0x137   : > { %v450_v24 = vrot.slane %v367_v22, %v403_v21  ;;  %v1657_v22 = vstv %s3852_s28  ;;  %s4037_s28 = sld [smem:[#allocation8 + $0xea]] }
 0x138   : > { %v418_v35 = vsel %vm417_vm5, %v408_v27, %v404_v30  ;;  %v1873_v27 = vstv %s3862_s1  ;;  %v2081_v30 = vstv %s3872_s17  ;;  %s4047_s1 = sld [smem:[#allocation8 + $0xeb]]  ;;  %s4065_s17 = sld [smem:[#allocation8 + $0xee]] }
 0x139   : > { %v331_v25 = vpop.xlane.xlu0 %330  ;;  %v456_v33 = vsel %vm419_vm6, %v450_v24, %v455_v31  ;;  %v1665_v24 = vstv %s3856_s23  ;;  %v2085_v31 = vstv %s6371_s12  ;;  %6378 = sst [smem:[#allocation87_spill]] %s4035_s26  ;;  %s4081_s23 = sld [smem:[#allocation8 + $0xf0]] }
 0x13a   : > { %v412_v28 = vrot.slane %v331_v25, %v403_v21  ;;  %v370_v29 = vpop.xlane.xlu1 %369  ;;  %v1669_v25 = vstv %s3858_s24  ;;  %s4095_s24 = sld [smem:[#allocation8 + $0xf1]]  ;;  %s4153_s12 = sld [smem:[#allocation8 + $0x117]] }
 0x13b   : > { %v454_v32 = vrot.slane %v370_v29, %v403_v21  ;;  %v1881_v29 = vstv %s3868_s6  ;;  %6383 = sst [smem:[#allocation92_spill]] %s4049_s0  ;;  %s4079_s6 = sld [smem:[#allocation8 + $0xef]] }
 0x13c   : > { %v420_v38 = vsel %vm419_vm6, %v412_v28, %v418_v35  ;;  %v1877_v28 = vstv %s3866_s3  ;;  %v2093_v35 = vstv %s6375_s30  ;;  %s4063_s3 = sld [smem:[#allocation8 + $0xed]]  ;;  %6401 = sst [smem:[#allocation110_spill]] %s4097_s14 }
 0x13d   : > { %v334_v34 = vpop.xlane.xlu0 %333  ;;  %v457_v37 = vsel %vm421_vm7, %v454_v32, %v456_v33  ;;  %6379 = sst [smem:[#allocation88_spill]] %s4037_s28  ;;  %s4111_s30 = sld [smem:[#allocation8 + $0xf3]] }
 0x13e   : > { %v416_v36 = vrot.slane %v334_v34, %v403_v21  ;;  %v469_v41 = vsel %vm467_vm8, %v457_v37, %v465_v9  ;;  %v1233_v9 = vstv %s3836_s11  ;;  %s4015_s11 = sld [smem:[#allocation8 + $0xc7]]  ;;  %6382 = sst [smem:[#allocation91_spill]] %s4047_s1 }
 0x13f   : > { %6389 = sst [smem:[#allocation98_spill]] %s4065_s17  ;;  %s6444_s28 = sld [smem:[#allocation58_spill]] }
 0x140   : > { %v422_v39 = vsel %vm421_vm7, %v416_v36, %v420_v38  ;;  %6395 = sst [smem:[#allocation104_spill]] %s4081_s23  ;;  %s4113_s0 = sld [smem:[#allocation8 + $0xf4]] }
 0x141   : > { %v468_v40 = vsel %vm467_vm8, %v422_v39, %v433_v11  ;;  %v1241_v11 = vstv %s3840_s20  ;;  %s6373_s20 = sld [smem:[#allocation32_spill]]  ;;  %6394 = sst [smem:[#allocation103_spill]] %s4079_s6 }
 0x142   : > { %v3199_v42 = vpack.c.bf16 %v469_v41, %v468_v40  ;;  %6374 = sst [smem:[#allocation32_spill]] %s4021_s27  ;;  %s4131_s6 = sld [smem:[#allocation8 + $0x113]] }
 0x143   : > { %6388 = sst [smem:[#allocation97_spill]] %s4063_s3  ;;  %s6431_s27 = sld [smem:[#allocation54_spill]] }
 0x144   : > { %3200 = vmatprep.subr.bf16.mxu0 %v3199_v42  ;;  %6400 = sst [smem:[#allocation109_spill]] %s4095_s24  ;;  %s4161_s24 = sld [smem:[#allocation8 + $0x119]] }
 0x145   : > { %3202 = vmatpush3.bf16.msra.mxu0 %v3199_v42  ;;  %6408 = sst [smem:[#allocation115_spill]] %s4111_s30  ;;  %s6441_s23 = sld [smem:[#allocation57_spill]] }
 0x146   : > { %3174 = vmatprep.subr.mxu0 %v3512_v44  ;;  %6409 = sst [smem:[#allocation116_spill]] %s4113_s0  ;;  %s4169_s26 = sld [smem:[#allocation8 + $0x11b]] }
 0x147   : > { %v2089_v34 = vstv %s6373_s20  ;;  %s4129_s0 = sld [smem:[#allocation8 + $0x112]]  ;;  %s6446_s17 = sld [smem:[#allocation59_spill]] }
 0x148   : > { %3172 = vmatmul.mubr.msk.f32.vlgmr.msra.gmra.mrb[0].mxu0 %vm472_vm4, %v471_v43  ;;  %6420 = sst [smem:[#allocation122_spill]] %s4131_s6  ;;  %s6450_s6 = sld [smem:[#allocation62_spill]] }
 0x149   : > { %3176 = vmatprep.mubr.msk.f32.mxu0 %vm3513_vm9, %v3512_v44  ;;  %6434 = sst [smem:[#allocation54_spill]] %s4153_s12  ;;  %s4175_s30 = sld [smem:[#allocation8 + $0x11c]] }
 0x14a   : > { %6439 = sst [smem:[#allocation55_spill]] %s4161_s24  ;;  %s4167_s12 = sld [smem:[#allocation8 + $0x11a]] }
 0x14b   : > { %s4177_s24 = sld [smem:[#allocation8 + $0x11d]]  ;;  %s4215_s14 = sld [smem:[#allocation8 + $0x142]] }
 0x14c   : > { %6445 = sst [smem:[#allocation57_spill]] %s4169_s26  ;;  %s4185_s26 = sld [smem:[#allocation8 + $0x13c]] }
 0x14d   : > { %6418 = sst [smem:[#allocation121_spill]] %s4129_s0  ;;  %s6460_s3 = sld [smem:[#allocation72_spill]] }
 0x14e   : > { %s4183_s0 = sld [smem:[#allocation8 + $0x13b]]  ;;  %s4251_s20 = sld [smem:[#allocation8]] }
 0x14f   : > { %6447 = sst [smem:[#allocation58_spill]] %s4175_s30  ;;  %s6495_s15 = sld [smem:[#allocation97_spill]] }
 0x150   : > { %6443 = sst [smem:[#allocation56_spill]] %s4167_s12  ;;  %s6501_s16 = sld [smem:[#allocation103_spill]] }
 0x151   : > { %6448 = sst [smem:[#allocation59_spill]] %s4177_s24  ;;  %s4455_s1 = sld [smem:[#allocation8 + $0x18]] }
 0x152   : > { %6452 = sst [smem:[#allocation127_spill]] %s4185_s26  ;;  %s4467_s24 = sld [smem:[#allocation8 + $0x1a]] }
 0x153   : > { %s4321_s26 = sld [smem:[#allocation8 + $0xf]]  ;;  %s4469_s12 = sld [smem:[#allocation8 + $0x1b]] }
 0x154   : > { %6451 = sst [smem:[#allocation62_spill]] %s4183_s0  ;;  %s4479_s0 = sld [smem:[#allocation8 + $0x56]] }
 0x155   : > { %6470 = sst [smem:[#allocation129_spill]] %s4251_s20 }
 0x156   : > { %s4371_s20 = sld [smem:[#allocation8 + $0x31]] }
 0x157   : > { %6548 = sst [smem:[#allocation165_spill]] %s4455_s1  ;;  %s4489_s1 = sld [smem:[#allocation8 + $0x59]] }
 0x159   : > { %6494 = sst [smem:[#allocation141_spill]] %s4321_s26  ;;  %s6502_s26 = sld [smem:[#allocation104_spill]] }
 0x15a   : > { %6557 = sst [smem:[#allocation169_spill]] %s4469_s12  ;;  %s4487_s12 = sld [smem:[#allocation8 + $0x58]] }
 0x15d   : > { %v298_v45 = vpop.trf.xlu0  ;;  %6565 = sst [smem:[#allocation173_spill]] %s4489_s1  ;;  %s4527_s1 = sld [smem:[#allocation8 + $0x39]] }
 0x15e   : > { %3175 = vmatpush3.msra.mxu0 %v298_v45  ;;  %v630_v57 = vsel %vm322_vm0, %v298_v45, 0.0 }
 0x15f   : > { %3177 = vmatmul.mubr.msk.f32.vlgmr.msra.gmra.mrb[2].mxu0 %vm322_vm0, %v3763_v1  ;;  %3179 = vmatprep.subr.mxu0 %v3763_v1  ;;  %v631_v58 = vrot.slane %v630_v57, 4 }
 0x160   : > { %3180 = vmatpush3.msra.mxu0 %v3763_v1  ;;  %v653_v46 = vpop.trf.xlu1  ;;  %6563 = sst [smem:[#allocation172_spill]] %s4487_s12  ;;  %s4529_s12 = sld [smem:[#allocation8 + $0x60]] }
 0x161   : > { %v685_v47 = vpop.trf.xlu0  ;;  %v765_v48 = vmul.f32 %v653_v46, %v298_v45  ;;  %3193 = vmatprep.mubr.msk.f32.mxu1 %vm322_vm0, %v653_v46  ;;  %v632_v59 = vadd.f32 %v631_v58, %v630_v57 }
 0x162   : > { %v766_v49 = vmul.f32 %v685_v47, %v298_v45  ;;  %3194 = vmatmul.mubr.msk.f32.gmra.mrb[4].mxu1 %vm322_vm0, %v685_v47 }
 0x163   : > { %3181 = vmatprep.mubr.msk.f32.mxu0 %vm322_vm0, %v765_v48  ;;  %v633_v60 = vrot.slane %v632_v59, 2 }
 0x164   : > { %v749_v50 = vpop.trf.xlu1  ;;  %3182 = vmatmul.mubr.msk.f32.vlgmr.msra.gmra.mrb[4].mxu0 %vm322_vm0, %v766_v49 }
 0x165   : > { %v717_v51 = vpop.trf.xlu0  ;;  %v768_v52 = vmul.f32 %v749_v50, %v298_v45  ;;  %v634_v61 = vadd.f32 %v633_v60, %v632_v59 }
 0x166   : > { %v767_v53 = vmul.f32 %v717_v51, %v298_v45  ;;  %3196 = vmatprep.mubr.msk.f32.mxu1 %vm322_vm0, %v717_v51  ;;  %6587 = sst [smem:[#allocation182_spill]] %s4529_s12  ;;  %s4711_s12 = sld [smem:[#allocation8 + $0xaa]] }
 0x167   : > { %3197 = vmatmul.mubr.msk.f32.gmra.mrb[6].mxu1 %vm322_vm0, %v749_v50  ;;  %v635_v62 = vrot.slane %v634_v61, 1 }
 0x168   : > { %3184 = vmatprep.mubr.msk.f32.mxu0 %vm322_vm0, %v767_v53 }
 0x169   : > { %3185 = vmatmul.mubr.msk.f32.gmra.mrb[6].mxu0 %vm322_vm0, %v768_v52  ;;  %v636_v63 = vadd.f32 %v635_v62, %v634_v61 }
 0x16b   : > { %v3996_v15 = vmul.f32 %v636_v63, %v3761_v0  ;;  %v3999_v16 = vmul.f32 %v636_v63, %v3766_v2  ;;  %v4008_v20 = vmul.f32 %v636_v63, %v3775_v6  ;;  %v4011_v21 = vmul.f32 %v636_v63, %v3781_v8 }
 0x16c   : > { %v1924_v63 = vstv %s4013_s13  ;;  %s6496_s13 = sld [smem:[#allocation98_spill]] }
 0x16d   : > { %6367 = vst [vmem:[#allocation82_spill] sm:$0xff] %v3996_v15  ;;  %6368 = vst [vmem:[#allocation83_spill] sm:$0xff] %v3999_v16  ;;  %v4040_v32 = vmul.f32 %v1022_v3, %v3996_v15  ;;  %v4043_v33 = vmul.f32 %v1026_v4, %v3999_v16  ;;  %v4052_v36 = vmul.f32 %v1030_v5, %v4008_v20  ;;  %v2348_v5 = vstv %s4159_s19  ;;  %s4427_s19 = sld [smem:[#allocation8 + $0x54]] }
 0x16e   : > { %6369 = vst [vmem:[#allocation84_spill] sm:$0xff] %v4008_v20  ;;  %6370 = vst [vmem:[#allocation85_spill] sm:$0xff] %v4011_v21  ;;  %v4055_v37 = vmul.f32 %v1034_v7, %v4011_v21  ;;  %v4058_v38 = vmul.f32 %v1233_v9, %v3996_v15  ;;  %v4061_v39 = vmul.f32 %v1237_v10, %v3999_v16  ;;  %v1704_v9 = vstv %s3961_s4  ;;  %s4273_s4 = sld [smem:[#allocation8 + $0x5]] }
 0x16f   : > { %6380 = vst [vmem:[#allocation89_spill] sm:$0xff] %v4040_v32  ;;  %6381 = vst [vmem:[#allocation90_spill] sm:$0xff] %v4043_v33  ;;  %v4068_v40 = vmul.f32 %v1241_v11, %v4008_v20  ;;  %v4071_v41 = vmul.f32 %v1245_v12, %v4011_v21  ;;  %v4074_v42 = vmul.f32 %v1445_v13, %v3996_v15  ;;  %v1081_v13 = vstv %s6450_s6  ;;  %s4229_s6 = sld [smem:[#allocation8 + $0x144]] }
 0x170   : > { %6384 = vst [vmem:[#allocation93_spill] sm:$0xff] %v4052_v36  ;;  %6385 = vst [vmem:[#allocation94_spill] sm:$0xff] %v4055_v37  ;;  %v4077_v43 = vmul.f32 %v1449_v14, %v3999_v16  ;;  %v4084_v44 = vmul.f32 %v1453_v17, %v4008_v20  ;;  %v4087_v45 = vmul.f32 %v1457_v19, %v4011_v21  ;;  %v1496_v19 = vstv %s6446_s17  ;;  %s4207_s17 = sld [smem:[#allocation8 + $0x140]] }
 0x171   : > { %6386 = vst [vmem:[#allocation95_spill] sm:$0xff] %v4058_v38  ;;  %6387 = vst [vmem:[#allocation96_spill] sm:$0xff] %v4061_v39  ;;  %v4090_v46 = vmul.f32 %v1657_v22, %v3996_v15  ;;  %v4093_v47 = vmul.f32 %v1661_v23, %v3999_v16  ;;  %v4100_v48 = vmul.f32 %v1665_v24, %v4008_v20  ;;  %v1077_v23 = vstv %s3937_s25  ;;  %s4227_s25 = sld [smem:[#allocation8 + $0x143]] }
 0x172   : > { %6390 = vst [vmem:[#allocation99_spill] sm:$0xff] %v4068_v40  ;;  %6391 = vst [vmem:[#allocation100_spill] sm:$0xff] %v4071_v41  ;;  %v4103_v49 = vmul.f32 %v1669_v25, %v4011_v21  ;;  %v4106_v50 = vmul.f32 %v1869_v26, %v3996_v15  ;;  %v4109_v51 = vmul.f32 %v1873_v27, %v3999_v16  ;;  %v1069_v25 = vstv %s6431_s27  ;;  %s6453_s27 = sld [smem:[#allocation63_spill]] }
 0x173   : > { %6392 = vst [vmem:[#allocation101_spill] sm:$0xff] %v4074_v42  ;;  %6393 = vst [vmem:[#allocation102_spill] sm:$0xff] %v4077_v43  ;;  %v4116_v52 = vmul.f32 %v1877_v28, %v4008_v20  ;;  %v4119_v53 = vmul.f32 %v1881_v29, %v4011_v21  ;;  %v4122_v57 = vmul.f32 %v2081_v30, %v3996_v15  ;;  %v1073_v26 = vstv %s6432_s7  ;;  %s4193_s7 = sld [smem:[#allocation8 + $0x13e]]  ;;  %6538 = sst [smem:[#allocation160_spill]] %s4427_s19 }
 0x174   : > { %6396 = vst [vmem:[#allocation105_spill] sm:$0xff] %v4084_v44  ;;  %6397 = vst [vmem:[#allocation106_spill] sm:$0xff] %v4087_v45  ;;  %v4125_v58 = vmul.f32 %v2085_v31, %v3999_v16  ;;  %v4134_v61 = vmul.f32 %v2089_v34, %v4008_v20  ;;  %v4137_v62 = vmul.f32 %v2093_v35, %v4011_v21  ;;  %v1280_v28 = vstv %s6435_s10  ;;  %s4191_s10 = sld [smem:[#allocation8 + $0x13d]]  ;;  %s4665_s19 = sld [smem:[#allocation8 + $0xa4]] }
 0x175   : > { %6398 = vst [vmem:[#allocation107_spill] sm:$0xff] %v4090_v46  ;;  %6399 = vst [vmem:[#allocation108_spill] sm:$0xff] %v4093_v47  ;;  %v1284_v35 = vstv %s6441_s23  ;;  %v1492_v27 = vstv %s6444_s28  ;;  %s6458_s23 = sld [smem:[#allocation65_spill]]  ;;  %v1288_v31 = vstv %s3941_s22  ;;  %v1500_v14 = vstv %s6457_s9  ;;  %s4303_s9 = sld [smem:[#allocation8 + $0xa]] }
 0x176   : > { %6402 = vst [vmem:[#allocation111_spill] sm:$0xff] %v4100_v48  ;;  %6404 = vst [vmem:[#allocation112_spill] sm:$0xff] %v4103_v49  ;;  %s6462_s22 = sld [smem:[#allocation73_spill]]  ;;  %v1716_v34 = vstv %s3967_s2  ;;  %s4279_s2 = sld [smem:[#allocation8 + $0x6]]  ;;  %v2128_v21 = vstv %s6495_s15  ;;  %v2132_v20 = vstv %s6496_s13  ;;  %v2140_v15 = vstv %s6502_s26 }
 0x177   : > { %v3824_v1 = vpop.f32.mrb[0].mxu1  ;;  %6406 = vst [vmem:[#allocation113_spill] sm:$0xff] %v4106_v50  ;;  %6407 = vst [vmem:[#allocation114_spill] sm:$0xff] %v4109_v51  ;;  %6461 = sst [smem:[#allocation64_spill]] %s4227_s25  ;;  %s4261_s25 = sld [smem:[#allocation8 + $0x3]] }
 0x178   : > { %6312 = vst [vmem:[#allocation27_spill] sm:$0xff] %v3824_v1  ;;  %v3826_v54 = vpop.f32.mrb[1].mxu1  ;;  %6410 = vst [vmem:[#allocation117_spill] sm:$0xff] %v4116_v52  ;;  %v4199_v29 = vmul.f32 %v3824_v1, %v1073_v26  ;;  %v1292_v11 = vstv %s6453_s27  ;;  %6463 = sst [smem:[#allocation65_spill]] %s4229_s6  ;;  %s4259_s6 = sld [smem:[#allocation8 + $0x2]] }
 0x179   : > { %6313 = vst [vmem:[#allocation28_spill] sm:$0xff] %v3826_v54  ;;  %6412 = vst [vmem:[#allocation118_spill] sm:$0xff] %v4119_v53  ;;  %6455 = sst [smem:[#allocation128_spill]] %s4193_s7  ;;  %v4196_v30 = vmul.f32 %v1069_v25, %v3826_v54  ;;  %v4202_v22 = vmul.f32 %v1280_v28, %v3826_v54  ;;  %v4218_v25 = vmul.f32 %v3824_v1, %v1284_v35  ;;  %s4235_s27 = sld [smem:[#allocation8 + $0x145]]  ;;  %v1920_v35 = vstv %s4003_s8 }
 0x17a   : > { %6414 = vst [vmem:[#allocation119_spill] sm:$0xff] %v4122_v57  ;;  %6416 = vst [vmem:[#allocation120_spill] sm:$0xff] %v4125_v58  ;;  %6454 = sst [smem:[#allocation63_spill]] %s4191_s10  ;;  %v4221_v26 = vmul.f32 %v1492_v27, %v3826_v54  ;;  %v4224_v28 = vmul.f32 %v3824_v1, %v1496_v19  ;;  %s4237_s7 = sld [smem:[#allocation8 + $0x146]]  ;;  %v4328_v59 = vmul.f32 %v3824_v1, %v1920_v35  ;;  %v2560_v58 = vstv %s4213_s29 }
 0x17b   : > { %v3864_v55 = vpop.f32.mrb[2].mxu1  ;;  %6422 = vst [vmem:[#allocation123_spill] sm:$0xff] %v4134_v61  ;;  %6424 = vst [vmem:[#allocation124_spill] sm:$0xff] %v4137_v62  ;;  %v1504_v12 = vstv %s6458_s23  ;;  %s4297_s10 = sld [smem:[#allocation8 + $0x9]]  ;;  %6485 = sst [smem:[#allocation136_spill]] %s4303_s9  ;;  %v2564_v61 = vstv %s4215_s14 }
 0x17c   : > { %6314 = vst [vmem:[#allocation29_spill] sm:$0xff] %v3864_v55  ;;  %v3870_v56 = vpop.f32.mrb[3].mxu1  ;;  %v4243_v27 = vmul.f32 %v3864_v55, %v1081_v13  ;;  %v4249_v10 = vmul.f32 %v3864_v55, %v1292_v11  ;;  %v1712_v7 = vstv %s6462_s22  ;;  %v4267_v11 = vmul.f32 %v3864_v55, %v1504_v12  ;;  %s4319_s8 = sld [smem:[#allocation8 + $0xe]]  ;;  %s4331_s28 = sld [smem:[#allocation8 + $0x29]] }
 0x17d   : > { %6315 = vst [vmem:[#allocation30_spill] sm:$0xff] %v3870_v56  ;;  %v4240_v19 = vmul.f32 %v1077_v23, %v3870_v56  ;;  %v4246_v17 = vmul.f32 %v1288_v31, %v3870_v56  ;;  %v1708_v23 = vstv %s6460_s3  ;;  %6475 = sst [smem:[#allocation132_spill]] %s4261_s25  ;;  %v4264_v13 = vmul.f32 %v1500_v14, %v3870_v56  ;;  %s4281_s3 = sld [smem:[#allocation8 + $0x7]] }
 0x17e   : > { %6474 = sst [smem:[#allocation131_spill]] %s4259_s6  ;;  %v4284_v12 = vmul.f32 %v1704_v9, %v3826_v54  ;;  %v4287_v14 = vmul.f32 %v3824_v1, %v1708_v23  ;;  %v4290_v31 = vmul.f32 %v1712_v7, %v3870_v56  ;;  %v4293_v24 = vmul.f32 %v3864_v55, %v1716_v34  ;;  %s4311_s6 = sld [smem:[#allocation8 + $0xc]] }
 0x17f   : > { %6464 = sst [smem:[#allocation72_spill]] %s4235_s27  ;;  %s4253_s27 = sld [smem:[#allocation8 + $0x1]]  ;;  %v1916_v9 = vstv %s4001_s21  ;;  %v1928_v34 = vstv %s4015_s11  ;;  %v4336_v7 = vmul.f32 %v1924_v63, %v3870_v56  ;;  %v966_v51 = vstv %s4279_s2 }
 0x180   : > { %6466 = sst [smem:[#allocation73_spill]] %s4237_s7  ;;  %s4295_s7 = sld [smem:[#allocation8 + $0x8]]  ;;  %v4325_v23 = vmul.f32 %v1916_v9, %v3826_v54  ;;  %v4339_v9 = vmul.f32 %v3864_v55, %v1928_v34  ;;  %v2136_v34 = vstv %s6501_s16 }
 0x181   : > { %6483 = sst [smem:[#allocation135_spill]] %s4297_s10  ;;  %s4305_s25 = sld [smem:[#allocation8 + $0xb]] }
 0x182   : > { %6492 = sst [smem:[#allocation140_spill]] %s4319_s8  ;;  %s4333_s22 = sld [smem:[#allocation8 + $0x2a]] }
 0x183   : > { %6478 = sst [smem:[#allocation133_spill]] %s4281_s3  ;;  %s4343_s23 = sld [smem:[#allocation8 + $0x2b]] }
 0x184   : > { %6487 = sst [smem:[#allocation138_spill]] %s4311_s6  ;;  %s4313_s3 = sld [smem:[#allocation8 + $0xd]] }
 0x185   : > { %6472 = sst [smem:[#allocation130_spill]] %s4253_s27  ;;  %s4271_s27 = sld [smem:[#allocation8 + $0x4]] }
 0x186   : > { %6481 = sst [smem:[#allocation134_spill]] %s4295_s7  ;;  %s4359_s7 = sld [smem:[#allocation8 + $0x2f]] }
 0x187   : > { %6486 = sst [smem:[#allocation137_spill]] %s4305_s25  ;;  %s4353_s6 = sld [smem:[#allocation8 + $0x2e]] }
 0x188   : > { %6498 = sst [smem:[#allocation97_spill]] %s4331_s28  ;;  %s4361_s10 = sld [smem:[#allocation8 + $0x30]] }
 0x189   : > { %6500 = sst [smem:[#allocation98_spill]] %s4333_s22  ;;  %s4351_s22 = sld [smem:[#allocation8 + $0x2d]] }
 0x18a   : > { %6488 = sst [smem:[#allocation139_spill]] %s4313_s3  ;;  %s4345_s3 = sld [smem:[#allocation8 + $0x2c]] }
 0x18b   : > { %6503 = sst [smem:[#allocation103_spill]] %s4343_s23  ;;  %s4373_s16 = sld [smem:[#allocation8 + $0x32]] }
 0x18c   : > { %6507 = sst [smem:[#allocation142_spill]] %s4359_s7  ;;  %s6516_s26 = sld [smem:[#allocation55_spill]] }
 0x18d   : > { %s4387_s8 = sld [smem:[#allocation8 + $0x33]]  ;;  %s4389_s11 = sld [smem:[#allocation8 + $0x34]]  ;;  %v1173_v48 = vstv %s4353_s6 }
 0x18e   : > { %6508 = sst [smem:[#allocation143_spill]] %s4361_s10  ;;  %s4399_s10 = sld [smem:[#allocation8 + $0x35]]  ;;  %v4553_v42 = vmul.f32 %v3824_v1, %v1173_v48 }
 0x18f   : > { %s4401_s7 = sld [smem:[#allocation8 + $0x36]]  ;;  %s4439_s15 = sld [smem:[#allocation8 + $0x10]]  ;;  %v1169_v47 = vstv %s4351_s22 }
 0x190   : > { %6505 = sst [smem:[#allocation104_spill]] %s4345_s3  ;;  %s6509_s3 = sld [smem:[#allocation54_spill]]  ;;  %v4550_v41 = vmul.f32 %v1169_v47, %v3826_v54  ;;  %6595 = vst [vmem:[#allocation185_spill] sm:$0xff] %v4553_v42 }
 0x191   : > { %6514 = sst [smem:[#allocation54_spill]] %s4371_s20  ;;  %s4441_s23 = sld [smem:[#allocation8 + $0x11]] }
 0x192   : > { %6515 = sst [smem:[#allocation146_spill]] %s4373_s16  ;;  %v2352_v62 = vstv %s6516_s26  ;;  %s4429_s26 = sld [smem:[#allocation8 + $0x55]]  ;;  %6594 = vst [vmem:[#allocation184_spill] sm:$0xff] %v4550_v41 }
 0x193   : > { %6521 = sst [smem:[#allocation55_spill]] %s4387_s8  ;;  %s4409_s8 = sld [smem:[#allocation8 + $0x38]] }
 0x194   : > { %6523 = sst [smem:[#allocation149_spill]] %s4389_s11  ;;  %s4407_s11 = sld [smem:[#allocation8 + $0x37]] }
 0x195   : > { %6529 = sst [smem:[#allocation152_spill]] %s4399_s10  ;;  %s4449_s16 = sld [smem:[#allocation8 + $0x13]]  ;;  %v1006_v44 = vstv %s4439_s15 }
 0x196   : > { %6530 = sst [smem:[#allocation153_spill]] %s4401_s7  ;;  %s4447_s20 = sld [smem:[#allocation8 + $0x12]] }
 0x197   : > { %s4417_s7 = sld [smem:[#allocation8 + $0x53]]  ;;  %s4507_s14 = sld [smem:[#allocation8 + $0x5c]]  ;;  %v1010_v48 = vstv %s4441_s23 }
 0x198   : > { %6539 = sst [smem:[#allocation161_spill]] %s4429_s26  ;;  %s6574_s29 = sld [smem:[#allocation142_spill]] }
 0x199   : > { %6532 = sst [smem:[#allocation155_spill]] %s4409_s8  ;;  %s4457_s26 = sld [smem:[#allocation8 + $0x19]] }
 0x19a   : > { %6531 = sst [smem:[#allocation154_spill]] %s4407_s11  ;;  %s4519_s28 = sld [smem:[#allocation8 + $0x5e]] }
 0x19b   : > { %6545 = sst [smem:[#allocation164_spill]] %s4449_s16  ;;  %s4535_s16 = sld [smem:[#allocation8 + $0x61]] }
 0x19c   : > { %s4543_s25 = sld [smem:[#allocation8 + $0x3a]]  ;;  %s4545_s9 = sld [smem:[#allocation8 + $0x7c]]  ;;  %v1014_v47 = vstv %s4447_s20 }
 0x19d   : > { %6535 = sst [smem:[#allocation157_spill]] %s4417_s7  ;;  %s6601_s30 = sld [smem:[#allocation164_spill]] }
 0x19e   : > { %6573 = sst [smem:[#allocation178_spill]] %s4507_s14  ;;  %s4575_s13 = sld [smem:[#allocation8 + $0x80]] }
 0x19f   : > { %v629_v3 = vpop.xlane.xlu0 %628  ;;  %6549 = sst [smem:[#allocation166_spill]] %s4457_s26  ;;  %s4481_s26 = sld [smem:[#allocation8 + $0x57]] }
 0x1a0   : > { %v4364_v35 = vmul.f32 %v629_v3, %v3761_v0  ;;  %v4367_v60 = vmul.f32 %v629_v3, %v3766_v2  ;;  %v4376_v16 = vmul.f32 %v629_v3, %v3775_v6  ;;  %v4379_v63 = vmul.f32 %v629_v3, %v3781_v8  ;;  %s6602_s21 = sld [smem:[#allocation165_spill]]  ;;  %s4577_s2 = sld [smem:[#allocation8 + $0x81]] }
 0x1a1   : > { %v4382_v0 = vmul.f32 %v2128_v21, %v3826_v54  ;;  %v4385_v2 = vmul.f32 %v3824_v1, %v2132_v20  ;;  %v4392_v6 = vmul.f32 %v2136_v34, %v3870_v56  ;;  %v4395_v8 = vmul.f32 %v3864_v55, %v2140_v15  ;;  %6588 = sst [smem:[#allocation183_spill]] %s4535_s16  ;;  %s4585_s6 = sld [smem:[#allocation8 + $0x82]] }
 0x1a2   : > { %6510 = vst [vmem:[#allocation144_spill] sm:$0xff] %v4364_v35  ;;  %6511 = vst [vmem:[#allocation145_spill] sm:$0xff] %v4367_v60  ;;  %v2340_v3 = vstv %s4151_s18  ;;  %v2344_v21 = vstv %s6509_s3  ;;  %s4415_s3 = sld [smem:[#allocation8 + $0x52]]  ;;  %v4432_v34 = vmul.f32 %v2348_v5, %v3870_v56  ;;  %v4435_v15 = vmul.f32 %v3864_v55, %v2352_v62  ;;  %s6550_s18 = sld [smem:[#allocation133_spill]] }
 0x1a3   : > { %6517 = vst [vmem:[#allocation147_spill] sm:$0xff] %v4376_v16  ;;  %6518 = vst [vmem:[#allocation148_spill] sm:$0xff] %v4379_v63  ;;  %v4422_v57 = vmul.f32 %v2340_v3, %v3826_v54  ;;  %v4425_v53 = vmul.f32 %v3824_v1, %v2344_v21  ;;  %v2552_v20 = vstv %s4205_s5  ;;  %v2556_v3 = vstv %s4207_s17  ;;  %6555 = sst [smem:[#allocation133_spill]] %s4467_s24  ;;  %s6576_s5 = sld [smem:[#allocation143_spill]] }
 0x1a4   : > { %6525 = vst [vmem:[#allocation150_spill] sm:$0xff] %v4392_v6  ;;  %6526 = vst [vmem:[#allocation151_spill] sm:$0xff] %v4395_v8  ;;  %v4462_v50 = vmul.f32 %v2552_v20, %v3826_v54  ;;  %v4465_v49 = vmul.f32 %v3824_v1, %v2556_v3  ;;  %v4472_v5 = vmul.f32 %v2560_v58, %v3870_v56  ;;  %v958_v21 = vstv %s4271_s27  ;;  %s4495_s27 = sld [smem:[#allocation8 + $0x5a]]  ;;  %s4509_s17 = sld [smem:[#allocation8 + $0x5d]] }
 0x1a5   : > { %6536 = vst [vmem:[#allocation158_spill] sm:$0xff] %v4422_v57  ;;  %6537 = vst [vmem:[#allocation159_spill] sm:$0xff] %v4425_v53  ;;  %v4475_v62 = vmul.f32 %v3864_v55, %v2564_v61  ;;  %v962_v20 = vstv %s4273_s4  ;;  %s4497_s4 = sld [smem:[#allocation8 + $0x5b]]  ;;  %v4502_v46 = vmul.f32 %v958_v21, %v3826_v54  ;;  %v4512_v61 = vmul.f32 %v966_v51, %v3870_v56  ;;  %6581 = sst [smem:[#allocation143_spill]] %s4519_s28 }
 0x1a6   : > { %6541 = vst [vmem:[#allocation162_spill] sm:$0xff] %v4432_v34  ;;  %6542 = vst [vmem:[#allocation163_spill] sm:$0xff] %v4435_v15  ;;  %v4505_v45 = vmul.f32 %v3824_v1, %v962_v20  ;;  %v1177_v21 = vstv %s6574_s29  ;;  %s4537_s28 = sld [smem:[#allocation8 + $0x7b]]  ;;  %s4557_s29 = sld [smem:[#allocation8 + $0x7e]]  ;;  %v1038_v40 = vstv %s6602_s21  ;;  %v1385_v4 = vstv %s4481_s26 }
 0x1a7   : > { %6551 = vst [vmem:[#allocation167_spill] sm:$0xff] %v4462_v50  ;;  %6553 = vst [vmem:[#allocation168_spill] sm:$0xff] %v4465_v49  ;;  %v4560_v43 = vmul.f32 %v1177_v21, %v3870_v56  ;;  %s6603_s24 = sld [smem:[#allocation166_spill]]  ;;  %s4591_s22 = sld [smem:[#allocation8 + $0x62]]  ;;  %v1381_v21 = vstv %s4479_s0  ;;  %v4612_v39 = vmul.f32 %v1006_v44, %v4364_v35  ;;  %v4615_v36 = vmul.f32 %v1010_v48, %v4367_v60 }
 0x1a8   : > { %6534 = sst [smem:[#allocation156_spill]] %s4415_s3  ;;  %6559 = vst [vmem:[#allocation170_spill] sm:$0xff] %v4472_v5  ;;  %6560 = vst [vmem:[#allocation171_spill] sm:$0xff] %v4475_v62  ;;  %v970_v52 = vstv %s6550_s18  ;;  %s4593_s10 = sld [smem:[#allocation8 + $0x83]]  ;;  %v4624_v32 = vmul.f32 %v1014_v47, %v4376_v16  ;;  %v6699_v62 = vsub.s32 6, %v3808_v18 }
 0x1a9   : > { %6569 = vst [vmem:[#allocation176_spill] sm:$0xff] %v4502_v46  ;;  %6571 = vst [vmem:[#allocation177_spill] sm:$0xff] %v4505_v45  ;;  %v4515_v58 = vmul.f32 %v3864_v55, %v970_v52  ;;  %v1181_v3 = vstv %s6576_s5  ;;  %s4555_s5 = sld [smem:[#allocation8 + $0x7d]]  ;;  %s6606_s18 = sld [smem:[#allocation172_spill]] }
 0x1aa   : > { %6567 = sst [smem:[#allocation174_spill]] %s4495_s27  ;;  %6577 = vst [vmem:[#allocation179_spill] sm:$0xff] %v4512_v61  ;;  %6598 = vst [vmem:[#allocation188_spill] sm:$0xff] %v4560_v43  ;;  %v4563_v52 = vmul.f32 %v3864_v55, %v1181_v3  ;;  %s4567_s27 = sld [smem:[#allocation8 + $0x3b]]  ;;  %v1018_v3 = vstv %s6601_s30 }
 0x1ab   : > { %6568 = sst [smem:[#allocation175_spill]] %s4497_s4  ;;  %6578 = vst [vmem:[#allocation180_spill] sm:$0xff] %v4515_v58  ;;  %s4521_s4 = sld [smem:[#allocation8 + $0x5f]]  ;;  %6613 = vst [vmem:[#allocation190_spill] sm:$0xff] %v4612_v39 }
 0x1ac   : > { %6575 = sst [smem:[#allocation142_spill]] %s4509_s17  ;;  %6599 = vst [vmem:[#allocation189_spill] sm:$0xff] %v4563_v52  ;;  %s4569_s17 = sld [smem:[#allocation8 + $0x7f]]  ;;  %6614 = vst [vmem:[#allocation191_spill] sm:$0xff] %v4615_v36  ;;  %v4627_v52 = vmul.f32 %v1018_v3, %v4379_v63 }
 0x1ad   : > { %6597 = sst [smem:[#allocation187_spill]] %s4557_s29  ;;  %s6604_s29 = sld [smem:[#allocation133_spill]]  ;;  %v1042_v51 = vstv %s6603_s24  ;;  %6617 = vst [vmem:[#allocation192_spill] sm:$0xff] %v4624_v32 }
 0x1ae   : > { %6607 = sst [smem:[#allocation164_spill]] %s4593_s10  ;;  %s6608_s8 = sld [smem:[#allocation173_spill]]  ;;  %6618 = vst [vmem:[#allocation193_spill] sm:$0xff] %v4627_v52 }
 0x1af   : > { %6596 = sst [smem:[#allocation186_spill]] %s4555_s5  ;;  %s6605_s5 = sld [smem:[#allocation169_spill]]  ;;  %v1389_v38 = vstv %s6606_s18 }
 0x1b0   : > { %s4599_s3 = sld [smem:[#allocation8 + $0x84]]  ;;  %s6610_s7 = sld [smem:[#allocation26_spill]]  ;;  %v1225_v32 = vstv %s4567_s27 }
 0x1b1   : > { %6583 = sst [smem:[#allocation181_spill]] %s4521_s4  ;;  %s4581_s4 = sld [smem:[#allocation8 + $0x3c]]  ;;  %v4724_v39 = vmul.f32 %v1225_v32, %v4376_v16 }
 0x1b2   : > { %s4601_s11 = sld [smem:[#allocation8 + $0x85]]  ;;  %s4607_s23 = sld [smem:[#allocation8 + $0x63]] }
 0x1b3   : > { %v1046_v20 = vstv %s6604_s29  ;;  %s4609_s15 = sld [smem:[#allocation8 + $0x86]]  ;;  %s4619_s24 = sld [smem:[#allocation8 + $0x87]]  ;;  %6642 = vst [vmem:[#allocation208_spill] sm:$0xff] %v4724_v39 }
 0x1b4   : > { %v1393_v33 = vstv %s6608_s8  ;;  %s4621_s20 = sld [smem:[#allocation8 + $0x88]]  ;;  %s4641_s30 = sld [smem:[#allocation8 + $0x64]] }
 0x1b5   : > { %v1050_v37 = vstv %s6605_s5  ;;  %s4643_s8 = sld [smem:[#allocation8 + $0x89]]  ;;  %s4663_s14 = sld [smem:[#allocation8 + $0x8a]] }
 0x1b6   : > { %6609 = sst [smem:[#allocation165_spill]] %s4599_s3  ;;  %v4630_v43 = vld [vmem:[%s6610_s7] sm:$0xff]  ;;  %v4636_v48 = vld [vmem:[%s6610_s7 + $0x8] sm:$0xff]  ;;  %v4646_v47 = vld [vmem:[%s6610_s7 + $0x10] sm:$0xff]  ;;  %s4693_s21 = sld [smem:[#allocation8 + $0xa8]] }
 0x1b7   : > { %v4633_v44 = vmul.f32 %v4630_v43, %v1038_v40  ;;  %v4639_v36 = vmul.f32 %v4636_v48, %v1042_v51  ;;  %v4649_v3 = vmul.f32 %v4646_v47, %v1046_v20  ;;  %v4652_v40 = vld [vmem:[%s6610_s7 + $0x18] sm:$0xff]  ;;  %v4658_v51 = vmul.f32 %v1381_v21, %v3826_v54  ;;  %6634 = sst [smem:[#allocation202_spill]] %s4665_s19  ;;  %s4675_s7 = sld [smem:[#allocation8 + $0x65]] }
 0x1b8   : > { %6611 = sst [smem:[#allocation166_spill]] %s4601_s11  ;;  %6628 = vst [vmem:[#allocation197_spill] sm:$0xff] %v4652_v40  ;;  %v1217_v20 = vstv %s4527_s1  ;;  %s4683_s1 = sld [smem:[#allocation8 + $0xa6]] }
 0x1b9   : > { %6612 = sst [smem:[#allocation133_spill]] %s4609_s15  ;;  %6619 = vst [vmem:[#allocation194_spill] sm:$0xff] %v4633_v44  ;;  %6621 = vst [vmem:[#allocation195_spill] sm:$0xff] %v4639_v36  ;;  %v4655_v44 = vmul.f32 %v4652_v40, %v1050_v37  ;;  %v4661_v36 = vmul.f32 %v3824_v1, %v1385_v4  ;;  %v4672_v37 = vmul.f32 %v3864_v55, %v1393_v33  ;;  %s4685_s19 = sld [smem:[#allocation8 + $0xa7]]  ;;  %v1221_v33 = vstv %s4543_s25 }
 0x1ba   : > { %6615 = sst [smem:[#allocation169_spill]] %s4619_s24  ;;  %6626 = vst [vmem:[#allocation196_spill] sm:$0xff] %v4649_v3  ;;  %6630 = vst [vmem:[#allocation199_spill] sm:$0xff] %v4658_v51  ;;  %v4669_v3 = vmul.f32 %v1389_v38, %v3870_v56  ;;  %s4691_s0 = sld [smem:[#allocation8 + $0x8b]]  ;;  %v4696_v52 = vmul.f32 %v1217_v20, %v4364_v35  ;;  %v1597_v4 = vstv %s4575_s13  ;;  %v1601_v38 = vstv %s4577_s2 }
 0x1bb   : > { %6616 = sst [smem:[#allocation172_spill]] %s4621_s20  ;;  %6629 = vst [vmem:[#allocation198_spill] sm:$0xff] %v4655_v44  ;;  %6631 = vst [vmem:[#allocation200_spill] sm:$0xff] %v4661_v36  ;;  %s4699_s18 = sld [smem:[#allocation8 + $0x41]]  ;;  %v1593_v44 = vstv %s4569_s17  ;;  %v4714_v20 = vmul.f32 %v1221_v33, %v4367_v60  ;;  %v4731_v33 = vmul.f32 %v3824_v1, %v1597_v4  ;;  %v1433_v36 = vstv %s4607_s23 }
 0x1bc   : > { %6623 = sst [smem:[#allocation173_spill]] %s4643_s8  ;;  %6635 = vst [vmem:[#allocation203_spill] sm:$0xff] %v4669_v3  ;;  %6636 = vst [vmem:[#allocation204_spill] sm:$0xff] %v4672_v37  ;;  %s4677_s8 = sld [smem:[#allocation8 + $0xa5]]  ;;  %v1605_v37 = vstv %s4585_s6  ;;  %v1429_v3 = vstv %s4591_s22  ;;  %v4728_v51 = vmul.f32 %v1593_v44, %v3826_v54  ;;  %v4741_v32 = vmul.f32 %v1601_v38, %v3870_v56 }
 0x1bd   : > { %6633 = sst [smem:[#allocation201_spill]] %s4663_s14  ;;  %6638 = vst [vmem:[#allocation206_spill] sm:$0xff] %v4696_v52  ;;  %s4703_s25 = sld [smem:[#allocation8 + $0xa9]]  ;;  %6641 = vst [vmem:[#allocation207_spill] sm:$0xff] %v4714_v20  ;;  %v1229_v52 = vstv %s4581_s4  ;;  %v4744_v44 = vmul.f32 %v3864_v55, %v1605_v37  ;;  %v4753_v39 = vmul.f32 %v1429_v3, %v4364_v35  ;;  %v1437_v20 = vstv %s4641_s30 }
 0x1be   : > { %s4709_s16 = sld [smem:[#allocation8 + $0x8c]]  ;;  %s4717_s27 = sld [smem:[#allocation8 + $0x42]]  ;;  %6643 = vst [vmem:[#allocation209_spill] sm:$0xff] %v4728_v51  ;;  %6644 = vst [vmem:[#allocation210_spill] sm:$0xff] %v4731_v33  ;;  %v4750_v4 = vmul.f32 %v1229_v52, %v4379_v63  ;;  %v1441_v37 = vstv %s4675_s7  ;;  %v4770_v3 = vmul.f32 %v1433_v36, %v4367_v60  ;;  %v4780_v21 = vmul.f32 %v1437_v20, %v4376_v16 }
 0x1bf   : > { %6637 = sst [smem:[#allocation205_spill]] %s4685_s19  ;;  %s4721_s13 = sld [smem:[#allocation8 + $0xab]]  ;;  %6646 = vst [vmem:[#allocation212_spill] sm:$0xff] %v4741_v32  ;;  %6647 = vst [vmem:[#allocation213_spill] sm:$0xff] %v4744_v44  ;;  %v4790_v33 = vmul.f32 %v1441_v37, %v4379_v63  ;;  %v1813_v36 = vstv %s4711_s12  ;;  %v6664_v32 = vsub.s32 1, %v3808_v18  ;;  %v6666_v38 = vsub.s32 2, %v3808_v18 }
 0x1c0   : > { %s4733_s17 = sld [smem:[#allocation8 + $0x8d]]  ;;  %s4735_s4 = sld [smem:[#allocation8 + $0xac]]  ;;  %6650 = vst [vmem:[#allocation215_spill] sm:$0xff] %v4750_v4  ;;  %6651 = vst [vmem:[#allocation216_spill] sm:$0xff] %v4753_v39  ;;  %v1641_v4 = vstv %s4691_s0  ;;  %v1805_v39 = vstv %s4693_s21 }
 0x1c1   : > { %s4737_s2 = sld [smem:[#allocation8 + $0x43]]  ;;  %s4747_s22 = sld [smem:[#allocation8 + $0xad]]  ;;  %6655 = vst [vmem:[#allocation218_spill] sm:$0xff] %v4770_v3  ;;  %6657 = vst [vmem:[#allocation220_spill] sm:$0xff] %v4780_v21  ;;  %v1249_v21 = vstv %s4699_s18 }
 0x1c2   : > { %s4757_s23 = sld [smem:[#allocation8 + $0x8e]]  ;;  %s6652_s29 = sld [smem:[#allocation202_spill]]  ;;  %6659 = vst [vmem:[#allocation222_spill] sm:$0xff] %v4790_v33  ;;  %v6662_v33 = vsub.s32 0, %v3808_v18 }
 0x1c3   : > { %s4759_s26 = sld [smem:[#allocation8 + $0xae]]  ;;  %s4761_s10 = sld [smem:[#allocation8 + $0x44]]  ;;  %v1809_v3 = vstv %s4703_s25 }
 0x1c4   : > { %s4767_s5 = sld [smem:[#allocation8 + $0xaf]]  ;;  %s4772_s30 = sld [smem:[#allocation8 + $0x6a]]  ;;  %v1645_v52 = vstv %s4709_s16  ;;  %v1253_v61 = vstv %s4717_s27 }
 0x1c5   : > { %s4777_s3 = sld [smem:[#allocation8 + $0xb0]]  ;;  %s4782_s7 = sld [smem:[#allocation8 + $0x6b]]  ;;  %v1817_v42 = vstv %s4721_s13 }
 0x1c6   : > { %6645 = sst [smem:[#allocation211_spill]] %s4735_s4  ;;  %s4787_s24 = sld [smem:[#allocation8 + $0xb1]] }
 0x1c7   : > { %6648 = sst [smem:[#allocation214_spill]] %s4747_s22  ;;  %s4795_s14 = sld [smem:[#allocation8 + $0xb2]] }
 0x1c8   : > { %s4797_s6 = sld [smem:[#allocation8 + $0xb3]]  ;;  %s4805_s20 = sld [smem:[#allocation8 + $0xb4]] }
 0x1c9   : > { %6653 = sst [smem:[#allocation202_spill]] %s4759_s26  ;;  %s4807_s15 = sld [smem:[#allocation8 + $0xb5]] }
 0x1ca   : > { %6654 = sst [smem:[#allocation217_spill]] %s4767_s5  ;;  %s4821_s16 = sld [smem:[#allocation8 + $0x6c]] }
 0x1cb   : > { %6656 = sst [smem:[#allocation219_spill]] %s4777_s3  ;;  %s4841_s0 = sld [smem:[#allocation8 + $0xb7]] }
 0x1cc   : > { %6658 = sst [smem:[#allocation221_spill]] %s4787_s24  ;;  %s4829_s12 = sld [smem:[#allocation8 + $0xb6]] }
 0x1cd   : > { %6660 = sst [smem:[#allocation223_spill]] %s4795_s14  ;;  %s4843_s21 = sld [smem:[#allocation8 + $0xcd]] }
 0x1ce   : > { %6661 = sst [smem:[#allocation224_spill]] %s4797_s6  ;;  %s4848_s18 = sld [smem:[#allocation8 + $0x6d]] }
 0x1cf   : > { %s4854_s25 = sld [smem:[#allocation8 + $0x93]]  ;;  %s4869_s27 = sld [smem:[#allocation8 + $0xce]] }
 0x1d0   : > { %s4871_s13 = sld [smem:[#allocation8 + $0xcf]]  ;;  %s4891_s11 = sld [smem:[#allocation8 + $0xd3]] }
 0x1d1   : > { %s4919_s5 = sld [smem:[#allocation8 + $0xd5]]  ;;  %s4927_s26 = sld [smem:[#allocation8 + $0xd6]]  ;;  %v1865_v45 = vstv %s4841_s0 }
 0x1d2   : > { %s4929_s22 = sld [smem:[#allocation8 + $0xd7]]  ;;  %s4949_s6 = sld [smem:[#allocation8 + $0xd8]] }
 0x1d3   : > { %s4955_s14 = sld [smem:[#allocation8 + $0xd9]]  ;;  %s4957_s24 = sld [smem:[#allocation8 + $0xda]] }
 0x1d4   : > { %s4997_s0 = sld [smem:[#allocation8 + $0xde]]  ;;  %s5023_s4 = sld [smem:[#allocation8 + $0xe0]] }
 0x1d5   : > { %s5019_s3 = sld [smem:[#allocation8 + $0xbe]]  ;;  %s5028_s19 = sld [smem:[#allocation8 + $0xdc]] }
 0x1db   : > { %6710 = sst [smem:[#allocation260_spill]] %s5028_s19  ;;  %s6760_s19 = sld [smem:[#allocation69_spill]] }
 0x1e1   : > { %v6781_v50 = vstv %s6760_s19  ;;  %s6792_s19 = sld [smem:[#allocation78_spill]] }
 0x21b   : > { %v4799_v20 = vpop.f32.mrb[0].mxu0 }
 0x21c   : > { %v4809_v37 = vpop.f32.mrb[1].mxu0  ;;  %v4814_v44 = vrot.slane %v4799_v20, %v6662_v33  ;;  %v4819_v51 = vrot.slane %v4799_v20, %v6664_v32  ;;  %v4826_v58 = vrot.slane %v4799_v20, %v6666_v38  ;;  %v4833_v33 = vmul.f32 %v1641_v4, %v4364_v35 }
 0x21d   : > { %v4839_v32 = vmul.f32 %v3824_v1, %v1809_v3  ;;  %v4846_v38 = vmul.f32 %v4630_v43, %v1249_v21  ;;  %v4851_v4 = vmul.f32 %v1645_v52, %v4367_v60  ;;  %v4857_v3 = vmul.f32 %v1813_v36, %v3870_v56 }
 0x21e   : > { %6663 = vst [vmem:[#allocation225_spill] sm:$0xff] %v4814_v44  ;;  %6665 = vst [vmem:[#allocation226_spill] sm:$0xff] %v4819_v51  ;;  %v4836_v44 = vmul.f32 %v1805_v39, %v3826_v54  ;;  %v1649_v39 = vstv %s4733_s17  ;;  %v1653_v51 = vstv %s4757_s23  ;;  %v4874_v52 = vmul.f32 %v4636_v48, %v1253_v61  ;;  %s4879_s17 = sld [smem:[#allocation8 + $0xd0]]  ;;  %s4889_s23 = sld [smem:[#allocation8 + $0xd2]] }
 0x21f   : > { %6667 = vst [vmem:[#allocation227_spill] sm:$0xff] %v4826_v58  ;;  %6668 = vst [vmem:[#allocation228_spill] sm:$0xff] %v4833_v33  ;;  %v1257_v58 = vstv %s4737_s2  ;;  %v6674_v33 = vsub.s32 3, %v3808_v18  ;;  %v1261_v36 = vstv %s4761_s10  ;;  %s4881_s2 = sld [smem:[#allocation8 + $0xd1]]  ;;  %s4899_s10 = sld [smem:[#allocation8 + $0x94]] }
 0x220   : > { %6669 = vst [vmem:[#allocation229_spill] sm:$0xff] %v4836_v44  ;;  %6670 = vst [vmem:[#allocation230_spill] sm:$0xff] %v4839_v32  ;;  %v4894_v61 = vmul.f32 %v4646_v47, %v1257_v58  ;;  %v6697_v44 = vsub.s32 5, %v3808_v18 }
 0x221   : > { %6671 = vst [vmem:[#allocation231_spill] sm:$0xff] %v4846_v38  ;;  %6672 = vst [vmem:[#allocation232_spill] sm:$0xff] %v4851_v4  ;;  %v4864_v21 = vrot.slane %v4799_v20, %v6674_v33  ;;  %v4867_v38 = vmul.f32 %v3864_v55, %v1817_v42  ;;  %v1461_v4 = vstv %s4772_s30  ;;  %v1465_v33 = vstv %s4782_s7  ;;  %s4907_s30 = sld [smem:[#allocation8 + $0xd4]]  ;;  %s4915_s7 = sld [smem:[#allocation8 + $0x95]] }
 0x222   : > { %6673 = vst [vmem:[#allocation233_spill] sm:$0xff] %v4857_v3  ;;  %6677 = vst [vmem:[#allocation236_spill] sm:$0xff] %v4874_v52  ;;  %v4885_v42 = vmul.f32 %v1649_v39, %v4376_v16  ;;  %v4897_v3 = vmul.f32 %v1653_v51, %v4379_v63  ;;  %v6682_v39 = vsub.s32 4, %v3808_v18  ;;  %v4913_v58 = vmul.f32 %v4630_v43, %v1461_v4 }
 0x223   : > { %6675 = vst [vmem:[#allocation234_spill] sm:$0xff] %v4864_v21  ;;  %6676 = vst [vmem:[#allocation235_spill] sm:$0xff] %v4867_v38  ;;  %v4910_v21 = vmul.f32 %v4652_v40, %v1261_v36  ;;  %v1853_v36 = vstv %s4805_s20  ;;  %v6687_v4 = vsub.s32 0, %v3808_v18  ;;  %v6689_v52 = vsub.s32 1, %v3808_v18  ;;  %s4947_s20 = sld [smem:[#allocation8 + $0x96]] }
 0x224   : > { %6678 = sst [smem:[#allocation237_spill]] %s4879_s17  ;;  %6679 = vst [vmem:[#allocation238_spill] sm:$0xff] %v4885_v42  ;;  %6680 = vst [vmem:[#allocation239_spill] sm:$0xff] %v4894_v61  ;;  %v4905_v38 = vrot.slane %v4799_v20, %v6682_v39  ;;  %v4922_v39 = vmul.f32 %v4636_v48, %v1465_v33  ;;  %v6691_v33 = vsub.s32 2, %v3808_v18  ;;  %v4972_v41 = vrot.slane %v4809_v37, %v6697_v44  ;;  %s5085_s17 = sld [smem:[#allocation8 + $0xfc]] }
 0x225   : > { %6681 = vst [vmem:[#allocation240_spill] sm:$0xff] %v4897_v3  ;;  %6684 = vst [vmem:[#allocation242_spill] sm:$0xff] %v4910_v21  ;;  %v4934_v51 = vrot.slane %v4809_v37, %v6687_v4  ;;  %v4939_v21 = vrot.slane %v4809_v37, %v6689_v52  ;;  %v1857_v3 = vstv %s4807_s15  ;;  %v1861_v4 = vstv %s4829_s12  ;;  %s4975_s15 = sld [smem:[#allocation8 + $0xbc]]  ;;  %s4995_s12 = sld [smem:[#allocation8 + $0xdd]] }
 0x226   : > { %6683 = vst [vmem:[#allocation241_spill] sm:$0xff] %v4905_v38  ;;  %6685 = vst [vmem:[#allocation243_spill] sm:$0xff] %v4913_v58  ;;  %v4944_v61 = vrot.slane %v4809_v37, %v6691_v33  ;;  %v1469_v38 = vstv %s4821_s16  ;;  %v1673_v58 = vstv %s4854_s25  ;;  %v6693_v52 = vsub.s32 3, %v3808_v18  ;;  %s4977_s16 = sld [smem:[#allocation8 + $0xdb]]  ;;  %s5013_s25 = sld [smem:[#allocation8 + $0xdf]] }
 0x227   : > { %6686 = vst [vmem:[#allocation244_spill] sm:$0xff] %v4922_v39  ;;  %6688 = vst [vmem:[#allocation245_spill] sm:$0xff] %v4934_v51  ;;  %v1473_v39 = vstv %s4848_s18  ;;  %v6695_v33 = vsub.s32 4, %v3808_v18  ;;  %v4990_v44 = vmul.f32 %v4646_v47, %v1469_v38  ;;  %v4993_v5 = vmul.f32 %v1853_v36, %v4364_v35  ;;  %s5011_s18 = sld [smem:[#allocation8 + $0xbd]] }
 0x228   : > { %6690 = vst [vmem:[#allocation246_spill] sm:$0xff] %v4939_v21  ;;  %6692 = vst [vmem:[#allocation247_spill] sm:$0xff] %v4944_v61  ;;  %v4962_v42 = vrot.slane %v4809_v37, %v6693_v52  ;;  %v4982_v52 = vrot.slane %v4809_v37, %v6699_v62  ;;  %v5000_v62 = vmul.f32 %v4652_v40, %v1473_v39  ;;  %v1677_v36 = vstv %s4899_s10  ;;  %s5035_s10 = sld [smem:[#allocation8 + $0xfa]] }
 0x229   : > { %v4967_v32 = vrot.slane %v4809_v37, %v6695_v33  ;;  %6698 = vst [vmem:[#allocation250_spill] sm:$0xff] %v4972_v41  ;;  %v6701_v33 = vsub.s32 7, %v3808_v18  ;;  %6703 = vst [vmem:[#allocation253_spill] sm:$0xff] %v4990_v44  ;;  %v5009_v38 = vmul.f32 %v1861_v4, %v4376_v16  ;;  %v5017_v39 = vmul.f32 %v1865_v45, %v4379_v63 }
 0x22a   : > { %6694 = vst [vmem:[#allocation248_spill] sm:$0xff] %v4962_v42  ;;  %6700 = vst [vmem:[#allocation251_spill] sm:$0xff] %v4982_v52  ;;  %v5003_v52 = vmul.f32 %v4630_v43, %v1673_v58  ;;  %v2017_v58 = vstv %s4881_s2  ;;  %v1681_v4 = vstv %s4915_s7  ;;  %s5041_s2 = sld [smem:[#allocation8 + $0xf6]]  ;;  %s5062_s7 = sld [smem:[#allocation8 + $0xbf]] }
 0x22b   : > { %6696 = vst [vmem:[#allocation249_spill] sm:$0xff] %v4967_v32  ;;  %v4987_v46 = vrot.slane %v4809_v37, %v6701_v33  ;;  %6704 = vst [vmem:[#allocation254_spill] sm:$0xff] %v4993_v5  ;;  %v5006_v37 = vmul.f32 %v1857_v3, %v4367_v60  ;;  %v2021_v3 = vstv %s4889_s23  ;;  %s5043_s23 = sld [smem:[#allocation8 + $0xf7]]  ;;  %v5046_v33 = vmul.f32 %v4636_v48, %v1677_v36  ;;  %6729 = sst [smem:[#allocation276_spill]] %s5085_s17 }
 0x22c   : > { %6705 = vst [vmem:[#allocation255_spill] sm:$0xff] %v5000_v62  ;;  %6706 = vst [vmem:[#allocation256_spill] sm:$0xff] %v5003_v52  ;;  %v2025_v52 = vstv %s4891_s11  ;;  %v6711_v62 = vsub.s32 5, %v3808_v18  ;;  %v1685_v5 = vstv %s4947_s20  ;;  %v5053_v45 = vmul.f32 %v3824_v1, %v2021_v3  ;;  %s5055_s11 = sld [smem:[#allocation8 + $0xf8]]  ;;  %s5067_s20 = sld [smem:[#allocation8 + $0xfb]] }
 0x22d   : > { %6702 = vst [vmem:[#allocation252_spill] sm:$0xff] %v4987_v46  ;;  %6707 = vst [vmem:[#allocation257_spill] sm:$0xff] %v5006_v37  ;;  %v2029_v37 = vstv %s4907_s30  ;;  %s5057_s30 = sld [smem:[#allocation8 + $0xf9]]  ;;  %v5065_v36 = vmul.f32 %v2025_v52, %v3870_v56  ;;  %v2069_v56 = vstv %s4997_s0  ;;  %v1893_v52 = vstv %s5019_s3  ;;  %s6737_s3 = sld [smem:[#allocation34_spill]] }
 0x22e   : > { %6708 = vst [vmem:[#allocation258_spill] sm:$0xff] %v5009_v38  ;;  %6709 = vst [vmem:[#allocation259_spill] sm:$0xff] %v5017_v39  ;;  %v5033_v44 = vrot.slane %v4799_v20, %v6711_v62  ;;  %v5050_v62 = vmul.f32 %v2017_v58, %v3826_v54  ;;  %v5060_v38 = vmul.f32 %v4646_v47, %v1681_v4  ;;  %v6724_v58 = vsub.s32 6, %v3808_v18  ;;  %s6743_s0 = sld [smem:[#allocation38_spill]]  ;;  %s6762_s17 = sld [smem:[#allocation74_spill]] }
 0x22f   : > { %6715 = vst [vmem:[#allocation264_spill] sm:$0xff] %v5046_v33  ;;  %6717 = vst [vmem:[#allocation266_spill] sm:$0xff] %v5053_v45  ;;  %v6726_v39 = vsub.s32 7, %v3808_v18 }
 0x230   : > { %6712 = vst [vmem:[#allocation261_spill] sm:$0xff] %v5033_v44  ;;  %6713 = sst [smem:[#allocation262_spill]] %s5041_s2  ;;  %6716 = vst [vmem:[#allocation265_spill] sm:$0xff] %v5050_v62  ;;  %v5072_v3 = vrot.slane %v4799_v20, %v6724_v58  ;;  %v1885_v44 = vstv %s4975_s15  ;;  %v5088_v58 = vmul.f32 %v4652_v40, %v1685_v5  ;;  %v2077_v5 = vstv %s5023_s4  ;;  %s6739_s4 = sld [smem:[#allocation35_spill]] }
 0x231   : > { %6714 = sst [smem:[#allocation263_spill]] %s5043_s23  ;;  %6720 = vst [vmem:[#allocation269_spill] sm:$0xff] %v5060_v38  ;;  %6722 = vst [vmem:[#allocation271_spill] sm:$0xff] %v5065_v36  ;;  %v5077_v4 = vrot.slane %v4799_v20, %v6726_v39  ;;  %v5081_v38 = vmul.f32 %v3864_v55, %v2029_v37  ;;  %v2065_v39 = vstv %s4995_s12  ;;  %v2073_v37 = vstv %s5013_s25  ;;  %s6741_s15 = sld [smem:[#allocation61_spill]] }
 0x232   : > { %6718 = sst [smem:[#allocation267_spill]] %s5055_s11  ;;  %6725 = vst [vmem:[#allocation273_spill] sm:$0xff] %v5072_v3  ;;  %6730 = vst [vmem:[#allocation277_spill] sm:$0xff] %v5088_v58  ;;  %v5097_v55 = vpop.f32.mrb[2].mxu0  ;;  %v5100_v33 = vmul.f32 %v4630_v43, %v1885_v44  ;;  %v5108_v3 = vmul.f32 %v2065_v39, %v4364_v35  ;;  %v5115_v44 = vmul.f32 %v2069_v56, %v4367_v60  ;;  %s6742_s12 = sld [smem:[#allocation75_spill]] }
 0x233   : > { %6719 = sst [smem:[#allocation268_spill]] %s5057_s30  ;;  %6727 = vst [vmem:[#allocation274_spill] sm:$0xff] %v5077_v4  ;;  %6728 = vst [vmem:[#allocation275_spill] sm:$0xff] %v5081_v38  ;;  %v1889_v4 = vstv %s5011_s18  ;;  %v3178_v18 = vpop.f32.mrb[3].mxu0  ;;  %v2229_v38 = vstv %s5035_s10  ;;  %v5118_v1 = vmul.f32 %v2073_v37, %v4376_v16  ;;  %v5125_v39 = vmul.f32 %v2077_v5, %v4379_v63  ;;  %s6744_s18 = sld [smem:[#allocation36_spill]] }
 0x234   : > { %6721 = sst [smem:[#allocation270_spill]] %s5062_s7  ;;  %6731 = vst [vmem:[#allocation278_spill] sm:$0xff] %v5097_v55  ;;  %6732 = vst [vmem:[#allocation279_spill] sm:$0xff] %v5100_v33  ;;  %v5112_v36 = vmul.f32 %v4636_v48, %v1889_v4  ;;  %v5122_v18 = vmul.f32 %v4646_v47, %v1893_v52  ;;  %s6745_s25 = sld [smem:[#allocation39_spill]]  ;;  %v5134_v33 = vmul.f32 %v2229_v38, %v3826_v54  ;;  %v6755_v58 = vstv %s6737_s3 }
 0x235   : > { %6723 = sst [smem:[#allocation272_spill]] %s5067_s20  ;;  %6733 = vst [vmem:[#allocation280_spill] sm:$0xff] %v5108_v3  ;;  %6735 = vst [vmem:[#allocation282_spill] sm:$0xff] %v5115_v44  ;;  %v5129_v20 = vpop.f32.mrb[4].mxu1  ;;  %s6747_s10 = sld [smem:[#allocation51_spill]]  ;;  %v5139_v5 = vmul.f32 %v4630_v43, %v5097_v55  ;;  %v5143_v4 = vmul.f32 %v4636_v48, %v5097_v55  ;;  %v5147_v56 = vmul.f32 %v4646_v47, %v5097_v55  ;;  %v6763_v54 = vstv %s6743_s0 }
 0x236   : > { %6734 = vst [vmem:[#allocation281_spill] sm:$0xff] %v5112_v36  ;;  %6736 = vst [vmem:[#allocation283_spill] sm:$0xff] %v5118_v1  ;;  %s6749_s23 = sld [smem:[#allocation40_spill]]  ;;  %s6751_s7 = sld [smem:[#allocation41_spill]]  ;;  %v5149_v37 = vpop.f32.mrb[5].mxu1  ;;  %v5157_v43 = vmul.f32 %v5129_v20, %v6755_v58  ;;  %v6757_v63 = vstv %s6739_s4  ;;  %v6783_v41 = vstv %s6762_s17 }
 0x237   : > { %6738 = vst [vmem:[#allocation284_spill] sm:$0xff] %v5122_v18  ;;  %6740 = vst [vmem:[#allocation285_spill] sm:$0xff] %v5125_v39  ;;  %s6753_s30 = sld [smem:[#allocation37_spill]]  ;;  %s6754_s11 = sld [smem:[#allocation50_spill]]  ;;  %v5152_v52 = vpop.f32.mrb[4].mxu0  ;;  %v5162_v48 = vmul.f32 %v5129_v20, %v6757_v63  ;;  %v6759_v16 = vstv %s6741_s15 }
 0x238   : > { %6746 = vst [vmem:[#allocation286_spill] sm:$0xff] %v5134_v33  ;;  %6748 = vst [vmem:[#allocation287_spill] sm:$0xff] %v5139_v5  ;;  %s6756_s20 = sld [smem:[#allocation60_spill]]  ;;  %v5167_v47 = vmul.f32 %v5129_v20, %v6759_v16  ;;  %v6761_v60 = vstv %s6742_s12  ;;  %v5174_v35 = vpop.f32.mrb[5].mxu0  ;;  %v1058_v58 = vmul.f32 %v5152_v52, %v6763_v54  ;;  %s6765_s3 = sld [smem:[#allocation42_spill]] }
 0x239   : > { %6750 = vst [vmem:[#allocation288_spill] sm:$0xff] %v5143_v4  ;;  %6752 = vst [vmem:[#allocation289_spill] sm:$0xff] %v5147_v56  ;;  %s6758_s2 = sld [smem:[#allocation68_spill]]  ;;  %v5172_v38 = vmul.f32 %v5129_v20, %v6761_v60  ;;  %v6764_v18 = vstv %s6744_s18  ;;  %s6768_s4 = sld [smem:[#allocation43_spill]] }
 0x23a   : > { %v5182_v63 = vmul.f32 %v6764_v18, %v5149_v37  ;;  %v6766_v36 = vstv %s6745_s25  ;;  %v5190_v44 = vpop.f32.mrb[6].mxu1  ;;  %s6770_s15 = sld [smem:[#allocation44_spill]]  ;;  %s6773_s12 = sld [smem:[#allocation67_spill]] }
 0x23b   : > { %v1269_v39 = vmul.f32 %v5152_v52, %v6766_v36  ;;  %v6767_v16 = vstv %s6747_s10  ;;  %s6775_s0 = sld [smem:[#allocation77_spill]]  ;;  %s6776_s18 = sld [smem:[#allocation48_spill]] }
 0x23c   : > { %v1481_v1 = vmul.f32 %v5152_v52, %v6767_v16  ;;  %v6769_v60 = vstv %s6749_s23  ;;  %v6771_v54 = vstv %s6751_s7  ;;  %v5206_v16 = vpop.f32.mrb[7].mxu1  ;;  %s6778_s23 = sld [smem:[#allocation46_spill]]  ;;  %s6780_s7 = sld [smem:[#allocation49_spill]]  ;;  %v5224_v15 = vpop.f32.mrb[6].mxu0 }
 0x23d   : > { %v1055_v33 = vmul.f32 %v6769_v60, %v5174_v35  ;;  %v1266_v3 = vmul.f32 %v6771_v54, %v5174_v35  ;;  %v6772_v45 = vstv %s6753_s30  ;;  %v6774_v36 = vstv %s6754_s11  ;;  %s6782_s30 = sld [smem:[#allocation52_spill]]  ;;  %s6784_s11 = sld [smem:[#allocation47_spill]] }
 0x23e   : > { %v5201_v18 = vmul.f32 %v6772_v45, %v5149_v37  ;;  %v1478_v62 = vmul.f32 %v6774_v36, %v5174_v35  ;;  %v6777_v46 = vstv %s6756_s20  ;;  %v1693_v45 = vmul.f32 %v5152_v52, %v6781_v50  ;;  %s6785_s25 = sld [smem:[#allocation53_spill]]  ;;  %s6787_s20 = sld [smem:[#allocation70_spill]]  ;;  %v5236_v50 = vpop.f32.mrb[7].mxu0 }
 0x23f   : > { %v5211_v49 = vmul.f32 %v6777_v46, %v5149_v37  ;;  %v6779_v60 = vstv %s6758_s2  ;;  %v5222_v36 = vmul.f32 %v6783_v41, %v5149_v37  ;;  %v1059_v34 = vadd.f32 %v1058_v58, %v1055_v33  ;;  %s6794_s17 = sld [smem:[#allocation71_spill]]  ;;  %s6800_s10 = sld [smem:[#allocation80_spill]] }
 0x240   : > { %v1690_v54 = vmul.f32 %v6779_v60, %v5174_v35  ;;  %v6786_v32 = vstv %s6765_s3  ;;  %v1270_v56 = vadd.f32 %v1269_v39, %v1266_v3  ;;  %v6789_v60 = vstv %s6768_s4  ;;  %s6797_s2 = sld [smem:[#allocation79_spill]]  ;;  %s6804_s3 = sld [smem:[#allocation45_spill]] }
 0x241   : > { %v5229_v46 = vmul.f32 %v5190_v44, %v6786_v32  ;;  %v5234_v4 = vmul.f32 %v5190_v44, %v6789_v60  ;;  %v6791_v5 = vstv %s6770_s15  ;;  %v1482_v53 = vadd.f32 %v1481_v1, %v1478_v62  ;;  %s6807_s4 = sld [smem:[#allocation66_spill]]  ;;  %s6809_s15 = sld [smem:[#allocation76_spill]] }
 0x242   : > { %v5241_v41 = vmul.f32 %v6791_v5, %v5206_v16  ;;  %v6793_v40 = vstv %s6773_s12  ;;  %v6796_v32 = vstv %s6775_s0  ;;  %v6799_v39 = vstv %s6776_s18  ;;  %s6811_s12 = sld [smem:[#allocation81_spill]]  ;;  %s6815_s0 = sld [smem:[#allocation87_spill]] }
 0x243   : > { %6788 = vst [vmem:[#allocation290_spill] sm:$0xff] %v5229_v46  ;;  %6790 = vst [vmem:[#allocation291_spill] sm:$0xff] %v5234_v4  ;;  %v5246_v33 = vmul.f32 %v5190_v44, %v6793_v40  ;;  %v5251_v3 = vmul.f32 %v5190_v44, %v6796_v32  ;;  %v1062_v58 = vmul.f32 %v6799_v39, %v5236_v50  ;;  %v6801_v60 = vstv %s6778_s23  ;;  %s6816_s18 = sld [smem:[#allocation88_spill]]  ;;  %s6819_s23 = sld [smem:[#allocation91_spill]] }
 0x244   : > { %v1066_v55 = vmul.f32 %v5224_v15, %v6801_v60  ;;  %v6802_v5 = vstv %s6780_s7  ;;  %v6803_v62 = vstv %s6782_s30  ;;  %v6805_v57 = vstv %s6784_s11  ;;  %s6821_s7 = sld [smem:[#allocation31_spill]]  ;;  %s6823_s30 = sld [smem:[#allocation32_spill]] }
 0x245   : > { %6795 = vst [vmem:[#allocation292_spill] sm:$0xff] %v5246_v33  ;;  %6798 = vst [vmem:[#allocation293_spill] sm:$0xff] %v5251_v3  ;;  %v1273_v1 = vmul.f32 %v6802_v5, %v5236_v50  ;;  %v1485_v40 = vmul.f32 %v6803_v62, %v5236_v50  ;;  %v1277_v42 = vmul.f32 %v5224_v15, %v6805_v57  ;;  %v6806_v61 = vstv %s6785_s25  ;;  %s6826_s11 = sld [smem:[#allocation92_spill]]  ;;  %s6828_s25 = sld [smem:[#allocation33_spill]] }
 0x246   : > { %v1489_v32 = vmul.f32 %v5224_v15, %v6806_v61  ;;  %v1694_v21 = vadd.f32 %v1693_v45, %v1690_v54  ;;  %v6808_v39 = vstv %s6787_s20  ;;  %v1063_v60 = vadd.f32 %v1062_v58, %v1059_v34  ;;  %s6830_s20 = sld [smem:[#allocation86_spill]] }
 0x247   : > { %v1697_v51 = vmul.f32 %v6808_v39, %v5236_v50  ;;  %v1274_v8 = vadd.f32 %v1273_v1, %v1270_v56  ;;  %v1486_v3 = vadd.f32 %v1485_v40, %v1482_v53  ;;  %v6810_v5 = vstv %s6792_s19  ;;  %s6832_s19 = sld [smem:[#allocation121_spill]] }
 0x248   : > { %v1902_v33 = vmul.f32 %v6810_v5, %v5174_v35  ;;  %v6812_v4 = vstv %s6794_s17  ;;  %v6813_v46 = vstv %s6797_s2  ;;  %v6814_v61 = vstv %s6800_s10  ;;  %s6834_s17 = sld [smem:[#allocation122_spill]]  ;;  %s6836_s2 = sld [smem:[#allocation125_spill]] }
 0x249   : > { %v1698_v62 = vadd.f32 %v1697_v51, %v1694_v21  ;;  %v1701_v57 = vmul.f32 %v5224_v15, %v6812_v4  ;;  %v1905_v6 = vmul.f32 %v5152_v52, %v6813_v46  ;;  %v1909_v54 = vmul.f32 %v6814_v61, %v5236_v50  ;;  %s6839_s10 = sld [smem:[#allocation126_spill]] }
 0x24a   : > { %v1067_v45 = vadd.f32 %v1066_v55, %v1063_v60  ;;  %v1278_v34 = vadd.f32 %v1277_v42, %v1274_v8  ;;  %v6817_v53 = vstv %s6804_s3  ;;  %v1490_v58 = vadd.f32 %v1489_v32, %v1486_v3  ;;  %s6842_s3 = sld [smem:[#allocation109_spill]] }
 0x24b   : > { %v1305_v56 = vmul.f32 %v6817_v53, %v5206_v16  ;;  %v6818_v1 = vstv %s6807_s4  ;;  %v1702_v51 = vadd.f32 %v1701_v57, %v1698_v62  ;;  %v6820_v4 = vstv %s6809_s15  ;;  %s6844_s4 = sld [smem:[#allocation110_spill]]  ;;  %s6850_s15 = sld [smem:[#allocation115_spill]] }
 0x24c   : > { %v1517_v21 = vmul.f32 %v6818_v1, %v5206_v16  ;;  %v1729_v40 = vmul.f32 %v6820_v4, %v5206_v16  ;;  %v1906_v46 = vadd.f32 %v1905_v6, %v1902_v33  ;;  %v1071_v39 = vadd.f32 %v4196_v30, %v1067_v45 }
 0x24d   : > { %v1282_v5 = vadd.f32 %v4202_v22, %v1278_v34  ;;  %v1494_v55 = vadd.f32 %v4221_v26, %v1490_v58  ;;  %v6822_v8 = vstv %s6811_s12  ;;  %v1706_v3 = vadd.f32 %v4284_v12, %v1702_v51  ;;  %s6852_s12 = sld [smem:[#allocation62_spill]] }
 0x24e   : > { %v1913_v42 = vmul.f32 %v5224_v15, %v6822_v8  ;;  %v1910_v32 = vadd.f32 %v1909_v54, %v1906_v46  ;;  %v6824_v60 = vstv %s6815_s0  ;;  %v6825_v57 = vstv %s6816_s18  ;;  %s6853_s0 = sld [smem:[#allocation127_spill]]  ;;  %s6857_s18 = sld [smem:[#allocation63_spill]] }
 0x24f   : > { %v2114_v62 = vmul.f32 %v6824_v60, %v5174_v35  ;;  %v2117_v61 = vmul.f32 %v5152_v52, %v6825_v57  ;;  %v1075_v30 = vadd.f32 %v4199_v29, %v1071_v39  ;;  %v1286_v22 = vadd.f32 %v4218_v25, %v1282_v5 }
 0x250   : > { %v1498_v26 = vadd.f32 %v4224_v28, %v1494_v55  ;;  %v6827_v6 = vstv %s6819_s23  ;;  %v1710_v12 = vadd.f32 %v4287_v14, %v1706_v3  ;;  %v1914_v54 = vadd.f32 %v1913_v42, %v1910_v32  ;;  %s6860_s23 = sld [smem:[#allocation138_spill]] }
 0x251   : > { %v2121_v33 = vmul.f32 %v6827_v6, %v5236_v50  ;;  %v6829_v45 = vstv %s6821_s7  ;;  %v2118_v53 = vadd.f32 %v2117_v61, %v2114_v62  ;;  %v1079_v58 = vadd.f32 %v4240_v19, %v1075_v30  ;;  %s6862_s7 = sld [smem:[#allocation139_spill]] }
 0x252   : > { %v1933_v34 = vmul.f32 %v6829_v45, %v5149_v37  ;;  %v1290_v29 = vadd.f32 %v4246_v17, %v1286_v22  ;;  %v1502_v25 = vadd.f32 %v4264_v13, %v1498_v26  ;;  %v6831_v1 = vstv %s6823_s30  ;;  %v6845_v45 = vld [vmem:[#allocation150_spill] sm:$0xff]  ;;  %s6863_s30 = sld [smem:[#allocation140_spill]] }
 0x253   : > { %v1937_v28 = vmul.f32 %v5129_v20, %v6831_v1  ;;  %v1714_v51 = vadd.f32 %v4290_v31, %v1710_v12  ;;  %v1918_v14 = vadd.f32 %v4325_v23, %v1914_v54  ;;  %v2122_v4 = vadd.f32 %v2121_v33, %v2118_v53  ;;  %v6848_v1 = vld [vmem:[#allocation292_spill] sm:$0xff] }
 0x254   : > { %v6833_v46 = vstv %s6826_s11  ;;  %v1083_v5 = vadd.f32 %v4243_v27, %v1079_v58  ;;  %v1294_v19 = vadd.f32 %v4249_v10, %v1290_v29  ;;  %v1506_v17 = vadd.f32 %v4267_v11, %v1502_v25  ;;  %v6846_v29 = vld [vmem:[#allocation290_spill] sm:$0xff]  ;;  %v6847_v25 = vld [vmem:[#allocation291_spill] sm:$0xff]  ;;  %s6867_s11 = sld [smem:[#allocation116_spill]] }
 0x255   : > { %v2125_v39 = vmul.f32 %v5224_v15, %v6833_v46  ;;  %v6835_v13 = vstv %s6828_s25  ;;  %v1718_v8 = vadd.f32 %v4293_v24, %v1714_v51  ;;  %v1922_v31 = vadd.f32 %v4328_v59, %v1918_v14  ;;  %v6855_v46 = vld [vmem:[#allocation245_spill] sm:$0xff]  ;;  %s6871_s25 = sld [smem:[#allocation128_spill]] }
 0x256   : > { %v1941_v55 = vmul.f32 %v6835_v13, %v5206_v16  ;;  %v6837_v23 = vstv %s6830_s20  ;;  %v1087_v32 = vadd.f32 %v5182_v63, %v1083_v5  ;;  %v1298_v27 = vadd.f32 %v5201_v18, %v1294_v19  ;;  %v6856_v5 = vld [vmem:[#allocation246_spill] sm:$0xff]  ;;  %s6872_s20 = sld [smem:[#allocation129_spill]] }
 0x257   : > { %v1945_v42 = vmul.f32 %v5190_v44, %v6837_v23  ;;  %v2126_v3 = vadd.f32 %v2125_v39, %v2122_v4  ;;  %v1510_v10 = vadd.f32 %v5211_v49, %v1506_v17  ;;  %v6838_v11 = vstv %s6832_s19  ;;  %v6858_v17 = vld [vmem:[#allocation247_spill] sm:$0xff]  ;;  %v6861_v23 = vld [vmem:[#allocation248_spill] sm:$0xff]  ;;  %s6873_s19 = sld [smem:[#allocation130_spill]] }
 0x258   : > { %v2326_v60 = vmul.f32 %v6838_v11, %v5174_v35  ;;  %v1722_v62 = vadd.f32 %v5222_v36, %v1718_v8  ;;  %v1926_v24 = vadd.f32 %v4336_v7, %v1922_v31  ;;  %v6840_v57 = vstv %s6834_s17  ;;  %v6865_v11 = vld [vmem:[#allocation278_spill] sm:$0xff]  ;;  %s6876_s17 = sld [smem:[#allocation56_spill]] }
 0x259   : > { %v2130_v59 = vadd.f32 %v4382_v0, %v2126_v3  ;;  %v2329_v61 = vmul.f32 %v5152_v52, %v6840_v57  ;;  %v1091_v30 = vadd.f32 %v5157_v43, %v1087_v32  ;;  %v1302_v63 = vadd.f32 %v5162_v48, %v1298_v27  ;;  %v6864_v27 = vld [vmem:[#allocation158_spill] sm:$0xff] }
 0x25a   : > { %v1514_v18 = vadd.f32 %v5167_v47, %v1510_v10  ;;  %v6841_v49 = vstv %s6836_s2  ;;  %v1726_v26 = vadd.f32 %v5172_v38, %v1722_v62  ;;  %v1930_v36 = vadd.f32 %v4339_v9, %v1926_v24  ;;  %s6879_s2 = sld [smem:[#allocation141_spill]] }
 0x25b   : > { %v2333_v22 = vmul.f32 %v6841_v49, %v5236_v50  ;;  %v2134_v7 = vadd.f32 %v4385_v2, %v2130_v59  ;;  %v2330_v0 = vadd.f32 %v2329_v61, %v2326_v60  ;;  %v1095_v6 = vadd.f32 %v5241_v41, %v1091_v30  ;;  %v6866_v60 = vld [vmem:[#allocation197_spill] sm:$0xff]  ;;  %v6874_v49 = vld [vmem:[#allocation159_spill] sm:$0xff] }
 0x25c   : > { %v1306_v33 = vadd.f32 %v1305_v56, %v1302_v63  ;;  %v1518_v12 = vadd.f32 %v1517_v21, %v1514_v18  ;;  %v6843_v43 = vstv %s6839_s10  ;;  %v1730_v47 = vadd.f32 %v1729_v40, %v1726_v26  ;;  %v6851_v56 = vld [vmem:[#allocation293_spill] sm:$0xff]  ;;  %v6854_v40 = vld [vmem:[#allocation151_spill] sm:$0xff]  ;;  %s6885_s10 = sld [smem:[#allocation152_spill]] }
 0x25d   : > { %v2337_v48 = vmul.f32 %v5224_v15, %v6843_v43  ;;  %v1934_v54 = vadd.f32 %v1933_v34, %v1930_v36  ;;  %v2138_v53 = vadd.f32 %v6845_v45, %v2134_v7  ;;  %v2334_v58 = vadd.f32 %v2333_v22, %v2330_v0  ;;  %v6877_v0 = vld [vmem:[#allocation287_spill] sm:$0xff]  ;;  %v6884_v45 = vld [vmem:[#allocation249_spill] sm:$0xff] }
 0x25e   : > { %v1099_v38 = vadd.f32 %v6846_v29, %v1095_v6  ;;  %v1310_v9 = vadd.f32 %v6847_v25, %v1306_v33  ;;  %v1522_v2 = vadd.f32 %v6848_v1, %v1518_v12  ;;  %v6849_v51 = vstv %s6842_s3  ;;  %v6880_v12 = vld [vmem:[#allocation288_spill] sm:$0xff]  ;;  %s6886_s3 = sld [smem:[#allocation153_spill]]  ;;  %v6888_v25 = vld [vmem:[#allocation162_spill] sm:$0xff] }
 0x25f   : > { %v2145_v41 = vmul.f32 %v6849_v51, %v5149_v37  ;;  %v1734_v21 = vadd.f32 %v6851_v56, %v1730_v47  ;;  %v1938_v14 = vadd.f32 %v1937_v28, %v1934_v54  ;;  %v2142_v34 = vadd.f32 %v6854_v40, %v2138_v53  ;;  %v6882_v47 = vld [vmem:[#allocation289_spill] sm:$0xff] }
 0x260   : > { %v2338_v4 = vadd.f32 %v2337_v48, %v2334_v58  ;;  %v1109_v39 = vadd.f32 %v6855_v46, %v1099_v38  ;;  %v1320_v19 = vadd.f32 %v6856_v5, %v1310_v9  ;;  %v1532_v13 = vadd.f32 %v6858_v17, %v1522_v2 }
 0x261   : > { %v6859_v8 = vstv %s6844_s4  ;;  %v1744_v3 = vadd.f32 %v6861_v23, %v1734_v21  ;;  %v1942_v32 = vadd.f32 %v1941_v55, %v1938_v14  ;;  %v2146_v28 = vadd.f32 %v2145_v41, %v2142_v34  ;;  %s6889_s4 = sld [smem:[#allocation57_spill]]  ;;  %v6896_v34 = vld [vmem:[#allocation163_spill] sm:$0xff] }
 0x262   : > { %v2149_v31 = vmul.f32 %v5129_v20, %v6859_v8  ;;  %v2342_v10 = vadd.f32 %v6864_v27, %v2338_v4  ;;  %v5384_v62 = vmul.f32 %v6866_v60, %v6865_v11  ;;  %1110 = vxpose.xlu1.b32.start.end [1/1] (short) (narrow) %v1109_v39, 8  ;;  %v6868_v24 = vstv %s6850_s15  ;;  %s6890_s15 = sld [smem:[#allocation131_spill]]  ;;  %v6905_v27 = vld [vmem:[#allocation250_spill] sm:$0xff] }
 0x263   : > { %v2153_v59 = vmul.f32 %v6868_v24, %v5206_v16  ;;  %v6869_v57 = vstv %s6852_s12  ;;  %v6870_v30 = vstv %s6853_s0  ;;  %v1946_v55 = vadd.f32 %v1945_v42, %v1942_v32  ;;  %s6894_s12 = sld [smem:[#allocation97_spill]]  ;;  %s6895_s0 = sld [smem:[#allocation98_spill]] }
 0x264   : > { %v2538_v61 = vmul.f32 %v6869_v57, %v5174_v35  ;;  %v2541_v63 = vmul.f32 %v5152_v52, %v6870_v30  ;;  %v2150_v18 = vadd.f32 %v2149_v31, %v2146_v28  ;;  %v2346_v22 = vadd.f32 %v6874_v49, %v2342_v10 }
 0x265   : > { %v6875_v26 = vstv %s6857_s18  ;;  %v6878_v6 = vstv %s6860_s23  ;;  %v6881_v43 = vstv %s6862_s7  ;;  %v6883_v42 = vstv %s6863_s30  ;;  %s6897_s18 = sld [smem:[#allocation103_spill]]  ;;  %s6900_s23 = sld [smem:[#allocation58_spill]] }
 0x266   : > { %v2545_v36 = vmul.f32 %v6875_v26, %v5236_v50  ;;  %v2542_v7 = vadd.f32 %v2541_v63, %v2538_v61  ;;  %v5402_v33 = vmul.f32 %v6878_v6, %v6877_v0  ;;  %v5407_v48 = vmul.f32 %v6881_v43, %v6880_v12  ;;  %1321 = vxpose.xlu1.b32.start.end [1/1] (short) (narrow) %v1320_v19, 8  ;;  %s6901_s7 = sld [smem:[#allocation132_spill]]  ;;  %s6903_s30 = sld [smem:[#allocation59_spill]]  ;;  %v6910_v61 = vld [vmem:[#allocation167_spill] sm:$0xff] }
 0x267   : > { %v5412_v54 = vmul.f32 %v6883_v42, %v6882_v47  ;;  %v1956_v53 = vadd.f32 %v6884_v45, %v1946_v55  ;;  %v2154_v58 = vadd.f32 %v2153_v59, %v2150_v18  ;;  %v6887_v29 = vstv %s6867_s11  ;;  %s6906_s11 = sld [smem:[#allocation154_spill]] }
 0x268   : > { %v2157_v38 = vmul.f32 %v5190_v44, %v6887_v29  ;;  %v2350_v9 = vadd.f32 %v6888_v25, %v2346_v22  ;;  %v2546_v1 = vadd.f32 %v2545_v36, %v2542_v7  ;;  %v6891_v2 = vstv %s6871_s25  ;;  %s6909_s25 = sld [smem:[#allocation104_spill]]  ;;  %v6921_v29 = vld [vmem:[#allocation168_spill] sm:$0xff] }
 0x269   : > { %v2549_v51 = vmul.f32 %v5224_v15, %v6891_v2  ;;  %v6892_v41 = vstv %s6872_s20  ;;  %v6893_v21 = vstv %s6873_s19  ;;  %v6898_v46 = vstv %s6876_s17  ;;  %s6911_s20 = sld [smem:[#allocation156_spill]]  ;;  %s6915_s19 = sld [smem:[#allocation157_spill]] }
 0x26a   : > { %v944_v56 = vmul.f32 %v6892_v41, %v5174_v35  ;;  %v947_v14 = vmul.f32 %v5152_v52, %v6893_v21  ;;  %v2158_v40 = vadd.f32 %v2157_v38, %v2154_v58  ;;  %v2354_v4 = vadd.f32 %v6896_v34, %v2350_v9  ;;  %1533 = vxpose.xlu1.b32.start.end [1/1] (short) (narrow) %v1532_v13, 8  ;;  %s6917_s17 = sld [smem:[#allocation160_spill]] }
 0x26b   : > { %v2357_v39 = vmul.f32 %v6898_v46, %v5149_v37  ;;  %v6899_v5 = vstv %s6879_s2  ;;  %v2550_v17 = vadd.f32 %v2549_v51, %v2546_v1  ;;  %v6902_v31 = vstv %s6885_s10  ;;  %s6919_s2 = sld [smem:[#allocation64_spill]]  ;;  %s6922_s10 = sld [smem:[#allocation155_spill]] }
 0x26c   : > { %v5435_v19 = vmul.f32 %v6899_v5, %v5384_v62  ;;  %v948_v8 = vadd.f32 %v947_v14, %v944_v56  ;;  %v5440_v23 = vmul.f32 %v6902_v31, %v6877_v0  ;;  %v6904_v32 = vstv %s6886_s3  ;;  %s6924_s3 = sld [smem:[#allocation65_spill]] }
 0x26d   : > { %v5445_v28 = vmul.f32 %v6904_v32, %v6880_v12  ;;  %v2168_v10 = vadd.f32 %v6905_v27, %v2158_v40  ;;  %v2358_v11 = vadd.f32 %v2357_v39, %v2354_v4  ;;  %v6907_v60 = vstv %s6889_s4  ;;  %s6927_s4 = sld [smem:[#allocation72_spill]]  ;;  %v6929_v40 = vld [vmem:[#allocation170_spill] sm:$0xff]  ;;  %v6934_v27 = vld [vmem:[#allocation176_spill] sm:$0xff] }
 0x26e   : > { %v2361_v24 = vmul.f32 %v5129_v20, %v6907_v60  ;;  %v6908_v59 = vstv %s6890_s15  ;;  %v2554_v30 = vadd.f32 %v6910_v61, %v2550_v17  ;;  %v6912_v63 = vstv %s6894_s12  ;;  %s6928_s15 = sld [smem:[#allocation73_spill]]  ;;  %1745 = vxpose.xlu1.b32.start.end [1/1] (short) (narrow) %v1744_v3, 8  ;;  %s6933_s12 = sld [smem:[#allocation161_spill]] }
 0x26f   : > { %v951_v57 = vmul.f32 %v6908_v59, %v5236_v50  ;;  %v1155_v55 = vmul.f32 %v6912_v63, %v5174_v35  ;;  %v6913_v18 = vstv %s6895_s0  ;;  %v6914_v22 = vstv %s6897_s18  ;;  %s6935_s0 = sld [smem:[#allocation134_spill]]  ;;  %s6937_s18 = sld [smem:[#allocation135_spill]] }
 0x270   : > { %v1158_v49 = vmul.f32 %v5152_v52, %v6913_v18  ;;  %v1162_v26 = vmul.f32 %v6914_v22, %v5236_v50  ;;  %v2362_v36 = vadd.f32 %v2361_v24, %v2358_v11  ;;  %v6916_v7 = vstv %s6900_s23  ;;  %v6938_v24 = vld [vmem:[#allocation171_spill] sm:$0xff]  ;;  %s6939_s23 = sld [smem:[#allocation136_spill]] }
 0x271   : > { %v2365_v6 = vmul.f32 %v6916_v7, %v5206_v16  ;;  %v6918_v43 = vstv %s6901_s7  ;;  %v952_v42 = vadd.f32 %v951_v57, %v948_v8  ;;  %v6920_v45 = vstv %s6903_s30  ;;  %s6944_s7 = sld [smem:[#allocation137_spill]]  ;;  %v6945_v7 = vld [vmem:[#allocation177_spill] sm:$0xff]  ;;  %s6946_s30 = sld [smem:[#allocation186_spill]] }
 0x272   : > { %v955_v13 = vmul.f32 %v5224_v15, %v6918_v43  ;;  %v2369_v58 = vmul.f32 %v5190_v44, %v6920_v45  ;;  %v2558_v38 = vadd.f32 %v6921_v29, %v2554_v30  ;;  %v1159_v25 = vadd.f32 %v1158_v49, %v1155_v55  ;;  %v6941_v55 = vld [vmem:[#allocation251_spill] sm:$0xff]  ;;  %1957 = vxpose.xlu1.b32.start.end [1/1] (short) (narrow) %v1956_v53, 8 }
 0x273   : > { %v6923_v9 = vstv %s6906_s11  ;;  %v2366_v2 = vadd.f32 %v2365_v6, %v2362_v36  ;;  %v6925_v41 = vstv %s6909_s25  ;;  %v6926_v21 = vstv %s6911_s20  ;;  %s6950_s11 = sld [smem:[#allocation54_spill]]  ;;  %s6954_s25 = sld [smem:[#allocation146_spill]] }
 0x274   : > { %v5477_v1 = vmul.f32 %v6923_v9, %v6882_v47  ;;  %v956_v51 = vadd.f32 %v955_v13, %v952_v42  ;;  %v1166_v56 = vmul.f32 %v5224_v15, %v6925_v41  ;;  %v1367_v14 = vmul.f32 %v6926_v21, %v5174_v35  ;;  %v6947_v13 = vld [vmem:[#allocation184_spill] sm:$0xff]  ;;  %s6955_s20 = sld [smem:[#allocation55_spill]] }
 0x275   : > { %v2562_v34 = vadd.f32 %v6929_v40, %v2558_v38  ;;  %v1163_v4 = vadd.f32 %v1162_v26, %v1159_v25  ;;  %v6930_v46 = vstv %s6915_s19  ;;  %v6931_v5 = vstv %s6917_s17  ;;  %s6959_s19 = sld [smem:[#allocation149_spill]]  ;;  %s6963_s17 = sld [smem:[#allocation174_spill]] }
 0x276   : > { %v1370_v39 = vmul.f32 %v5152_v52, %v6930_v46  ;;  %v1374_v17 = vmul.f32 %v6931_v5, %v5236_v50  ;;  %v2370_v8 = vadd.f32 %v2369_v58, %v2366_v2  ;;  %v6932_v31 = vstv %s6919_s2  ;;  %2169 = vxpose.xlu1.b32.start.end [1/1] (short) (narrow) %v2168_v10, 8  ;;  %s6964_s2 = sld [smem:[#allocation187_spill]] }
 0x277   : > { %v2569_v32 = vmul.f32 %v6932_v31, %v5149_v37  ;;  %v960_v11 = vadd.f32 %v6934_v27, %v956_v51  ;;  %v6936_v60 = vstv %s6922_s10  ;;  %v2566_v59 = vadd.f32 %v6938_v24, %v2562_v34  ;;  %v6965_v24 = vld [vmem:[#allocation188_spill] sm:$0xff]  ;;  %s6977_s10 = sld [smem:[#allocation142_spill]] }
 0x278   : > { %v5499_v3 = vmul.f32 %v6936_v60, %v5384_v62  ;;  %v6940_v57 = vstv %s6924_s3  ;;  %v1167_v30 = vadd.f32 %v1166_v56, %v1163_v4  ;;  %v1371_v63 = vadd.f32 %v1370_v39, %v1367_v14  ;;  %v6953_v56 = vld [vmem:[#allocation179_spill] sm:$0xff]  ;;  %v6956_v14 = vld [vmem:[#allocation185_spill] sm:$0xff]  ;;  %s6978_s3 = sld [smem:[#allocation143_spill]] }
 0x279   : > { %v2573_v61 = vmul.f32 %v5129_v20, %v6940_v57  ;;  %v2380_v18 = vadd.f32 %v6941_v55, %v2370_v8  ;;  %v6942_v49 = vstv %s6927_s4  ;;  %v6943_v26 = vstv %s6928_s15  ;;  %s6982_s4 = sld [smem:[#allocation181_spill]]  ;;  %s6985_s15 = sld [smem:[#allocation182_spill]] }
 0x27a   : > { %v2577_v22 = vmul.f32 %v6942_v49, %v5206_v16  ;;  %v2581_v36 = vmul.f32 %v5190_v44, %v6943_v26  ;;  %v964_v6 = vadd.f32 %v6945_v7, %v960_v11  ;;  %v2570_v43 = vadd.f32 %v2569_v32, %v2566_v59 }
 0x27b   : > { %v1171_v42 = vadd.f32 %v6947_v13, %v1167_v30  ;;  %v1375_v45 = vadd.f32 %v1374_v17, %v1371_v63  ;;  %v6948_v58 = vstv %s6933_s12  ;;  %v6949_v38 = vstv %s6935_s0  ;;  %v6960_v17 = vld [vmem:[#allocation180_spill] sm:$0xff]  ;;  %v6967_v30 = vld [vmem:[#allocation199_spill] sm:$0xff]  ;;  %2381 = vxpose.xlu1.b32.start.end [1/1] (short) (narrow) %v2380_v18, 8  ;;  %s6986_s12 = sld [smem:[#allocation183_spill]]  ;;  %s6991_s0 = sld [smem:[#allocation205_spill]] }
 0x27c   : > { %v1378_v29 = vmul.f32 %v5224_v15, %v6948_v58  ;;  %v975_v25 = vmul.f32 %v6949_v38, %v5149_v37  ;;  %v6951_v9 = vstv %s6937_s18  ;;  %v6952_v51 = vstv %s6939_s23  ;;  %v6972_v13 = vld [vmem:[#allocation189_spill] sm:$0xff]  ;;  %v6974_v58 = vld [vmem:[#allocation200_spill] sm:$0xff]  ;;  %s6995_s18 = sld [smem:[#allocation165_spill]]  ;;  %s7007_s23 = sld [smem:[#allocation169_spill]] }
 0x27d   : > { %v979_v2 = vmul.f32 %v5129_v20, %v6951_v9  ;;  %v983_v41 = vmul.f32 %v6952_v51, %v5206_v16  ;;  %v968_v53 = vadd.f32 %v6953_v56, %v964_v6  ;;  %v2574_v21 = vadd.f32 %v2573_v61, %v2570_v43 }
 0x27e   : > { %v1175_v40 = vadd.f32 %v6956_v14, %v1171_v42  ;;  %v1379_v34 = vadd.f32 %v1378_v29, %v1375_v45  ;;  %v6957_v4 = vstv %s4537_s28  ;;  %v6958_v39 = vstv %s6944_s7  ;;  %s6969_s28 = sld [smem:[#allocation175_spill]]  ;;  %s7011_s7 = sld [smem:[#allocation237_spill]] }
 0x27f   : > { %v1579_v46 = vmul.f32 %v6957_v4, %v5174_v35  ;;  %v987_v5 = vmul.f32 %v5190_v44, %v6958_v39  ;;  %v972_v8 = vadd.f32 %v6960_v17, %v968_v53  ;;  %v6961_v31 = vstv %s4545_s9  ;;  %s6971_s9 = sld [smem:[#allocation178_spill]] }
 0x280   : > { %v1582_v32 = vmul.f32 %v5152_v52, %v6961_v31  ;;  %v6962_v27 = vstv %s6946_s30  ;;  %v2578_v60 = vadd.f32 %v2577_v22, %v2574_v21  ;;  %v1179_v59 = vadd.f32 %v6965_v24, %v1175_v40  ;;  %v6980_v40 = vld [vmem:[#allocation203_spill] sm:$0xff]  ;;  %s7014_s30 = sld [smem:[#allocation172_spill]] }
 0x281   : > { %v1586_v11 = vmul.f32 %v6962_v27, %v5236_v50  ;;  %v6966_v57 = vstv %s6950_s11  ;;  %v1383_v63 = vadd.f32 %v6967_v30, %v1379_v34  ;;  %v976_v55 = vadd.f32 %v975_v25, %v972_v8  ;;  %v6987_v27 = vld [vmem:[#allocation204_spill] sm:$0xff]  ;;  %s7026_s11 = sld [smem:[#allocation214_spill]] }
 0x282   : > { %v1186_v61 = vmul.f32 %v6966_v57, %v5149_v37  ;;  %v6968_v49 = vstv %s6954_s25  ;;  %v6970_v7 = vstv %s6955_s20  ;;  %v1583_v43 = vadd.f32 %v1582_v32, %v1579_v46  ;;  %s7028_s25 = sld [smem:[#allocation202_spill]]  ;;  %s7033_s20 = sld [smem:[#allocation217_spill]] }
 0x283   : > { %v1190_v26 = vmul.f32 %v5129_v20, %v6968_v49  ;;  %v1194_v6 = vmul.f32 %v6970_v7, %v5206_v16  ;;  %v2582_v10 = vadd.f32 %v2581_v36, %v2578_v60  ;;  %v1183_v22 = vadd.f32 %v6972_v13, %v1179_v59  ;;  %v6979_v36 = vld [vmem:[#allocation252_spill] sm:$0xff]  ;;  %v6993_v49 = vld [vmem:[#allocation209_spill] sm:$0xff] }
 0x284   : > { %v6973_v42 = vstv %s6959_s19  ;;  %v1387_v29 = vadd.f32 %v6974_v58, %v1383_v63  ;;  %v980_v38 = vadd.f32 %v979_v2, %v976_v55  ;;  %v6975_v25 = vstv %s6963_s17  ;;  %s7036_s19 = sld [smem:[#allocation219_spill]]  ;;  %s7040_s17 = sld [smem:[#allocation221_spill]] }
 0x285   : > { %v1198_v45 = vmul.f32 %v5190_v44, %v6973_v42  ;;  %v1398_v9 = vmul.f32 %v6975_v25, %v5149_v37  ;;  %v1587_v51 = vadd.f32 %v1586_v11, %v1583_v43  ;;  %v6976_v56 = vstv %s6964_s2  ;;  %v7000_v25 = vld [vmem:[#allocation210_spill] sm:$0xff]  ;;  %s7047_s2 = sld [smem:[#allocation223_spill]] }
 0x286   : > { %v1590_v53 = vmul.f32 %v5224_v15, %v6976_v56  ;;  %v2592_v21 = vadd.f32 %v6979_v36, %v2582_v10  ;;  %v1187_v14 = vadd.f32 %v1186_v61, %v1183_v22  ;;  %v1391_v34 = vadd.f32 %v6980_v40, %v1387_v29 }
 0x287   : > { %v6981_v4 = vstv %s6969_s28  ;;  %v984_v2 = vadd.f32 %v983_v41, %v980_v38  ;;  %v6983_v39 = vstv %s6971_s9  ;;  %v6984_v31 = vstv %s6652_s29  ;;  %s6994_s29 = sld [smem:[#allocation164_spill]]  ;;  %s7054_s28 = sld [smem:[#allocation224_spill]] }
 0x288   : > { %v1402_v46 = vmul.f32 %v5129_v20, %v6981_v4  ;;  %v1406_v17 = vmul.f32 %v6983_v39, %v5206_v16  ;;  %v1591_v8 = vadd.f32 %v1590_v53, %v1587_v51  ;;  %v1791_v32 = vmul.f32 %v6984_v31, %v5174_v35  ;;  %2593 = vxpose.xlu1.b32.start.end [1/1] (short) (narrow) %v2592_v21, 8  ;;  %s5752_s9 = sld [smem:[#allocation8 + $0xff]] }
 0x289   : > { %v1191_v18 = vadd.f32 %v1190_v26, %v1187_v14  ;;  %v1395_v11 = vadd.f32 %v6987_v27, %v1391_v34  ;;  %v6988_v60 = vstv %s4677_s8  ;;  %v6989_v59 = vstv %s4683_s1  ;;  %s6997_s8 = sld [smem:[#allocation166_spill]]  ;;  %s7005_s1 = sld [smem:[#allocation133_spill]] }
 0x28a   : > { %v1794_v24 = vmul.f32 %v5152_v52, %v6988_v60  ;;  %v1798_v57 = vmul.f32 %v6989_v59, %v5236_v50  ;;  %v988_v61 = vadd.f32 %v987_v5, %v984_v2  ;;  %v6990_v41 = vstv %s6977_s10  ;;  %s7101_s10 = sld [smem:[#allocation26_spill]] }
 0x28b   : > { %v1410_v30 = vmul.f32 %v5190_v44, %v6990_v41  ;;  %v6992_v63 = vstv %s6978_s3  ;;  %v1595_v7 = vadd.f32 %v6993_v49, %v1591_v8  ;;  %v1195_v26 = vadd.f32 %v1194_v6, %v1191_v18  ;;  %s7102_s3 = sld [smem:[#allocation270_spill]] }
 0x28c   : > { %v1414_v55 = vmul.f32 %v6992_v63, %v6877_v0  ;;  %v1399_v43 = vadd.f32 %v1398_v9, %v1395_v11  ;;  %v6996_v10 = vstv %s6982_s4  ;;  %v1795_v22 = vadd.f32 %v1794_v24, %v1791_v32  ;;  %s5757_s4 = sld [smem:[#allocation8 + $0x100]] }
 0x28d   : > { %v1418_v13 = vmul.f32 %v6996_v10, %v6880_v12  ;;  %v992_v5 = vadd.f32 %v5402_v33, %v988_v61  ;;  %v6998_v42 = vstv %s6985_s15  ;;  %v6999_v29 = vstv %s6986_s12  ;;  %v7002_v33 = vld [vmem:[#allocation212_spill] sm:$0xff]  ;;  %s5766_s15 = sld [smem:[#allocation8 + $0x101]]  ;;  %s5768_s12 = sld [smem:[#allocation8 + $0x102]] }
 0x28e   : > { %v1422_v58 = vmul.f32 %v6998_v42, %v6882_v47  ;;  %v1426_v38 = vmul.f32 %v6999_v29, %v5384_v62  ;;  %v1599_v51 = vadd.f32 %v7000_v25, %v1595_v7  ;;  %v1199_v56 = vadd.f32 %v1198_v45, %v1195_v26  ;;  %v7019_v42 = vld [vmem:[#allocation190_spill] sm:$0xff] }
 0x28f   : > { %v1403_v6 = vadd.f32 %v1402_v46, %v1399_v43  ;;  %v1799_v9 = vadd.f32 %v1798_v57, %v1795_v22  ;;  %v7001_v53 = vstv %s6991_s0  ;;  %v996_v21 = vadd.f32 %v5407_v48, %v992_v5  ;;  %v7008_v48 = vld [vmem:[#allocation213_spill] sm:$0xff]  ;;  %v7018_v22 = vld [vmem:[#allocation230_spill] sm:$0xff]  ;;  %s5773_s0 = sld [smem:[#allocation8 + $0x103]] }
 0x290   : > { %v1802_v36 = vmul.f32 %v5224_v15, %v7001_v53  ;;  %v1603_v14 = vadd.f32 %v7002_v33, %v1599_v51  ;;  %v7003_v40 = vstv %s6994_s29  ;;  %v7004_v4 = vstv %s6995_s18  ;;  %v7024_v53 = vld [vmem:[#allocation233_spill] sm:$0xff]  ;;  %s7109_s29 = sld [smem:[#allocation272_spill]]  ;;  %s5775_s18 = sld [smem:[#allocation8 + $0x104]] }
 0x291   : > { %v1610_v34 = vmul.f32 %v7003_v40, %v5149_v37  ;;  %v1614_v2 = vmul.f32 %v5129_v20, %v7004_v4  ;;  %v1203_v39 = vadd.f32 %v5440_v23, %v1199_v56  ;;  %v1407_v45 = vadd.f32 %v1406_v17, %v1403_v6  ;;  %v7012_v17 = vld [vmem:[#allocation229_spill] sm:$0xff] }
 0x292   : > { %v7006_v46 = vstv %s6997_s8  ;;  %v1803_v31 = vadd.f32 %v1802_v36, %v1799_v9  ;;  %v1000_v32 = vadd.f32 %v5412_v54, %v996_v21  ;;  %v1607_v18 = vadd.f32 %v7008_v48, %v1603_v14  ;;  %v7025_v21 = vld [vmem:[#allocation191_spill] sm:$0xff]  ;;  %s7111_s8 = sld [smem:[#allocation276_spill]] }
 0x293   : > { %v1618_v8 = vmul.f32 %v7006_v46, %v5206_v16  ;;  %v7009_v27 = vstv %s4843_s21  ;;  %v7010_v60 = vstv %s4869_s27  ;;  %v1207_v59 = vadd.f32 %v5445_v28, %v1203_v39  ;;  %s7016_s21 = sld [smem:[#allocation173_spill]]  ;;  %s7020_s27 = sld [smem:[#allocation211_spill]]  ;;  %v7030_v46 = vld [vmem:[#allocation235_spill] sm:$0xff] }
 0x294   : > { %v2003_v11 = vmul.f32 %v7009_v27, %v5174_v35  ;;  %v2006_v24 = vmul.f32 %v5152_v52, %v7010_v60  ;;  %v1411_v23 = vadd.f32 %v1410_v30, %v1407_v45  ;;  %v1807_v57 = vadd.f32 %v7012_v17, %v1803_v31 }
 0x295   : > { %v7013_v61 = vstv %s4871_s13  ;;  %v1004_v54 = vadd.f32 %v5435_v19, %v1000_v32  ;;  %v1611_v63 = vadd.f32 %v1610_v34, %v1607_v18  ;;  %v7015_v49 = vstv %s7005_s1  ;;  %s7022_s13 = sld [smem:[#allocation201_spill]]  ;;  %v7032_v32 = vld [vmem:[#allocation192_spill] sm:$0xff]  ;;  %s5786_s1 = sld [smem:[#allocation8 + $0xe5]] }
 0x296   : > { %v2010_v41 = vmul.f32 %v7013_v61, %v5236_v50  ;;  %v1622_v7 = vmul.f32 %v5190_v44, %v7015_v49  ;;  %v2007_v26 = vadd.f32 %v2006_v24, %v2003_v11  ;;  %v1211_v43 = vadd.f32 %v5477_v1, %v1207_v59  ;;  %v7035_v11 = vld [vmem:[#allocation265_spill] sm:$0xff]  ;;  %v7037_v24 = vld [vmem:[#allocation207_spill] sm:$0xff]  ;;  %v7039_v61 = vld [vmem:[#allocation193_spill] sm:$0xff] }
 0x297   : > { %v1415_v10 = vadd.f32 %v1414_v55, %v1411_v23  ;;  %v7017_v28 = vstv %s7007_s23  ;;  %v1811_v5 = vadd.f32 %v7018_v22, %v1807_v57  ;;  %v1008_v29 = vadd.f32 %v7019_v42, %v1004_v54  ;;  %s5788_s23 = sld [smem:[#allocation8 + $0xe6]] }
 0x298   : > { %v1626_v30 = vmul.f32 %v7017_v28, %v6877_v0  ;;  %v1615_v25 = vadd.f32 %v1614_v2, %v1611_v63  ;;  %v2011_v51 = vadd.f32 %v2010_v41, %v2007_v26  ;;  %v7021_v19 = vstv %s7011_s7  ;;  %v7029_v2 = vld [vmem:[#allocation206_spill] sm:$0xff]  ;;  %s5796_s7 = sld [smem:[#allocation8 + $0xe7]] }
 0x299   : > { %v2014_v56 = vmul.f32 %v5224_v15, %v7021_v19  ;;  %v1215_v6 = vadd.f32 %v5499_v3, %v1211_v43  ;;  %v1419_v9 = vadd.f32 %v1418_v13, %v1415_v10  ;;  %v7023_v1 = vstv %s7014_s30  ;;  %v7043_v43 = vld [vmem:[#allocation208_spill] sm:$0xff]  ;;  %v7044_v28 = vld [vmem:[#allocation216_spill] sm:$0xff]  ;;  %s5806_s30 = sld [smem:[#allocation8 + $0x105]] }
 0x29a   : > { %v1630_v55 = vmul.f32 %v7023_v1, %v6880_v12  ;;  %v1815_v36 = vadd.f32 %v7024_v53, %v1811_v5  ;;  %v1012_v33 = vadd.f32 %v7025_v21, %v1008_v29  ;;  %v1619_v14 = vadd.f32 %v1618_v8, %v1615_v25  ;;  %v7046_v29 = vld [vmem:[#allocation89_spill] sm:$0xff] }
 0x29b   : > { %v7027_v40 = vstv %s7016_s21  ;;  %v2015_v4 = vadd.f32 %v2014_v56, %v2011_v51  ;;  %v1219_v39 = vadd.f32 %v7029_v2, %v1215_v6  ;;  %v1423_v45 = vadd.f32 %v1422_v58, %v1419_v9  ;;  %v7049_v56 = vld [vmem:[#allocation271_spill] sm:$0xff]  ;;  %v7051_v53 = vld [vmem:[#allocation218_spill] sm:$0xff]  ;;  %s5808_s21 = sld [smem:[#allocation8 + $0x11f]] }
 0x29c   : > { %v1634_v34 = vmul.f32 %v7027_v40, %v6882_v47  ;;  %v1819_v3 = vadd.f32 %v7030_v46, %v1815_v36  ;;  %v7031_v13 = vstv %s7020_s27  ;;  %v1016_v48 = vadd.f32 %v7032_v32, %v1012_v33  ;;  %v7050_v9 = vld [vmem:[#allocation215_spill] sm:$0xff]  ;;  %v7053_v40 = vld [vmem:[#allocation90_spill] sm:$0xff]  ;;  %s5822_s27 = sld [smem:[#allocation8 + $0xe8]] }
 0x29d   : > { %v1822_v31 = vmul.f32 %v7031_v13, %v5149_v37  ;;  %v1623_v18 = vadd.f32 %v1622_v7, %v1619_v14  ;;  %v7034_v27 = vstv %s7022_s13  ;;  %v2019_v60 = vadd.f32 %v7035_v11, %v2015_v4  ;;  %v7042_v7 = vld [vmem:[#allocation266_spill] sm:$0xff]  ;;  %v7060_v11 = vld [vmem:[#allocation93_spill] sm:$0xff]  ;;  %s5829_s13 = sld [smem:[#allocation8 + $0x120]] }
 0x29e   : > { %v1638_v8 = vmul.f32 %v7034_v27, %v5384_v62  ;;  %v1223_v59 = vadd.f32 %v7037_v24, %v1219_v39  ;;  %v1427_v23 = vadd.f32 %v1426_v38, %v1423_v45  ;;  %v7038_v58 = vstv %s7026_s11  ;;  %v7055_v39 = vld [vmem:[#allocation275_spill] sm:$0xff]  ;;  %s5834_s11 = sld [smem:[#allocation8 + $0x121]] }
 0x29f   : > { %v1823_v17 = vadd.f32 %v1822_v31, %v1819_v3  ;;  %v1826_v57 = vmul.f32 %v5129_v20, %v7038_v58  ;;  %v1020_v41 = vadd.f32 %v7039_v61, %v1016_v48  ;;  %v1627_v54 = vadd.f32 %v1626_v30, %v1623_v18  ;;  %v7057_v3 = vld [vmem:[#allocation95_spill] sm:$0xff]  ;;  %v7058_v31 = vld [vmem:[#allocation220_spill] sm:$0xff] }
 0x2a0   : > { %v7041_v63 = vstv %s7028_s25  ;;  %v2023_v26 = vadd.f32 %v7042_v7, %v2019_v60  ;;  %v1227_v10 = vadd.f32 %v7043_v43, %v1223_v59  ;;  %v1431_v22 = vadd.f32 %v7044_v28, %v1427_v23  ;;  %s5840_s25 = sld [smem:[#allocation8 + $0x122]] }
 0x2a1   : > { %v1830_v49 = vmul.f32 %v7041_v63, %v5206_v16  ;;  %v1827_v5 = vadd.f32 %v1826_v57, %v1823_v17  ;;  %v7045_v38 = vstv %s7033_s20  ;;  %v1024_v25 = vadd.f32 %v7046_v29, %v1020_v41  ;;  %v7062_v17 = vld [vmem:[#allocation96_spill] sm:$0xff]  ;;  %v7063_v57 = vld [vmem:[#allocation222_spill] sm:$0xff]  ;;  %s5842_s20 = sld [smem:[#allocation8 + $0x123]] }
 0x2a2   : > { %v1834_v42 = vmul.f32 %v5190_v44, %v7045_v38  ;;  %v1631_v51 = vadd.f32 %v1630_v55, %v1627_v54  ;;  %v7048_v30 = vstv %s7036_s19  ;;  %v2027_v6 = vadd.f32 %v7049_v56, %v2023_v26  ;;  %v7066_v26 = vld [vmem:[#allocation228_spill] sm:$0xff]  ;;  %v7069_v38 = vld [vmem:[#allocation101_spill] sm:$0xff]  ;;  %s5850_s19 = sld [smem:[#allocation8 + $0x106]] }
 0x2a3   : > { %v1838_v19 = vmul.f32 %v7048_v30, %v6877_v0  ;;  %v1231_v1 = vadd.f32 %v7050_v9, %v1227_v10  ;;  %v1435_v36 = vadd.f32 %v7051_v53, %v1431_v22  ;;  %v1831_v21 = vadd.f32 %v1830_v49, %v1827_v5  ;;  %v7065_v49 = vld [vmem:[#allocation94_spill] sm:$0xff]  ;;  %v7068_v22 = vld [vmem:[#allocation99_spill] sm:$0xff] }
 0x2a4   : > { %v7052_v33 = vstv %s7040_s17  ;;  %v1028_v4 = vadd.f32 %v7053_v40, %v1024_v25  ;;  %v1635_v2 = vadd.f32 %v1634_v34, %v1631_v51  ;;  %v2031_v55 = vadd.f32 %v7055_v39, %v2027_v6  ;;  %v7071_v30 = vld [vmem:[#allocation194_spill] sm:$0xff]  ;;  %v7079_v39 = vld [vmem:[#allocation195_spill] sm:$0xff]  ;;  %s5871_s17 = sld [smem:[#allocation8 + $0x124]] }
 0x2a5   : > { %v1842_v14 = vmul.f32 %v7052_v33, %v6880_v12  ;;  %v7056_v45 = vstv %s4919_s5  ;;  %v1235_v13 = vadd.f32 %v7057_v3, %v1231_v1  ;;  %v1439_v32 = vadd.f32 %v7058_v31, %v1435_v36  ;;  %v7072_v56 = vld [vmem:[#allocation232_spill] sm:$0xff]  ;;  %v7075_v36 = vld [vmem:[#allocation100_spill] sm:$0xff]  ;;  %v7076_v33 = vld [vmem:[#allocation102_spill] sm:$0xff]  ;;  %s7077_s5 = sld [smem:[#allocation262_spill]] }
 0x2a6   : > { %v2034_v46 = vmul.f32 %v7056_v45, %v5149_v37  ;;  %v1835_v48 = vadd.f32 %v1834_v42, %v1831_v21  ;;  %v7059_v18 = vstv %s7047_s2  ;;  %v1032_v60 = vadd.f32 %v7060_v11, %v1028_v4  ;;  %v7080_v45 = vld [vmem:[#allocation238_spill] sm:$0xff]  ;;  %s5873_s2 = sld [smem:[#allocation8 + $0x125]] }
 0x2a7   : > { %v1846_v27 = vmul.f32 %v7059_v18, %v6882_v47  ;;  %v1639_v24 = vadd.f32 %v1638_v8, %v1635_v2  ;;  %v7061_v34 = vstv %s4927_s26  ;;  %v1239_v58 = vadd.f32 %v7062_v17, %v1235_v13  ;;  %s7073_s26 = sld [smem:[#allocation260_spill]]  ;;  %v7084_v18 = vld [vmem:[#allocation105_spill] sm:$0xff] }
 0x2a8   : > { %v2035_v59 = vadd.f32 %v2034_v46, %v2031_v55  ;;  %v2038_v23 = vmul.f32 %v5129_v20, %v7061_v34  ;;  %v1443_v61 = vadd.f32 %v7063_v57, %v1439_v32  ;;  %v1839_v41 = vadd.f32 %v1838_v19, %v1835_v48  ;;  %v7083_v32 = vld [vmem:[#allocation231_spill] sm:$0xff] }
 0x2a9   : > { %v7064_v54 = vstv %s7054_s28  ;;  %v1036_v7 = vadd.f32 %v7065_v49, %v1032_v60  ;;  %v1643_v43 = vadd.f32 %v7066_v26, %v1639_v24  ;;  %v7067_v8 = vstv %s4929_s22  ;;  %s7081_s22 = sld [smem:[#allocation263_spill]]  ;;  %v7091_v49 = vld [vmem:[#allocation106_spill] sm:$0xff]  ;;  %s5880_s28 = sld [smem:[#allocation8 + $0x107]] }
 0x2aa   : > { %v1850_v63 = vmul.f32 %v7064_v54, %v5384_v62  ;;  %v2039_v10 = vadd.f32 %v2038_v23, %v2035_v59  ;;  %v2042_v28 = vmul.f32 %v7067_v8, %v5206_v16  ;;  %v1243_v5 = vadd.f32 %v7068_v22, %v1239_v58  ;;  %v7087_v59 = vld [vmem:[#allocation196_spill] sm:$0xff]  ;;  %v7088_v23 = vld [vmem:[#allocation240_spill] sm:$0xff]  ;;  %v7092_v26 = vld [vmem:[#allocation254_spill] sm:$0xff] }
 0x2ab   : > { %v1447_v42 = vadd.f32 %v7069_v38, %v1443_v61  ;;  %v1843_v29 = vadd.f32 %v1842_v14, %v1839_v41  ;;  %v7070_v25 = vstv %s4949_s6  ;;  %v1040_v19 = vadd.f32 %v7071_v30, %v1036_v7  ;;  %s7085_s6 = sld [smem:[#allocation267_spill]]  ;;  %v7090_v41 = vld [vmem:[#allocation236_spill] sm:$0xff]  ;;  %v7096_v22 = vld [vmem:[#allocation107_spill] sm:$0xff] }
 0x2ac   : > { %v2046_v51 = vmul.f32 %v5190_v44, %v7070_v25  ;;  %v1647_v6 = vadd.f32 %v7072_v56, %v1643_v43  ;;  %v2043_v9 = vadd.f32 %v2042_v28, %v2039_v10  ;;  %v7074_v1 = vstv %s4955_s14  ;;  %s5727_s14 = sld [smem:[#allocation8 + $0xfd]]  ;;  %v7095_v8 = vld [vmem:[#allocation198_spill] sm:$0xff]  ;;  %v7098_v25 = vld [vmem:[#allocation239_spill] sm:$0xff] }
 0x2ad   : > { %v2050_v53 = vmul.f32 %v7074_v1, %v6877_v0  ;;  %v1247_v21 = vadd.f32 %v7075_v36, %v1243_v5  ;;  %v1451_v40 = vadd.f32 %v7076_v33, %v1447_v42  ;;  %v1847_v4 = vadd.f32 %v1846_v27, %v1843_v29  ;;  %v7099_v30 = vld [vmem:[#allocation243_spill] sm:$0xff]  ;;  %v7100_v56 = vld [vmem:[#allocation257_spill] sm:$0xff]  ;;  %v7103_v1 = vld [vmem:[#allocation225_spill] sm:$0xff] }
 0x2ae   : > { %v7078_v14 = vstv %s4957_s24  ;;  %v1044_v55 = vadd.f32 %v7079_v39, %v1040_v19  ;;  %v1651_v46 = vadd.f32 %v7080_v45, %v1647_v6  ;;  %v2047_v3 = vadd.f32 %v2046_v51, %v2043_v9  ;;  %s7094_s24 = sld [smem:[#allocation268_spill]]  ;;  %v7104_v36 = vld [vmem:[#allocation108_spill] sm:$0xff]  ;;  %v7108_v45 = vld [vmem:[#allocation258_spill] sm:$0xff] }
 0x2af   : > { %v2054_v2 = vmul.f32 %v7078_v14, %v6880_v12  ;;  %v7082_v13 = vstv %s4977_s16  ;;  %v1251_v48 = vadd.f32 %v7083_v32, %v1247_v21  ;;  %v1455_v11 = vadd.f32 %v7084_v18, %v1451_v40  ;;  %s5745_s16 = sld [smem:[#allocation8 + $0xfe]]  ;;  %v7106_v14 = vld [vmem:[#allocation242_spill] sm:$0xff]  ;;  %v7107_v39 = vld [vmem:[#allocation244_spill] sm:$0xff] }
 0x2b0   : > { %v2058_v31 = vmul.f32 %v7082_v13, %v6882_v47  ;;  %v1851_v27 = vadd.f32 %v1850_v63, %v1847_v4  ;;  %v7086_v60 = vstv %s7073_s26  ;;  %v1048_v34 = vadd.f32 %v7087_v59, %v1044_v55  ;;  %v7110_v13 = vld [vmem:[#allocation111_spill] sm:$0xff]  ;;  %v5779_v32 = vld [vmem:[%s7101_s10 + $0x18] sm:$0xff]  ;;  %s5888_s26 = sld [smem:[#allocation8 + $0x108]] }
 0x2b1   : > { %v2062_v24 = vmul.f32 %v7086_v60, %v5384_v62  ;;  %v1655_v17 = vadd.f32 %v7088_v23, %v1651_v46  ;;  %v2051_v58 = vadd.f32 %v2050_v53, %v2047_v3  ;;  %v7089_v57 = vstv %s7077_s5  ;;  %v7113_v60 = vld [vmem:[#allocation226_spill] sm:$0xff]  ;;  %s5893_s5 = sld [smem:[#allocation8 + $0x126]] }
 0x2b2   : > { %v2215_v61 = vmul.f32 %v7089_v57, %v5174_v35  ;;  %v1255_v54 = vadd.f32 %v7090_v41, %v1251_v48  ;;  %v1459_v7 = vadd.f32 %v7091_v49, %v1455_v11  ;;  %v1855_v43 = vadd.f32 %v7092_v26, %v1851_v27 }
 0x2b3   : > { %v7093_v10 = vstv %s7081_s22  ;;  %v1052_v28 = vadd.f32 %v7095_v8, %v1048_v34  ;;  %v1659_v5 = vadd.f32 %v7096_v22, %v1655_v17  ;;  %v2055_v38 = vadd.f32 %v2054_v2, %v2051_v58  ;;  %v7114_v34 = vld [vmem:[#allocation253_spill] sm:$0xff]  ;;  %v7115_v17 = vld [vmem:[#allocation259_spill] sm:$0xff]  ;;  %s5899_s22 = sld [smem:[#allocation8 + $0x109]] }
 0x2b4   : > { %v2218_v63 = vmul.f32 %v5152_v52, %v7093_v10  ;;  %v7097_v42 = vstv %s7085_s6  ;;  %v1259_v51 = vadd.f32 %v7098_v25, %v1255_v54  ;;  %v1463_v19 = vadd.f32 %v7099_v30, %v1459_v7  ;;  %v7119_v7 = vld [vmem:[#allocation27_spill] sm:$0xff]  ;;  %v7125_v25 = vld [vmem:[#allocation256_spill] sm:$0xff]  ;;  %v7126_v30 = vld [vmem:[#allocation282_spill] sm:$0xff]  ;;  %s5911_s6 = sld [smem:[#allocation8 + $0x128]] }
 0x2b5   : > { %v2222_v29 = vmul.f32 %v7097_v42, %v5236_v50  ;;  %v1859_v6 = vadd.f32 %v7100_v56, %v1855_v43  ;;  %v5760_v53 = vadd.f32 %v7103_v1, %v1052_v28  ;;  %v1663_v21 = vadd.f32 %v7104_v36, %v1659_v5  ;;  %v7120_v43 = vld [vmem:[#allocation30_spill] sm:$0xff]  ;;  %v7122_v8 = vld [vmem:[#allocation255_spill] sm:$0xff]  ;;  %v7127_v56 = vld [vmem:[#allocation29_spill] sm:$0xff] }
 0x2b6   : > { %v2219_v9 = vadd.f32 %v2218_v63, %v2215_v61  ;;  %v2059_v33 = vadd.f32 %v2058_v31, %v2055_v38  ;;  %v7105_v40 = vstv %s7094_s24  ;;  %v1263_v2 = vadd.f32 %v7106_v14, %v1259_v51  ;;  %v7116_v61 = vld [vmem:[#allocation112_spill] sm:$0xff]  ;;  %v7123_v22 = vld [vmem:[#allocation113_spill] sm:$0xff]  ;;  %v7128_v1 = vld [vmem:[#allocation227_spill] sm:$0xff]  ;;  %s5919_s24 = sld [smem:[#allocation8 + $0x10a]] }
 0x2b7   : > { %v2226_v4 = vmul.f32 %v5224_v15, %v7105_v40  ;;  %v1467_v55 = vadd.f32 %v7107_v39, %v1463_v19  ;;  %v1863_v46 = vadd.f32 %v7108_v45, %v1859_v6  ;;  %v1667_v31 = vadd.f32 %v7110_v13, %v1663_v21  ;;  %v7124_v38 = vld [vmem:[#allocation286_spill] sm:$0xff]  ;;  %v7129_v21 = vld [vmem:[#allocation114_spill] sm:$0xff]  ;;  %v7130_v14 = vld [vmem:[#allocation264_spill] sm:$0xff] }
 0x2b8   : > { %v2223_v3 = vadd.f32 %v2222_v29, %v2219_v9  ;;  %v7112_v48 = vstv %s7102_s3  ;;  %v2063_v11 = vadd.f32 %v2062_v24, %v2059_v33  ;;  %v2241_v27 = vstv %s5727_s14  ;;  %v7117_v24 = vld [vmem:[#allocation280_spill] sm:$0xff]  ;;  %v7131_v39 = vld [vmem:[#allocation283_spill] sm:$0xff]  ;;  %s5902_s14 = sld [smem:[#allocation8 + $0x127]]  ;;  %s5932_s3 = sld [smem:[#allocation8 + $0x10c]] }
 0x2b9   : > { %v5784_v18 = vmul.f32 %v5779_v32, %v7112_v48  ;;  %v5792_v59 = vadd.f32 %v7113_v60, %v1263_v2  ;;  %v1471_v23 = vadd.f32 %v7114_v34, %v1467_v55  ;;  %v1867_v58 = vadd.f32 %v7115_v17, %v1863_v46  ;;  %v7134_v34 = vld [vmem:[#allocation285_spill] sm:$0xff] }
 0x2ba   : > { %v2227_v57 = vadd.f32 %v2226_v4, %v2223_v3  ;;  %v1671_v41 = vadd.f32 %v7116_v61, %v1667_v31  ;;  %v2067_v54 = vadd.f32 %v7117_v24, %v2063_v11  ;;  %v7118_v49 = vstv %s7109_s29  ;;  %v7132_v3 = vld [vmem:[#allocation117_spill] sm:$0xff]  ;;  %s5953_s29 = sld [smem:[#allocation8 + $0x10f]] }
 0x2bb   : > { %v2234_v26 = vmul.f32 %v7119_v7, %v7118_v49  ;;  %v7121_v10 = vstv %s7111_s8  ;;  %v1475_v28 = vadd.f32 %v7122_v8, %v1471_v23  ;;  %v1871_v5 = vadd.f32 %v7123_v22, %v1867_v58  ;;  %v7136_v49 = vld [vmem:[#allocation277_spill] sm:$0xff]  ;;  %v7138_v22 = vld [vmem:[#allocation279_spill] sm:$0xff]  ;;  %s5959_s8 = sld [smem:[#allocation8 + $0x110]] }
 0x2bc   : > { %v2238_v63 = vmul.f32 %v7121_v10, %v7120_v43  ;;  %v2231_v42 = vadd.f32 %v7124_v38, %v2227_v57  ;;  %v2245_v29 = vstv %s5745_s16  ;;  %v1675_v51 = vadd.f32 %v7125_v25, %v1671_v41  ;;  %v7135_v57 = vld [vmem:[#allocation118_spill] sm:$0xff]  ;;  %v7137_v10 = vld [vmem:[#allocation119_spill] sm:$0xff]  ;;  %s5921_s16 = sld [smem:[#allocation8 + $0x129]] }
 0x2bd   : > { %v2071_v19 = vadd.f32 %v7126_v30, %v2067_v54  ;;  %v2242_v6 = vmul.f32 %v7127_v56, %v2241_v27  ;;  %v2249_v9 = vstv %s5752_s9  ;;  %v5819_v36 = vadd.f32 %v7128_v1, %v1475_v28  ;;  %v7133_v27 = vld [vmem:[#allocation269_spill] sm:$0xff]  ;;  %v5855_v38 = vld [vmem:[%s7101_s10] sm:$0xff]  ;;  %s5923_s9 = sld [smem:[#allocation8 + $0x10b]] }
 0x2be   : > { %v1875_v33 = vadd.f32 %v7129_v21, %v1871_v5  ;;  %v2235_v40 = vadd.f32 %v2234_v26, %v2231_v42  ;;  %v2253_v4 = vstv %s5757_s4  ;;  %v1679_v2 = vadd.f32 %v7130_v14, %v1675_v51  ;;  %v7139_v30 = vld [vmem:[#allocation234_spill] sm:$0xff]  ;;  %v5864_v1 = vld [vmem:[%s7101_s10 + $0x8] sm:$0xff]  ;;  %s5938_s4 = sld [smem:[#allocation8 + $0x10d]] }
 0x2bf   : > { %v2075_v55 = vadd.f32 %v7131_v39, %v2071_v19  ;;  %v2257_v45 = vstv %s5766_s15  ;;  %v2261_v46 = vstv %s5768_s12  ;;  %v2265_v48 = vstv %s5773_s0  ;;  %v7140_v19 = vld [vmem:[#allocation120_spill] sm:$0xff]  ;;  %s5941_s15 = sld [smem:[#allocation8 + $0x12b]]  ;;  %s5944_s12 = sld [smem:[#allocation8 + $0x10e]] }
 0x2c0   : > { %v1879_v13 = vadd.f32 %v7132_v3, %v1875_v33  ;;  %v2239_v31 = vadd.f32 %v2238_v63, %v2235_v40  ;;  %v2269_v11 = vstv %s5775_s18  ;;  %v1683_v60 = vadd.f32 %v7133_v27, %v1679_v2  ;;  %v5868_v33 = vld [vmem:[%s7101_s10 + $0x10] sm:$0xff]  ;;  %s5929_s10 = sld [smem:[#allocation8 + $0x12a]]  ;;  %s5948_s0 = sld [smem:[#allocation8 + $0x12c]] }
 0x2c1   : > { %v2079_v23 = vadd.f32 %v7134_v34, %v2075_v55  ;;  %v2097_v17 = vstv %s5786_s1  ;;  %v2101_v58 = vstv %s5788_s23  ;;  %v2105_v41 = vstv %s5796_s7  ;;  %v7142_v3 = vld [vmem:[#allocation123_spill] sm:$0xff]  ;;  %v7143_v34 = vld [vmem:[#allocation284_spill] sm:$0xff]  ;;  %s5956_s18 = sld [smem:[#allocation8 + $0x12d]]  ;;  %s5963_s1 = sld [smem:[#allocation8 + $0x12e]] }
 0x2c2   : > { %v1883_v61 = vadd.f32 %v7135_v57, %v1879_v13  ;;  %v2243_v24 = vadd.f32 %v2242_v6, %v2239_v31  ;;  %v2246_v54 = vmul.f32 %v2245_v29, %v5149_v37  ;;  %v1687_v26 = vadd.f32 %v7136_v49, %v1683_v60  ;;  %s5965_s23 = sld [smem:[#allocation8 + $0x12f]]  ;;  %s5972_s7 = sld [smem:[#allocation8 + $0x111]] }
 0x2c3   : > { %v2083_v63 = vadd.f32 %v7137_v10, %v2079_v23  ;;  %v2273_v8 = vstv %s5806_s30  ;;  %v2426_v28 = vstv %s5808_s21  ;;  %v2098_v42 = vmul.f32 %v5855_v38, %v2097_v17  ;;  %s5975_s30 = sld [smem:[#allocation8 + $0x130]]  ;;  %s5980_s21 = sld [smem:[#allocation8 + $0x131]] }
 0x2c4   : > { %v1887_v5 = vadd.f32 %v7138_v22, %v1883_v61  ;;  %v2247_v25 = vadd.f32 %v2246_v54, %v2243_v24  ;;  %v2250_v51 = vmul.f32 %v5129_v20, %v2249_v9  ;;  %v5860_v29 = vadd.f32 %v7139_v30, %v1687_v26  ;;  %v7141_v9 = vld [vmem:[#allocation281_spill] sm:$0xff]  ;;  %v7144_v61 = vld [vmem:[#allocation124_spill] sm:$0xff] }
 0x2c5   : > { %v2087_v6 = vadd.f32 %v7140_v19, %v2083_v63  ;;  %v2102_v21 = vmul.f32 %v5864_v1, %v2101_v58  ;;  %v2106_v40 = vmul.f32 %v5868_v33, %v2105_v41  ;;  %v2109_v2 = vstv %s5822_s27  ;;  %s5988_s27 = sld [smem:[#allocation8 + $0x132]] }
 0x2c6   : > { %v1891_v14 = vadd.f32 %v7141_v9, %v1887_v5  ;;  %v2251_v39 = vadd.f32 %v2250_v51, %v2247_v25  ;;  %v2254_v55 = vmul.f32 %v2253_v4, %v5206_v16  ;;  %v2258_v31 = vmul.f32 %v5190_v44, %v2257_v45  ;;  %v7146_v25 = vld [vmem:[#allocation28_spill] sm:$0xff] }
 0x2c7   : > { %v2091_v13 = vadd.f32 %v7142_v3, %v2087_v6  ;;  %v2427_v27 = vmul.f32 %v2426_v28, %v5174_v35  ;;  %v2429_v60 = vstv %s5829_s13  ;;  %v2433_v57 = vstv %s5834_s11  ;;  %v7145_v28 = vld [vmem:[#allocation241_spill] sm:$0xff]  ;;  %s3118_s13 = sld [smem:[#allocation8 + $0x133]]  ;;  %s3119_s11 = sld [smem:[#allocation8 + $0x134]] }
 0x2c8   : > { %v1895_v23 = vadd.f32 %v7143_v34, %v1891_v14  ;;  %v2255_v17 = vadd.f32 %v2254_v55, %v2251_v39  ;;  %v2430_v58 = vmul.f32 %v5152_v52, %v2429_v60  ;;  %v2434_v4 = vmul.f32 %v2433_v57, %v5236_v50  ;;  %v7147_v39 = vld [vmem:[#allocation144_spill] sm:$0xff]  ;;  %v7148_v60 = vld [vmem:[#allocation145_spill] sm:$0xff] }
 0x2c9   : > { %v2095_v41 = vadd.f32 %v7144_v61, %v2091_v13  ;;  %v2437_v24 = vstv %s5840_s25  ;;  %v2441_v45 = vstv %s5842_s20  ;;  %v2262_v49 = vmul.f32 %v2261_v46, %v6877_v0  ;;  %v7150_v61 = vld [vmem:[#allocation147_spill] sm:$0xff]  ;;  %s3120_s25 = sld [smem:[#allocation8 + $0x135]]  ;;  %s3121_s20 = sld [smem:[#allocation8 + $0x136]] }
 0x2ca   : > { %v1899_v35 = vadd.f32 %v5784_v18, %v1895_v23  ;;  %v2259_v54 = vadd.f32 %v2258_v31, %v2255_v17  ;;  %v2431_v26 = vadd.f32 %v2430_v58, %v2427_v27  ;;  %v2266_v10 = vmul.f32 %v2265_v48, %v6880_v12  ;;  %v7149_v17 = vld [vmem:[#allocation261_spill] sm:$0xff] }
 0x2cb   : > { %v2099_v52 = vadd.f32 %v2098_v42, %v2095_v41  ;;  %v2277_v63 = vstv %s5850_s19  ;;  %v2438_v50 = vmul.f32 %v5224_v15, %v2437_v24  ;;  %v2442_v46 = vmul.f32 %v2441_v45, %v7146_v25  ;;  %v7152_v25 = vld [vmem:[#allocation82_spill] sm:$0xff]  ;;  %s3122_s19 = sld [smem:[#allocation8 + $0x137]] }
 0x2cc   : > { %v5905_v18 = vadd.f32 %v7145_v28, %v1899_v35  ;;  %v2263_v22 = vadd.f32 %v2262_v49, %v2259_v54  ;;  %v2435_v5 = vadd.f32 %v2434_v4, %v2431_v26  ;;  %v2110_v42 = vmul.f32 %v5779_v32, %v2109_v2  ;;  %v7151_v54 = vld [vmem:[#allocation148_spill] sm:$0xff] }
 0x2cd   : > { %v2103_v51 = vadd.f32 %v2102_v21, %v2099_v52  ;;  %v2445_v30 = vstv %s5871_s17  ;;  %v2449_v48 = vstv %s5873_s2  ;;  %v2270_v15 = vmul.f32 %v2269_v11, %v6882_v47  ;;  %s3123_s17 = sld [smem:[#allocation8 + $0x138]]  ;;  %s3124_s2 = sld [smem:[#allocation8 + $0x139]] }
 0x2ce   : > { %v2267_v19 = vadd.f32 %v2266_v10, %v2263_v22  ;;  %v2439_v6 = vadd.f32 %v2438_v50, %v2435_v5  ;;  %v2274_v14 = vmul.f32 %v2273_v8, %v5384_v62  ;;  %v2278_v55 = vmul.f32 %v2277_v63, %v7147_v39 }
 0x2cf   : > { %v2107_v9 = vadd.f32 %v2106_v40, %v2103_v51  ;;  %v2281_v3 = vstv %s5880_s28  ;;  %v2446_v13 = vmul.f32 %v7119_v7, %v2445_v30  ;;  %v2450_v11 = vmul.f32 %v2449_v48, %v7120_v43  ;;  %v7153_v30 = vld [vmem:[#allocation83_spill] sm:$0xff]  ;;  %s3125_s28 = sld [smem:[#allocation8 + $0x13a]] }
 0x2d0   : > { %v2271_v21 = vadd.f32 %v2270_v15, %v2267_v19  ;;  %v2443_v2 = vadd.f32 %v2442_v46, %v2439_v6  ;;  %v2285_v31 = vstv %s5888_s26  ;;  %v2453_v8 = vstv %s5893_s5  ;;  %s2838_s26 = sld [smem:[#allocation8 + $0x28]]  ;;  %s2880_s5 = sld [smem:[#allocation8 + $0x51]] }
 0x2d1   : > { %v2111_v40 = vadd.f32 %v2110_v42, %v2107_v9  ;;  %v2282_v34 = vmul.f32 %v2281_v3, %v7148_v60  ;;  %v2289_v57 = vstv %s5899_s22  ;;  %v2457_v7 = vstv %s5902_s14  ;;  %s2923_s22 = sld [smem:[#allocation8 + $0x7a]]  ;;  %s2966_s14 = sld [smem:[#allocation8 + $0xa3]] }
 0x2d2   : > { %v2275_v27 = vadd.f32 %v2274_v14, %v2271_v21  ;;  %v2447_v23 = vadd.f32 %v2446_v13, %v2443_v2  ;;  %v2286_v41 = vmul.f32 %v2285_v31, %v7150_v61  ;;  %v2454_v24 = vmul.f32 %v7127_v56, %v2453_v8  ;;  %v7154_v21 = vld [vmem:[#allocation84_spill] sm:$0xff] }
 0x2d3   : > { %v5935_v58 = vadd.f32 %v7149_v17, %v2111_v40  ;;  %v2461_v45 = vstv %s5911_s6  ;;  %v2290_v49 = vmul.f32 %v2289_v57, %v7151_v54  ;;  %v2458_v52 = vmul.f32 %v2457_v7, %v5149_v37  ;;  %v7155_v40 = vld [vmem:[#allocation85_spill] sm:$0xff]  ;;  %s3009_s6 = sld [smem:[#allocation8 + $0xcc]] }
 0x2d4   : > { %v2279_v43 = vadd.f32 %v2278_v55, %v2275_v27  ;;  %v2451_v4 = vadd.f32 %v2450_v11, %v2447_v23  ;;  %v2293_v10 = vstv %s5919_s24  ;;  %v2465_v63 = vstv %s5921_s16  ;;  %s3052_s24 = sld [smem:[#allocation8 + $0xf5]]  ;;  %s3095_s16 = sld [smem:[#allocation8 + $0x11e]] }
 0x2d5   : > { %v2297_v56 = vstv %s5923_s9  ;;  %v2462_v22 = vmul.f32 %v5129_v20, %v2461_v45  ;;  %v2469_v5 = vstv %s5929_s10  ;;  %v2294_v46 = vmul.f32 %v2293_v10, %v7152_v25  ;;  %s7158_s9 = sld [smem:[#allocation25_spill]]  ;;  %s3138_s10 = sld [smem:[#allocation8 + $0x147]] }
 0x2d6   : > { %v2283_v35 = vadd.f32 %v2282_v34, %v2279_v43  ;;  %v2455_v26 = vadd.f32 %v2454_v24, %v2451_v4  ;;  %v2466_v42 = vmul.f32 %v2465_v63, %v5206_v16  ;;  %v2298_v48 = vmul.f32 %v2297_v56, %v7153_v30 }
 0x2d7   : > { %v2301_v19 = vstv %s5932_s3  ;;  %v2305_v15 = vstv %s5938_s4  ;;  %v2473_v20 = vstv %s5941_s15  ;;  %v2309_v9 = vstv %s5944_s12  ;;  %s7159_s15 = sld [smem:[#allocation20_spill]]  ;;  %s7160_s12 = sld [smem:[#allocation23_spill]] }
 0x2d8   : > { %v2287_v50 = vadd.f32 %v2286_v41, %v2283_v35  ;;  %v2459_v28 = vadd.f32 %v2458_v52, %v2455_v26  ;;  %v2470_v55 = vmul.f32 %v5190_v44, %v2469_v5  ;;  %v2477_v3 = vstv %s5948_s0 }
 0x2d9   : > { %v2302_v2 = vmul.f32 %v2301_v19, %v7154_v21  ;;  %v2474_v11 = vmul.f32 %v2473_v20, %v6877_v0  ;;  %v2306_v31 = vmul.f32 %v2305_v15, %v7155_v40  ;;  %v2310_v8 = vmul.f32 %v5855_v38, %v2309_v9 }
 0x2da   : > { %v2291_v37 = vadd.f32 %v2290_v49, %v2287_v50  ;;  %v2463_v51 = vadd.f32 %v2462_v22, %v2459_v28  ;;  %v2313_v27 = vstv %s5953_s29  ;;  %v2481_v34 = vstv %s5956_s18 }
 0x2db   : > { %v2317_v23 = vstv %s5959_s8  ;;  %v2478_v57 = vmul.f32 %v2477_v3, %v6880_v12  ;;  %v2485_v7 = vstv %s5963_s1  ;;  %v2489_v43 = vstv %s5965_s23  ;;  %s2783_s3 = sshll.u32 %s7158_s9, 6  ;;  %s7161_s1 = sld [smem:[#allocation298_spill]] }
 0x2dc   : > { %v2295_v6 = vadd.f32 %v2294_v46, %v2291_v37  ;;  %v2467_v14 = vadd.f32 %v2466_v42, %v2463_v51  ;;  %v2314_v0 = vmul.f32 %v5864_v1, %v2313_v27  ;;  %v2482_v24 = vmul.f32 %v2481_v34, %v6882_v47  ;;  %s6027_s4 = scalar_lea.vmem [#allocation10], %s2783_s3 }
 0x2dd   : > { %v2318_v45 = vmul.f32 %v5868_v33, %v2317_v23  ;;  %v2321_v35 = vstv %s5972_s7  ;;  %v2493_v49 = vstv %s5975_s30  ;;  %v2486_v10 = vmul.f32 %v2485_v7, %v5384_v62  ;;  %s3147_s0 = sshll.u32 %s7159_s15, 10  ;;  %s2651_s29 = sshll.u32 %s6027_s4, 4  ;;  %s6050_s29 = int_to_ptr.vmem [resolvable:$true] %s2651_s29 }
 0x2de   : > { %v2299_v16 = vadd.f32 %v2298_v48, %v2295_v6  ;;  %v2471_v13 = vadd.f32 %v2470_v55, %v2467_v14  ;;  %v2490_v12 = vmul.f32 %v2489_v43, %v7147_v39  ;;  %v2497_v63 = vstv %s5980_s21  ;;  %v7156_v48 = vld [vmem:[#allocation273_spill] sm:$0xff]  ;;  %s2638_s7 = scalar_lea.sflag [#allocation4], %s7158_s9  ;;  %s3426_s30 = scalar_lea.vmem %s6050_s29, 1024 }
 0x2df   : > { %v2322_v56 = vmul.f32 %v5779_v32, %v2321_v35  ;;  %v2494_v22 = vmul.f32 %v2493_v49, %v7148_v60  ;;  %v2501_v47 = vstv %s5988_s27  ;;  %v2498_v46 = vmul.f32 %v2497_v63, %v7150_v61  ;;  %p3427_p6 = scmp.ne.s32.totalorder %s6050_s29, %s3426_s30  ;;  %p7162_p10 = scmp.ne.s32.totalorder %s7160_s12, 0 }
 0x2e0   : > { %v2303_v44 = vadd.f32 %v2302_v2, %v2299_v16  ;;  %v2475_v17 = vadd.f32 %v2474_v11, %v2471_v13  ;;  %v2502_v39 = vmul.f32 %v2501_v47, %v7151_v54  ;;  %v2505_v42 = vstv %s3118_s13  ;;  %s3514_s21 = smov [#allocation10]  }
 0x2e1   : > { %v2509_v20 = vstv %s3119_s11  ;;  %v2506_v6 = vmul.f32 %v2505_v42, %v7152_v25  ;;  %v2513_v9 = vstv %s3120_s25  ;;  %v2517_v55 = vstv %s3121_s20  ;;  %s6048_s23 = scalar_lea.hbm %s7161_s1, %s3147_s0  ;;  %p3428_p12 = pnand %p3427_p6, %p7162_p10 }
 0x2e2   : > { %v2307_v41 = vadd.f32 %v2306_v31, %v2303_v44  ;;  %v2479_v4 = vadd.f32 %v2478_v57, %v2475_v17  ;;  %v2510_v14 = vmul.f32 %v2509_v20, %v7153_v30  ;;  %v2521_v3 = vstv %s3122_s19  ;;  %v1126_v17 = vpop.trf.xlu1  ;;  %s3430_s27 = sshll.u32 %s3514_s21, 4  ;;  %s3431_s27 = int_to_ptr.vmem [resolvable:$false] %s3430_s27 }
 0x2e3   : > { %v2514_v16 = vmul.f32 %v2513_v9, %v7154_v21  ;;  %v2525_v2 = vstv %s3123_s17  ;;  %v2518_v11 = vmul.f32 %v2517_v55, %v7155_v40  ;;  %v2522_v31 = vmul.f32 %v5855_v38, %v2521_v3  ;;  %p3429_p13 = pneg %p3428_p12  ;;  %s3432_s13 = scalar_lea.vmem %s3431_s27, 2048 }
 0x2e4   : > { %v2311_v26 = vadd.f32 %v2310_v8, %v2307_v41  ;;  %v2483_v52 = vadd.f32 %v2482_v24, %v2479_v4  ;;  %v2529_v8 = vstv %s3124_s2  ;;  %v2526_v27 = vmul.f32 %v5864_v1, %v2525_v2  ;;  %v7157_v24 = vld [vmem:[#allocation274_spill] sm:$0xff]  ;;  %p3433_p8 = scmp.lt.s32.totalorder %s6050_s29, %s3431_s27  ;;  %p3434_p0 = scmp.lt.s32.totalorder %s3432_s13, %s3426_s30 }
 0x2e5   : > { %v2533_v34 = vstv %s3125_s28  ;;  %v2530_v30 = vmul.f32 %v5868_v33, %v2529_v8  ;;  %v1144_v23 = vstv %s2838_s26  ;;  %v1142_v7 = vadd.f32 %v1126_v17, %v5760_v53 }
 0x2e6   : > { %v2315_v50 = vadd.f32 %v2314_v0, %v2311_v26  ;;  %v2487_v28 = vadd.f32 %v2486_v10, %v2483_v52  ;;  %v2534_v21 = vmul.f32 %v5779_v32, %v2533_v34  ;;  %v1355_v38 = vstv %s2880_s5  ;;  %v1337_v41 = vpop.trf.xlu1  ;;  %p3435_p5 = por %p3434_p0, %p3433_p8 }
 0x2e7   : > { %v1145_v43 = vadd.f32 %v1144_v23, %v1142_v7  ;;  %v1353_v1 = vadd.f32 %v1337_v41, %v5792_v59  ;;  %v1567_v35 = vstv %s2923_s22  ;;  %v1779_v52 = vstv %s2966_s14 }
 0x2e8   : > { %v2319_v5 = vadd.f32 %v2318_v45, %v2315_v50  ;;  %v2491_v37 = vadd.f32 %v2490_v12, %v2487_v28  ;;  %v1991_v50 = vstv %s3009_s6  ;;  %p3436_p9 = pnand %p3435_p5, %p3429_p13 }
 0x2e9   : > { %v2839_v4 = vmul.f32 -1.442695, %v1145_v43  ;;  %v1356_v33 = vadd.f32 %v1355_v38, %v1353_v1 }
 0x2ea   : > { %v2323_v51 = vadd.f32 %v2322_v56, %v2319_v5  ;;  %v2495_v62 = vadd.f32 %v2494_v22, %v2491_v37  ;;  %v1549_v49 = vpop.trf.xlu1  ;;  %v2203_v37 = vstv %s3052_s24 }
 0x2eb   : > { %3283 = vpow2.f32 %v2839_v4  ;;  %v2881_v26 = vmul.f32 -1.442695, %v1356_v33  ;;  %v1565_v32 = vadd.f32 %v1549_v49, %v5819_v36 }
 0x2ec   : > { %v6008_v19 = vadd.f32 %v7156_v48, %v2323_v51  ;;  %v2499_v15 = vadd.f32 %v2498_v46, %v2495_v62  ;;  %v2415_v48 = vstv %s3095_s16 }
 0x2ed   : > { %3285 = vpow2.f32 %v2881_v26  ;;  %v1568_v53 = vadd.f32 %v1567_v35, %v1565_v32 }
 0x2ee   : > { %v2503_v60 = vadd.f32 %v2502_v39, %v2499_v15  ;;  %v1761_v10 = vpop.trf.xlu1 }
 0x2ef   : > { %v2924_v12 = vmul.f32 -1.442695, %v1568_v53  ;;  %v1777_v63 = vadd.f32 %v1761_v10, %v5860_v29 }
 0x2f0   : > { %v2507_v61 = vadd.f32 %v2506_v6, %v2503_v60 }
 0x2f1   : > { %3287 = vpow2.f32 %v2924_v12  ;;  %v1780_v59 = vadd.f32 %v1779_v52, %v1777_v63 }
 0x2f2   : > { %v2511_v54 = vadd.f32 %v2510_v14, %v2507_v61  ;;  %v1973_v56 = vpop.trf.xlu1  ;;  %v2627_v61 = vstv %s3138_s10 }
 0x2f3   : > { %v2967_v22 = vmul.f32 -1.442695, %v1780_v59  ;;  %v1989_v47 = vadd.f32 %v1973_v56, %v5905_v18 }
 0x2f4   : > { %v2515_v13 = vadd.f32 %v2514_v16, %v2511_v54 }
 0x2f5   : > { %v3284_v28 = vpop.eup %3283  ;;  %3289 = vpow2.f32 %v2967_v22  ;;  %v1992_v36 = vadd.f32 %v1991_v50, %v1989_v47 }
 0x2f6   : > { %v2519_v25 = vadd.f32 %v2518_v11, %v2515_v13  ;;  %v1149_v5 = vadd.f32 1.0, %v3284_v28  ;;  %v2185_v46 = vpop.trf.xlu1 }
 0x2f7   : > { %v3286_v51 = vpop.eup %3285  ;;  %v3010_v62 = vmul.f32 -1.442695, %v1992_v36  ;;  %v2201_v29 = vadd.f32 %v2185_v46, %v5935_v58 }
 0x2f8   : > { %v2523_v44 = vadd.f32 %v2522_v31, %v2519_v25  ;;  %3291 = vrcp.f32 %v1149_v5  ;;  %v1360_v39 = vadd.f32 1.0, %v3286_v51 }
 0x2f9   : > { %3293 = vpow2.f32 %v3010_v62  ;;  %v2204_v42 = vadd.f32 %v2203_v37, %v2201_v29 }
 0x2fa   : > { %v2527_v57 = vadd.f32 %v2526_v27, %v2523_v44  ;;  %3295 = vrcp.f32 %v1360_v39 }
 0x2fb   : > { %v2397_v15 = vpop.trf.xlu1  ;;  %v3288_v20 = vpop.eup %3287  ;;  %v3053_v18 = vmul.f32 -1.442695, %v2204_v42 }
 0x2fc   : > { %v2531_v40 = vadd.f32 %v2530_v30, %v2527_v57  ;;  %v2413_v60 = vadd.f32 %v2397_v15, %v6008_v19  ;;  %v1572_v6 = vadd.f32 1.0, %v3288_v20 }
 0x2fd   : > { %3297 = vpow2.f32 %v3053_v18 }
 0x2fe   : > { %v2535_v0 = vadd.f32 %v2534_v21, %v2531_v40  ;;  %v2416_v9 = vadd.f32 %v2415_v48, %v2413_v60  ;;  %3299 = vrcp.f32 %v1572_v6 }
 0x2ff   : > { %v3290_v55 = vpop.eup %3289 }
 0x300   : > { %v2587_v45 = vadd.f32 %v7157_v24, %v2535_v0  ;;  %v3096_v3 = vmul.f32 -1.442695, %v2416_v9  ;;  %v1784_v16 = vadd.f32 1.0, %v3290_v55 }
 0x302   : > { %v3292_v54 = vpop.eup %3291  ;;  %3301 = vpow2.f32 %v3096_v3 }
 0x303   : > { %1152 = vst.msk [vmem:[%s6027_s4] sm:$0xff] %vm322_vm0, %v3292_v54  ;;  %3303 = vrcp.f32 %v1784_v16  ;;  %v3294_v2 = vpop.eup %3293 }
 0x304   : > { %v3296_v11 = vpop.eup %3295  ;;  %v1996_v31 = vadd.f32 1.0, %v3294_v2 }
 0x305   : > { %2882 = vst.msk [vmem:[%s6027_s4 + $0x8] sm:$0xff] %vm322_vm0, %v3296_v11 }
 0x307   : > { %v3298_v8 = vpop.eup %3297 }
 0x308   : > { %v2609_v14 = vpop.trf.xlu1  ;;  %v3300_v25 = vpop.eup %3299  ;;  %v2208_v27 = vadd.f32 1.0, %v3298_v8 }
 0x309   : > { %v2625_v58 = vadd.f32 %v2609_v14, %v2587_v45  ;;  %2925 = vst.msk [vmem:[%s6027_s4 + $0x10] sm:$0xff] %vm322_vm0, %v3300_v25 }
 0x30b   : > { %v2628_v19 = vadd.f32 %v2627_v61, %v2625_v58 }
 0x30c   : > { %v3302_v34 = vpop.eup %3301 }
 0x30d   : > { %v3139_v13 = vmul.f32 -1.442695, %v2628_v19  ;;  %v3304_v44 = vpop.eup %3303  ;;  %v2420_v30 = vadd.f32 1.0, %v3302_v34 }
 0x30e   : > { %2968 = vst.msk [vmem:[%s6027_s4 + $0x18] sm:$0xff] %vm322_vm0, %v3304_v44 }
 0x30f   : > { %3305 = vpow2.f32 %v3139_v13 }
 0x310   : > { %3307 = vrcp.f32 %v1996_v31 }
 0x311   : > { %3309 = vrcp.f32 %v2208_v27 }
 0x312   : > { %3311 = vrcp.f32 %v2420_v30 }
 0x319   : > { %v3306_v23 = vpop.eup %3305 }
 0x31a   : > { %v3308_v17 = vpop.eup %3307  ;;  %v2632_v57 = vadd.f32 1.0, %v3306_v23 }
 0x31b   : > { %3011 = vst.msk [vmem:[%s6027_s4 + $0x20] sm:$0xff] %vm322_vm0, %v3308_v17  ;;  %v3310_v21 = vpop.eup %3309 }
 0x31c   : > { %3313 = vrcp.f32 %v2632_v57  ;;  %3054 = vst.msk [vmem:[%s6027_s4 + $0x28] sm:$0xff] %vm322_vm0, %v3310_v21  ;;  %v3312_v7 = vpop.eup %3311 }
 0x31d   : > { %3097 = vst.msk [vmem:[%s6027_s4 + $0x30] sm:$0xff] %vm322_vm0, %v3312_v7 }
 0x326   : > { %v3314_v40 = vpop.eup %3313 }
 0x327   : > { %3140 = vst.msk [vmem:[%s6027_s4 + $0x38] sm:$0xff] %vm322_vm0, %v3314_v40 }
 0x328   : > { %3439 = shalt.err (!%p3436_p9)
}
 0x329   : > { %s3440_s11 = scalar_lea.hbm %s6048_s23, 1024  ;;  %s3444_s19 = scalar_lea.hbm %s7161_s1, 2048 }
 0x32a   : > { %p3441_p3 = scmp.ne.s32.totalorder %s6048_s23, %s3440_s11  ;;  %p3445_p4 = scmp.lt.u32.totalorder %s6048_s23, %s7161_s1 }
 0x32b   : > { %p3446_p2 = scmp.lt.u32.totalorder %s3444_s19, %s3440_s11  ;;  %p3448_p6 = scmp.lt.u32.totalorder %s3440_s11, %s6048_s23 }
 0x32c   : > { %p3442_p7 = pnand %p3441_p3, %p7162_p10 }
 0x32d   : > { %p3447_p1 = por %p3446_p2, %p3445_p4 }
 0x32e   : > { %p3443_p11 = pneg %p3442_p7 }
 0x32f   : > { %p3449_p12 = por %p3448_p6, %p3447_p1 }
 0x331   : > { %p3450_p13 = pnand %p3449_p12, %p3443_p11 }
 0x333   : > { %3453 = shalt.err (!%p3450_p13)
}
 0x334   : > { %s3515_s28 = smov 128   ;;  %s3516_s26 = smov 8  }
 0x335   : > { %3217 = dma.vmem_to_hbm [thread:$0]  (%p7162_p10), %s6050_s29, 1024, %s6048_s23, %s2638_s7, %s3515_s28, %s3515_s28, %s3516_s26  }
 0x336 PF: > { %s7163_s5 = sld [smem:[#allocation16_spill]]  ;;  %s7164_s22 = sld [smem:[#allocation21_spill]] }
 0x337   : > { %s7165_s14 = sld [smem:[#allocation19_spill]] }
 0x33c   : > { %s2666_s6 = sand.u32 1, %s7163_s5   ;;  %p7166_p8 = scmp.ne.s32.totalorder %s7164_s22, 0 }
 0x33d   : > { %p7167_p0 = scmp.ge.s32.totalorder %s7165_s14, 2  ;;  %s2667_s24 = scalar_lea.sflag [#allocation4], %s2666_s6 }
 0x33f   : > { %p3234_p5 = pnand %p7167_p0, %p7166_p8 }
 0x341   : > { %3487 = dma.done.wait (!%p3234_p5), %s2667_s24, 1024  }
 0x342   : > { %3489 = vsyncadd (!%p3234_p5), %s2667_s24, 4294966272  ;;  %s7168_s18 = sld [smem:[#allocation22_spill]]  ;;  %s7169_s15 = sld [smem:[#allocation17_spill]] }
 0x343   : > { %s7170_s16 = sld [smem:[#allocation18_spill]]  ;;  %s7171_s17 = sld [smem:[#allocation24_spill]] }
 0x348   : > { %p21_p9 = scmp.ge.s32.totalorder %s7168_s18, 4  }
 0x34a   :  { %23 = sbr.rel (!%p21_p9) target bundleno = 14 (0xe), region = 110 }
 0x351   :  { %2672 = vsyncpa [#allocation3], 1 }
 0x352   :  { %2674 = vsyncpa [#allocation3 + $0x1], 1 }
 0x353   :  { %2675 = vsyncpa [#allocation7], 1 }
 0x354   :  { %2677 = vsyncpa [#allocation7 + $0x1], 1 }
 0x355   :  { %2678 = vsyncpa [#allocation4], 1 }
 0x356   :  { %2680 = vsyncpa [#allocation4 + $0x1], 1 }
 0x357   :  { %2681 = vsyncpa [#allocation5], 1 }
 0x358   :  { %2683 = vsyncpa [#allocation5 + $0x1], 1 }

</bundles_post_ra>
